<compile_context>
chip_gen: v5e
topology: v5e:2x2
jax: 0.10.0
libtpu: 0.0.40
codegen_flags: <defaults>
</compile_context>

<pallas_src>
import functools
import math

import jax
import jax.numpy as jnp
from jax import lax
from jax.experimental import pallas as pl
from jax.experimental.pallas import tpu as pltpu


def encoder_block_kernel(pe_ref, wqkv_ref, bqkv_ref, wd_ref, bd_ref,
                         ln1a_ref, ln1b_ref, ln2a_ref, ln2b_ref,
                         wf1_ref, bf1_ref, wf2_ref, bf2_ref,
                         x_ref, o_ref,
                         *, num_head, layer_num, fast_math):
    H = num_head
    x = x_ref[0].astype(jnp.float32)              # [S, D] for this batch element
    S, D = x.shape
    dh = D // H
    scale = 1.0 / math.sqrt(D)                    # score / sqrt(input_tensor.shape[2]) = sqrt(d_model)

    pe = pe_ref[...]
    wqkv, bqkv = wqkv_ref[...], bqkv_ref[...]     # fused Q|K|V projection
    wd, bd = wd_ref[...], bd_ref[...]
    ln1a, ln1b = ln1a_ref[...], ln1b_ref[...]
    ln2a, ln2b = ln2a_ref[...], ln2b_ref[...]
    wf1, bf1 = wf1_ref[...], bf1_ref[...]
    wf2, bf2 = wf2_ref[...], bf2_ref[...]
    mm_dtype = wqkv.dtype                         # bf16 (fast_math) or f32 MXU inputs

    def recip(v):
        # EUP approximate reciprocal frees VPU slots (fast path); exact divide otherwise.
        return pl.reciprocal(v, approx=True) if fast_math else 1.0 / v

    def mm(a, w):                                 # MXU matmul with f32 accumulation
        return jnp.dot(a.astype(mm_dtype), w, preferred_element_type=jnp.float32)

    def layernorm(v, a, b, eps=1e-6):
        # torch-style: unbiased std (divide by D-1), `std + eps` in the denominator.
        mean = jnp.mean(v, axis=-1, keepdims=True)
        diff = v - mean
        var = jnp.sum(diff * diff, axis=-1, keepdims=True) / (D - 1.0)
        return a * (diff * recip(jnp.sqrt(var) + eps)) + b

    def layer(_, xc):
        xc = xc + pe                              # positional encoding (dropout = identity)

        # ---- sublayer 0: multi-head self-attention ----
        y = layernorm(xc, ln1a, ln1b)
        qkv = mm(y, wqkv) + bqkv                  # [S, 3D] in one MXU op
        qkv = qkv.reshape(S, 3 * H, dh).astype(mm_dtype)
        qkv = pltpu.einshape("sgd->gsd", qkv)     # [3H, S, dh], head-major
        qh, kh, vh = qkv[0:H], qkv[H:2 * H], qkv[2 * H:3 * H]

        scores = jnp.einsum("hqd,hkd->hqk", qh, kh,
                            preferred_element_type=jnp.float32) * scale   # [H, S, S]
        m = jnp.max(scores, axis=0, keepdims=True)
        e = jnp.exp(scores - m)                   # softmax over the HEAD axis (torch dim=1)
        prob = e * recip(jnp.sum(e, axis=0, keepdims=True))
        ctx = jnp.einsum("hqk,hkd->hqd", prob.astype(mm_dtype), vh,
                         preferred_element_type=jnp.float32)              # [H, S, dh]
        ctx = pltpu.einshape("hsd->shd", ctx).reshape(S, D)
        xc = xc + mm(ctx, wd) + bd                # dense projection + residual

        # ---- sublayer 1: feed-forward (ReLU after BOTH linears, per reference) ----
        y2 = layernorm(xc, ln2a, ln2b)
        h1 = jnp.maximum(mm(y2, wf1) + bf1, 0.0)
        h2 = jnp.maximum(mm(h1, wf2) + bf2, 0.0)
        return xc + h2

    x = lax.fori_loop(0, layer_num, layer, x, unroll=layer_num <= 2)
    o_ref[0] = x.astype(o_ref.dtype)


def multihead_attention_block(x, params, *, num_head, layer_num, fast_math=False):
    """x: [B, S, D]. Applies the shared encoder block layer_num times."""
    B, S, D = x.shape
    d_ff = params["wf1"].shape[1]
    mm_dtype = jnp.bfloat16 if fast_math else jnp.float32

    # Host-side QKV fusion; matmul weights cast to the MXU input dtype here so they are
    # DMA'd / VMEM-resident at half width when fast_math=True. Biases / LN params / PE
    # stay f32 (VPU math in f32).
    wqkv = jnp.concatenate([params["wq"], params["wk"], params["wv"]], axis=1).astype(mm_dtype)
    bqkv = jnp.concatenate([params["bq"], params["bk"], params["bv"]], axis=1)
    wd = params["wd"].astype(mm_dtype)
    wf1 = params["wf1"].astype(mm_dtype)
    wf2 = params["wf2"].astype(mm_dtype)

    def const_spec(shape):
        # Block index never changes with the batch grid index -> fetched once.
        # (For very large d_model these could additionally be single-buffered or kept
        #  in HBM and DMA'd once into scratch.)
        return pl.BlockSpec(shape, lambda b, n=len(shape): (0,) * n)

    kernel = functools.partial(encoder_block_kernel, num_head=num_head,
                               layer_num=layer_num, fast_math=fast_math)

    in_specs = [
        const_spec((S, D)),                              # pe
        const_spec((D, 3 * D)), const_spec((1, 3 * D)),  # fused qkv weight / bias
        const_spec((D, D)), const_spec((1, D)),          # dense
        const_spec((1, D)), const_spec((1, D)),          # layernorm 1 (a, b)
        const_spec((1, D)), const_spec((1, D)),          # layernorm 2 (a, b)
        const_spec((D, d_ff)), const_spec((1, d_ff)),    # ff linear1
        const_spec((d_ff, D)), const_spec((1, D)),       # ff linear2
        pl.BlockSpec((1, S, D), lambda b: (b, 0, 0)),    # x (one batch element per step)
    ]
    out_specs = pl.BlockSpec((1, S, D), lambda b: (b, 0, 0))

    return pl.pallas_call(
        kernel,
        out_shape=jax.ShapeDtypeStruct((B, S, D), x.dtype),
        grid=(B,),
        in_specs=in_specs,
        out_specs=out_specs,
        compiler_params=pltpu.CompilerParams(
            dimension_semantics=("parallel",),           # batch elems independent (v7x: 2 TCs)
            vmem_limit_bytes=32 * 1024 * 1024,           # above the v5e 16 MiB scoped default
        ),
    )(params["pe"], wqkv, bqkv, wd, params["bd"],
      params["a1"], params["b1"], params["a2"], params["b2"],
      wf1, params["bf1"], wf2, params["bf2"], x)


def make_positional_encoding(seq_len, d_model):
    position = jnp.arange(seq_len, dtype=jnp.float32)[:, None]
    div_term = jnp.exp(jnp.arange(0, d_model, 2, dtype=jnp.float32)
                       * (-math.log(10000.0) / d_model))
    pe = jnp.zeros((seq_len, d_model), jnp.float32)
    pe = pe.at[:, 0::2].set(jnp.sin(position * div_term))
    pe = pe.at[:, 1::2].set(jnp.cos(position * div_term))
    return pe


def init_params(key, d_model, d_ff, seq_len):
    ks = jax.random.split(key, 12)
    lin = lambda k, i, o: jax.random.normal(k, (i, o), jnp.float32) / math.sqrt(i)
    bias = lambda k, o: 0.01 * jax.random.normal(k, (1, o), jnp.float32)
    return {
        "pe": make_positional_encoding(seq_len, d_model),
        "wq": lin(ks[0], d_model, d_model), "bq": bias(ks[1], d_model),
        "wk": lin(ks[2], d_model, d_model), "bk": bias(ks[3], d_model),
        "wv": lin(ks[4], d_model, d_model), "bv": bias(ks[5], d_model),
        "wd": lin(ks[6], d_model, d_model), "bd": bias(ks[7], d_model),
        "a1": jnp.ones((1, d_model), jnp.float32), "b1": jnp.zeros((1, d_model), jnp.float32),
        "a2": jnp.ones((1, d_model), jnp.float32), "b2": jnp.zeros((1, d_model), jnp.float32),
        "wf1": lin(ks[8], d_model, d_ff), "bf1": bias(ks[9], d_ff),
        "wf2": lin(ks[10], d_ff, d_model), "bf2": bias(ks[11], d_model),
    }


def reference(x, params, *, num_head, layer_num):
    # Pure-JAX mirror of the PyTorch forward (dropout = identity).
    B, S, D = x.shape
    dh = D // num_head

    def ln(v, a, b, eps=1e-6):
        mean = v.mean(-1, keepdims=True)
        std = jnp.sqrt(((v - mean) ** 2).sum(-1, keepdims=True) / (D - 1))
        return a * (v - mean) / (std + eps) + b

    for _ in range(layer_num):
        x = x + params["pe"][None]
        y = ln(x, params["a1"], params["b1"])
        q = (y @ params["wq"] + params["bq"]).reshape(B, S, num_head, dh).transpose(0, 2, 1, 3)
        k = (y @ params["wk"] + params["bk"]).reshape(B, S, num_head, dh).transpose(0, 2, 1, 3)
        v = (y @ params["wv"] + params["bv"]).reshape(B, S, num_head, dh).transpose(0, 2, 1, 3)
        scores = jnp.einsum("bhqd,bhkd->bhqk", q, k) / math.sqrt(D)
        prob = jax.nn.softmax(scores, axis=1)           # over heads (torch dim=1)
        ctx = jnp.einsum("bhqk,bhkd->bhqd", prob, v).transpose(0, 2, 1, 3).reshape(B, S, D)
        x = x + (ctx @ params["wd"] + params["bd"])
        y2 = ln(x, params["a2"], params["b2"])
        h1 = jax.nn.relu(y2 @ params["wf1"] + params["bf1"])
        h2 = jax.nn.relu(h1 @ params["wf2"] + params["bf2"])
        x = x + h2
    return x


if __name__ == "__main__":
    # Small, lane-dense demo config: d_model = 128 (exactly one lane tile), 4 heads.
    B, S, D = 2, 8, 128
    n_head, layer_num = 4, 2
    d_ff = 4 * D

    key = jax.random.PRNGKey(0)
    kx, kp = jax.random.split(key)
    x = jax.random.normal(kx, (B, S, D), jnp.float32)
    params = init_params(kp, D, d_ff, S)

    ref = reference(x, params, num_head=n_head, layer_num=layer_num)

    # Full-precision path (f32 MXU inputs, exact divides): tight check.
    out = multihead_attention_block(x, params, num_head=n_head, layer_num=layer_num,
                                    fast_math=False)
    out = jax.block_until_ready(out)
    assert out.shape == (B, S, D)
    assert jnp.allclose(out, ref, rtol=5e-4, atol=5e-4), (
        f"f32 mismatch vs reference: max abs err {jnp.max(jnp.abs(out - ref))}")

    # Fast-math path (bf16 MXU inputs + approx EUP reciprocals): looser tolerance.
    out_fast = multihead_attention_block(x, params, num_head=n_head, layer_num=layer_num,
                                         fast_math=True)
    out_fast = jax.block_until_ready(out_fast)
    assert jnp.allclose(out_fast, ref, rtol=5e-2, atol=5e-2), (
        f"fast-math mismatch vs reference: max abs err {jnp.max(jnp.abs(out_fast - ref))}")

    print("KERNEL_OK")
</pallas_src>

<mosaic_0001>
module attributes {stable_mosaic.version = 11 : i64} {
  func.func @encoder_block_kernel(%arg0: i32, %arg1: memref<8x128xf32, #tpu.memory_space<vmem>>, %arg2: memref<128x384xf32, #tpu.memory_space<vmem>>, %arg3: memref<1x384xf32, #tpu.memory_space<vmem>>, %arg4: memref<128x128xf32, #tpu.memory_space<vmem>>, %arg5: memref<1x128xf32, #tpu.memory_space<vmem>>, %arg6: memref<1x128xf32, #tpu.memory_space<vmem>>, %arg7: memref<1x128xf32, #tpu.memory_space<vmem>>, %arg8: memref<1x128xf32, #tpu.memory_space<vmem>>, %arg9: memref<1x128xf32, #tpu.memory_space<vmem>>, %arg10: memref<128x512xf32, #tpu.memory_space<vmem>>, %arg11: memref<1x512xf32, #tpu.memory_space<vmem>>, %arg12: memref<512x128xf32, #tpu.memory_space<vmem>>, %arg13: memref<1x128xf32, #tpu.memory_space<vmem>>, %arg14: memref<1x8x128xf32, #tpu.memory_space<vmem>>, %arg15: memref<1x8x128xf32, #tpu.memory_space<vmem>>) attributes {dimension_semantics = [#tpu.dimension_semantics<parallel>], iteration_bounds = array<i64: 2>, scalar_prefetch = 0 : i64, scratch_operands = 0 : i64, tpu.core_type = #tpu.core_type<tc>, window_params = [{pipeline_mode = #tpu.pipeline_mode<synchronous>, transform_indices = @transform_0, window_bounds = array<i64: 8, 128>}, {pipeline_mode = #tpu.pipeline_mode<synchronous>, transform_indices = @transform_1, window_bounds = array<i64: 128, 384>}, {pipeline_mode = #tpu.pipeline_mode<synchronous>, transform_indices = @transform_2, window_bounds = array<i64: 1, 384>}, {pipeline_mode = #tpu.pipeline_mode<synchronous>, transform_indices = @transform_3, window_bounds = array<i64: 128, 128>}, {pipeline_mode = #tpu.pipeline_mode<synchronous>, transform_indices = @transform_4, window_bounds = array<i64: 1, 128>}, {pipeline_mode = #tpu.pipeline_mode<synchronous>, transform_indices = @transform_5, window_bounds = array<i64: 1, 128>}, {pipeline_mode = #tpu.pipeline_mode<synchronous>, transform_indices = @transform_6, window_bounds = array<i64: 1, 128>}, {pipeline_mode = #tpu.pipeline_mode<synchronous>, transform_indices = @transform_7, window_bounds = array<i64: 1, 128>}, {pipeline_mode = #tpu.pipeline_mode<synchronous>, transform_indices = @transform_8, window_bounds = array<i64: 1, 128>}, {pipeline_mode = #tpu.pipeline_mode<synchronous>, transform_indices = @transform_9, window_bounds = array<i64: 128, 512>}, {pipeline_mode = #tpu.pipeline_mode<synchronous>, transform_indices = @transform_10, window_bounds = array<i64: 1, 512>}, {pipeline_mode = #tpu.pipeline_mode<synchronous>, transform_indices = @transform_11, window_bounds = array<i64: 512, 128>}, {pipeline_mode = #tpu.pipeline_mode<synchronous>, transform_indices = @transform_12, window_bounds = array<i64: 1, 128>}, {transform_indices = @transform_13, window_bounds = array<i64: 1, 8, 128>}, {transform_indices = @transform_14, window_bounds = array<i64: 1, 8, 128>}]} {
    %c0 = arith.constant 0 : index
    %c0_0 = arith.constant 0 : index
    %c0_1 = arith.constant 0 : index
    %0 = vector.load %arg14[%c0, %c0_0, %c0_1] : memref<1x8x128xf32, #tpu.memory_space<vmem>>, vector<1x8x128xf32>
    %1 = vector.shape_cast %0 : vector<1x8x128xf32> to vector<8x128xf32>
    %c0_2 = arith.constant 0 : index
    %c0_3 = arith.constant 0 : index
    %2 = vector.load %arg1[%c0_2, %c0_3] : memref<8x128xf32, #tpu.memory_space<vmem>>, vector<8x128xf32>
    %c0_4 = arith.constant 0 : index
    %c0_5 = arith.constant 0 : index
    %3 = vector.load %arg2[%c0_4, %c0_5] : memref<128x384xf32, #tpu.memory_space<vmem>>, vector<128x384xf32>
    %c0_6 = arith.constant 0 : index
    %c0_7 = arith.constant 0 : index
    %4 = vector.load %arg3[%c0_6, %c0_7] : memref<1x384xf32, #tpu.memory_space<vmem>>, vector<1x384xf32>
    %c0_8 = arith.constant 0 : index
    %c0_9 = arith.constant 0 : index
    %5 = vector.load %arg4[%c0_8, %c0_9] : memref<128x128xf32, #tpu.memory_space<vmem>>, vector<128x128xf32>
    %c0_10 = arith.constant 0 : index
    %c0_11 = arith.constant 0 : index
    %6 = vector.load %arg5[%c0_10, %c0_11] : memref<1x128xf32, #tpu.memory_space<vmem>>, vector<1x128xf32>
    %c0_12 = arith.constant 0 : index
    %c0_13 = arith.constant 0 : index
    %7 = vector.load %arg6[%c0_12, %c0_13] : memref<1x128xf32, #tpu.memory_space<vmem>>, vector<1x128xf32>
    %c0_14 = arith.constant 0 : index
    %c0_15 = arith.constant 0 : index
    %8 = vector.load %arg7[%c0_14, %c0_15] : memref<1x128xf32, #tpu.memory_space<vmem>>, vector<1x128xf32>
    %c0_16 = arith.constant 0 : index
    %c0_17 = arith.constant 0 : index
    %9 = vector.load %arg8[%c0_16, %c0_17] : memref<1x128xf32, #tpu.memory_space<vmem>>, vector<1x128xf32>
    %c0_18 = arith.constant 0 : index
    %c0_19 = arith.constant 0 : index
    %10 = vector.load %arg9[%c0_18, %c0_19] : memref<1x128xf32, #tpu.memory_space<vmem>>, vector<1x128xf32>
    %c0_20 = arith.constant 0 : index
    %c0_21 = arith.constant 0 : index
    %11 = vector.load %arg10[%c0_20, %c0_21] : memref<128x512xf32, #tpu.memory_space<vmem>>, vector<128x512xf32>
    %c0_22 = arith.constant 0 : index
    %c0_23 = arith.constant 0 : index
    %12 = vector.load %arg11[%c0_22, %c0_23] : memref<1x512xf32, #tpu.memory_space<vmem>>, vector<1x512xf32>
    %c0_24 = arith.constant 0 : index
    %c0_25 = arith.constant 0 : index
    %13 = vector.load %arg12[%c0_24, %c0_25] : memref<512x128xf32, #tpu.memory_space<vmem>>, vector<512x128xf32>
    %c0_26 = arith.constant 0 : index
    %c0_27 = arith.constant 0 : index
    %14 = vector.load %arg13[%c0_26, %c0_27] : memref<1x128xf32, #tpu.memory_space<vmem>>, vector<1x128xf32>
    %c0_i32 = arith.constant 0 : i32
    %15 = arith.addf %1, %2 : vector<8x128xf32>
    %cst = arith.constant dense<0.000000e+00> : vector<8xf32>
    %16 = vector.multi_reduction <add>, %15, %cst [1] : vector<8x128xf32> to vector<8xf32>
    %17 = vector.shape_cast %16 : vector<8xf32> to vector<8x1xf32>
    %cst_28 = arith.constant 1.280000e+02 : f32
    %18 = vector.broadcast %cst_28 : f32 to vector<8x1xf32>
    %19 = arith.divf %17, %18 : vector<8x1xf32>
    %20 = vector.broadcast %19 : vector<8x1xf32> to vector<8x128xf32>
    %21 = arith.subf %15, %20 : vector<8x128xf32>
    %22 = arith.mulf %21, %21 : vector<8x128xf32>
    %cst_29 = arith.constant dense<0.000000e+00> : vector<8xf32>
    %23 = vector.multi_reduction <add>, %22, %cst_29 [1] : vector<8x128xf32> to vector<8xf32>
    %24 = vector.shape_cast %23 : vector<8xf32> to vector<8x1xf32>
    %cst_30 = arith.constant 1.270000e+02 : f32
    %25 = vector.broadcast %cst_30 : f32 to vector<8x1xf32>
    %26 = arith.divf %24, %25 : vector<8x1xf32>
    %27 = math.sqrt %26 : vector<8x1xf32>
    %cst_31 = arith.constant 9.99999997E-7 : f32
    %28 = vector.broadcast %cst_31 : f32 to vector<8x1xf32>
    %29 = arith.addf %27, %28 : vector<8x1xf32>
    %cst_32 = arith.constant 1.000000e+00 : f32
    %30 = vector.broadcast %cst_32 : f32 to vector<8x1xf32>
    %31 = arith.divf %30, %29 : vector<8x1xf32>
    %32 = vector.broadcast %31 : vector<8x1xf32> to vector<8x128xf32>
    %33 = arith.mulf %21, %32 : vector<8x128xf32>
    %34 = vector.broadcast %7 : vector<1x128xf32> to vector<8x128xf32>
    %35 = arith.mulf %34, %33 : vector<8x128xf32>
    %36 = vector.broadcast %8 : vector<1x128xf32> to vector<8x128xf32>
    %37 = arith.addf %35, %36 : vector<8x128xf32>
    %cst_33 = arith.constant dense<0.000000e+00> : vector<8x384xf32>
    %38 = tpu.matmul %37, %3, %cst_33 {dimension_numbers = #tpu.dot_dimension_numbers<[1], [0], [0], [1], [0, 0, 1, 1], [], []>} : vector<8x128xf32>, vector<128x384xf32>, vector<8x384xf32> -> vector<8x384xf32>
    %39 = vector.broadcast %4 : vector<1x384xf32> to vector<8x384xf32>
    %40 = arith.addf %38, %39 : vector<8x384xf32>
    %41 = vector.shape_cast %40 : vector<8x384xf32> to vector<8x12x32xf32>
    %42 = tpu.transpose %41, [1, 0, 2] : vector<8x12x32xf32> -> vector<12x8x32xf32>
    %43 = vector.extract_strided_slice %42 {offsets = [0, 0, 0], sizes = [4, 8, 32], strides = [1, 1, 1]} : vector<12x8x32xf32> to vector<4x8x32xf32>
    %44 = vector.extract_strided_slice %42 {offsets = [4, 0, 0], sizes = [4, 8, 32], strides = [1, 1, 1]} : vector<12x8x32xf32> to vector<4x8x32xf32>
    %45 = vector.extract_strided_slice %42 {offsets = [8, 0, 0], sizes = [4, 8, 32], strides = [1, 1, 1]} : vector<12x8x32xf32> to vector<4x8x32xf32>
    "tpu.trace_start"() <{level = 10 : i32, message = "hqd,hkd->hqk"}> : () -> ()
    %cst_34 = arith.constant dense<0.000000e+00> : vector<4x8x8xf32>
    %46 = tpu.matmul %43, %44, %cst_34 {dimension_numbers = #tpu.dot_dimension_numbers<[2], [2], [1], [1], [0, 0, 0, 1, 1, 1], [0], [0]>} : vector<4x8x32xf32>, vector<4x8x32xf32>, vector<4x8x8xf32> -> vector<4x8x8xf32>
    "tpu.trace_stop"() : () -> ()
    %cst_35 = arith.constant 0.0883883461 : f32
    %47 = vector.broadcast %cst_35 : f32 to vector<4x8x8xf32>
    %48 = arith.mulf %46, %47 : vector<4x8x8xf32>
    %cst_36 = arith.constant dense<0xFF800000> : vector<8x8xf32>
    %49 = vector.multi_reduction <maximumf>, %48, %cst_36 [0] : vector<4x8x8xf32> to vector<8x8xf32>
    %50 = vector.shape_cast %49 : vector<8x8xf32> to vector<1x8x8xf32>
    %51 = vector.broadcast %50 : vector<1x8x8xf32> to vector<4x8x8xf32>
    %52 = arith.subf %48, %51 : vector<4x8x8xf32>
    %53 = math.exp %52 : vector<4x8x8xf32>
    %cst_37 = arith.constant dense<0.000000e+00> : vector<8x8xf32>
    %54 = vector.multi_reduction <add>, %53, %cst_37 [0] : vector<4x8x8xf32> to vector<8x8xf32>
    %55 = vector.shape_cast %54 : vector<8x8xf32> to vector<1x8x8xf32>
    %cst_38 = arith.constant 1.000000e+00 : f32
    %56 = vector.broadcast %cst_38 : f32 to vector<1x8x8xf32>
    %57 = arith.divf %56, %55 : vector<1x8x8xf32>
    %58 = vector.broadcast %57 : vector<1x8x8xf32> to vector<4x8x8xf32>
    %59 = arith.mulf %53, %58 : vector<4x8x8xf32>
    "tpu.trace_start"() <{level = 10 : i32, message = "hqk,hkd->hqd"}> : () -> ()
    %cst_39 = arith.constant dense<0.000000e+00> : vector<4x8x32xf32>
    %60 = tpu.matmul %59, %45, %cst_39 {dimension_numbers = #tpu.dot_dimension_numbers<[2], [1], [1], [2], [0, 0, 0, 1, 1, 2], [0], [0]>} : vector<4x8x8xf32>, vector<4x8x32xf32>, vector<4x8x32xf32> -> vector<4x8x32xf32>
    "tpu.trace_stop"() : () -> ()
    %61 = tpu.transpose %60, [1, 0, 2] : vector<4x8x32xf32> -> vector<8x4x32xf32>
    %62 = vector.shape_cast %61 : vector<8x4x32xf32> to vector<8x128xf32>
    %cst_40 = arith.constant dense<0.000000e+00> : vector<8x128xf32>
    %63 = tpu.matmul %62, %5, %cst_40 {dimension_numbers = #tpu.dot_dimension_numbers<[1], [0], [0], [1], [0, 0, 1, 1], [], []>} : vector<8x128xf32>, vector<128x128xf32>, vector<8x128xf32> -> vector<8x128xf32>
    %64 = arith.addf %15, %63 : vector<8x128xf32>
    %65 = vector.broadcast %6 : vector<1x128xf32> to vector<8x128xf32>
    %66 = arith.addf %64, %65 : vector<8x128xf32>
    %cst_41 = arith.constant dense<0.000000e+00> : vector<8xf32>
    %67 = vector.multi_reduction <add>, %66, %cst_41 [1] : vector<8x128xf32> to vector<8xf32>
    %68 = vector.shape_cast %67 : vector<8xf32> to vector<8x1xf32>
    %cst_42 = arith.constant 1.280000e+02 : f32
    %69 = vector.broadcast %cst_42 : f32 to vector<8x1xf32>
    %70 = arith.divf %68, %69 : vector<8x1xf32>
    %71 = vector.broadcast %70 : vector<8x1xf32> to vector<8x128xf32>
    %72 = arith.subf %66, %71 : vector<8x128xf32>
    %73 = arith.mulf %72, %72 : vector<8x128xf32>
    %cst_43 = arith.constant dense<0.000000e+00> : vector<8xf32>
    %74 = vector.multi_reduction <add>, %73, %cst_43 [1] : vector<8x128xf32> to vector<8xf32>
    %75 = vector.shape_cast %74 : vector<8xf32> to vector<8x1xf32>
    %cst_44 = arith.constant 1.270000e+02 : f32
    %76 = vector.broadcast %cst_44 : f32 to vector<8x1xf32>
    %77 = arith.divf %75, %76 : vector<8x1xf32>
    %78 = math.sqrt %77 : vector<8x1xf32>
    %cst_45 = arith.constant 9.99999997E-7 : f32
    %79 = vector.broadcast %cst_45 : f32 to vector<8x1xf32>
    %80 = arith.addf %78, %79 : vector<8x1xf32>
    %cst_46 = arith.constant 1.000000e+00 : f32
    %81 = vector.broadcast %cst_46 : f32 to vector<8x1xf32>
    %82 = arith.divf %81, %80 : vector<8x1xf32>
    %83 = vector.broadcast %82 : vector<8x1xf32> to vector<8x128xf32>
    %84 = arith.mulf %72, %83 : vector<8x128xf32>
    %85 = vector.broadcast %9 : vector<1x128xf32> to vector<8x128xf32>
    %86 = arith.mulf %85, %84 : vector<8x128xf32>
    %87 = vector.broadcast %10 : vector<1x128xf32> to vector<8x128xf32>
    %88 = arith.addf %86, %87 : vector<8x128xf32>
    %cst_47 = arith.constant dense<0.000000e+00> : vector<8x512xf32>
    %89 = tpu.matmul %88, %11, %cst_47 {dimension_numbers = #tpu.dot_dimension_numbers<[1], [0], [0], [1], [0, 0, 1, 1], [], []>} : vector<8x128xf32>, vector<128x512xf32>, vector<8x512xf32> -> vector<8x512xf32>
    %90 = vector.broadcast %12 : vector<1x512xf32> to vector<8x512xf32>
    %91 = arith.addf %89, %90 : vector<8x512xf32>
    %cst_48 = arith.constant 0.000000e+00 : f32
    %92 = vector.broadcast %cst_48 : f32 to vector<8x512xf32>
    %93 = arith.maximumf %91, %92 : vector<8x512xf32>
    %cst_49 = arith.constant dense<0.000000e+00> : vector<8x128xf32>
    %94 = tpu.matmul %93, %13, %cst_49 {dimension_numbers = #tpu.dot_dimension_numbers<[1], [0], [0], [1], [0, 0, 1, 1], [], []>} : vector<8x512xf32>, vector<512x128xf32>, vector<8x128xf32> -> vector<8x128xf32>
    %95 = vector.broadcast %14 : vector<1x128xf32> to vector<8x128xf32>
    %96 = arith.addf %94, %95 : vector<8x128xf32>
    %cst_50 = arith.constant 0.000000e+00 : f32
    %97 = vector.broadcast %cst_50 : f32 to vector<8x128xf32>
    %98 = arith.maximumf %96, %97 : vector<8x128xf32>
    %99 = arith.addf %66, %98 : vector<8x128xf32>
    %c1_i32 = arith.constant 1 : i32
    %100 = arith.addf %99, %2 : vector<8x128xf32>
    %cst_51 = arith.constant dense<0.000000e+00> : vector<8xf32>
    %101 = vector.multi_reduction <add>, %100, %cst_51 [1] : vector<8x128xf32> to vector<8xf32>
    %102 = vector.shape_cast %101 : vector<8xf32> to vector<8x1xf32>
    %cst_52 = arith.constant 1.280000e+02 : f32
    %103 = vector.broadcast %cst_52 : f32 to vector<8x1xf32>
    %104 = arith.divf %102, %103 : vector<8x1xf32>
    %105 = vector.broadcast %104 : vector<8x1xf32> to vector<8x128xf32>
    %106 = arith.subf %100, %105 : vector<8x128xf32>
    %107 = arith.mulf %106, %106 : vector<8x128xf32>
    %cst_53 = arith.constant dense<0.000000e+00> : vector<8xf32>
    %108 = vector.multi_reduction <add>, %107, %cst_53 [1] : vector<8x128xf32> to vector<8xf32>
    %109 = vector.shape_cast %108 : vector<8xf32> to vector<8x1xf32>
    %cst_54 = arith.constant 1.270000e+02 : f32
    %110 = vector.broadcast %cst_54 : f32 to vector<8x1xf32>
    %111 = arith.divf %109, %110 : vector<8x1xf32>
    %112 = math.sqrt %111 : vector<8x1xf32>
    %cst_55 = arith.constant 9.99999997E-7 : f32
    %113 = vector.broadcast %cst_55 : f32 to vector<8x1xf32>
    %114 = arith.addf %112, %113 : vector<8x1xf32>
    %cst_56 = arith.constant 1.000000e+00 : f32
    %115 = vector.broadcast %cst_56 : f32 to vector<8x1xf32>
    %116 = arith.divf %115, %114 : vector<8x1xf32>
    %117 = vector.broadcast %116 : vector<8x1xf32> to vector<8x128xf32>
    %118 = arith.mulf %106, %117 : vector<8x128xf32>
    %119 = vector.broadcast %7 : vector<1x128xf32> to vector<8x128xf32>
    %120 = arith.mulf %119, %118 : vector<8x128xf32>
    %121 = vector.broadcast %8 : vector<1x128xf32> to vector<8x128xf32>
    %122 = arith.addf %120, %121 : vector<8x128xf32>
    %cst_57 = arith.constant dense<0.000000e+00> : vector<8x384xf32>
    %123 = tpu.matmul %122, %3, %cst_57 {dimension_numbers = #tpu.dot_dimension_numbers<[1], [0], [0], [1], [0, 0, 1, 1], [], []>} : vector<8x128xf32>, vector<128x384xf32>, vector<8x384xf32> -> vector<8x384xf32>
    %124 = vector.broadcast %4 : vector<1x384xf32> to vector<8x384xf32>
    %125 = arith.addf %123, %124 : vector<8x384xf32>
    %126 = vector.shape_cast %125 : vector<8x384xf32> to vector<8x12x32xf32>
    %127 = tpu.transpose %126, [1, 0, 2] : vector<8x12x32xf32> -> vector<12x8x32xf32>
    %128 = vector.extract_strided_slice %127 {offsets = [0, 0, 0], sizes = [4, 8, 32], strides = [1, 1, 1]} : vector<12x8x32xf32> to vector<4x8x32xf32>
    %129 = vector.extract_strided_slice %127 {offsets = [4, 0, 0], sizes = [4, 8, 32], strides = [1, 1, 1]} : vector<12x8x32xf32> to vector<4x8x32xf32>
    %130 = vector.extract_strided_slice %127 {offsets = [8, 0, 0], sizes = [4, 8, 32], strides = [1, 1, 1]} : vector<12x8x32xf32> to vector<4x8x32xf32>
    "tpu.trace_start"() <{level = 10 : i32, message = "hqd,hkd->hqk"}> : () -> ()
    %cst_58 = arith.constant dense<0.000000e+00> : vector<4x8x8xf32>
    %131 = tpu.matmul %128, %129, %cst_58 {dimension_numbers = #tpu.dot_dimension_numbers<[2], [2], [1], [1], [0, 0, 0, 1, 1, 1], [0], [0]>} : vector<4x8x32xf32>, vector<4x8x32xf32>, vector<4x8x8xf32> -> vector<4x8x8xf32>
    "tpu.trace_stop"() : () -> ()
    %cst_59 = arith.constant 0.0883883461 : f32
    %132 = vector.broadcast %cst_59 : f32 to vector<4x8x8xf32>
    %133 = arith.mulf %131, %132 : vector<4x8x8xf32>
    %cst_60 = arith.constant dense<0xFF800000> : vector<8x8xf32>
    %134 = vector.multi_reduction <maximumf>, %133, %cst_60 [0] : vector<4x8x8xf32> to vector<8x8xf32>
    %135 = vector.shape_cast %134 : vector<8x8xf32> to vector<1x8x8xf32>
    %136 = vector.broadcast %135 : vector<1x8x8xf32> to vector<4x8x8xf32>
    %137 = arith.subf %133, %136 : vector<4x8x8xf32>
    %138 = math.exp %137 : vector<4x8x8xf32>
    %cst_61 = arith.constant dense<0.000000e+00> : vector<8x8xf32>
    %139 = vector.multi_reduction <add>, %138, %cst_61 [0] : vector<4x8x8xf32> to vector<8x8xf32>
    %140 = vector.shape_cast %139 : vector<8x8xf32> to vector<1x8x8xf32>
    %cst_62 = arith.constant 1.000000e+00 : f32
    %141 = vector.broadcast %cst_62 : f32 to vector<1x8x8xf32>
    %142 = arith.divf %141, %140 : vector<1x8x8xf32>
    %143 = vector.broadcast %142 : vector<1x8x8xf32> to vector<4x8x8xf32>
    %144 = arith.mulf %138, %143 : vector<4x8x8xf32>
    "tpu.trace_start"() <{level = 10 : i32, message = "hqk,hkd->hqd"}> : () -> ()
    %cst_63 = arith.constant dense<0.000000e+00> : vector<4x8x32xf32>
    %145 = tpu.matmul %144, %130, %cst_63 {dimension_numbers = #tpu.dot_dimension_numbers<[2], [1], [1], [2], [0, 0, 0, 1, 1, 2], [0], [0]>} : vector<4x8x8xf32>, vector<4x8x32xf32>, vector<4x8x32xf32> -> vector<4x8x32xf32>
    "tpu.trace_stop"() : () -> ()
    %146 = tpu.transpose %145, [1, 0, 2] : vector<4x8x32xf32> -> vector<8x4x32xf32>
    %147 = vector.shape_cast %146 : vector<8x4x32xf32> to vector<8x128xf32>
    %cst_64 = arith.constant dense<0.000000e+00> : vector<8x128xf32>
    %148 = tpu.matmul %147, %5, %cst_64 {dimension_numbers = #tpu.dot_dimension_numbers<[1], [0], [0], [1], [0, 0, 1, 1], [], []>} : vector<8x128xf32>, vector<128x128xf32>, vector<8x128xf32> -> vector<8x128xf32>
    %149 = arith.addf %100, %148 : vector<8x128xf32>
    %150 = vector.broadcast %6 : vector<1x128xf32> to vector<8x128xf32>
    %151 = arith.addf %149, %150 : vector<8x128xf32>
    %cst_65 = arith.constant dense<0.000000e+00> : vector<8xf32>
    %152 = vector.multi_reduction <add>, %151, %cst_65 [1] : vector<8x128xf32> to vector<8xf32>
    %153 = vector.shape_cast %152 : vector<8xf32> to vector<8x1xf32>
    %cst_66 = arith.constant 1.280000e+02 : f32
    %154 = vector.broadcast %cst_66 : f32 to vector<8x1xf32>
    %155 = arith.divf %153, %154 : vector<8x1xf32>
    %156 = vector.broadcast %155 : vector<8x1xf32> to vector<8x128xf32>
    %157 = arith.subf %151, %156 : vector<8x128xf32>
    %158 = arith.mulf %157, %157 : vector<8x128xf32>
    %cst_67 = arith.constant dense<0.000000e+00> : vector<8xf32>
    %159 = vector.multi_reduction <add>, %158, %cst_67 [1] : vector<8x128xf32> to vector<8xf32>
    %160 = vector.shape_cast %159 : vector<8xf32> to vector<8x1xf32>
    %cst_68 = arith.constant 1.270000e+02 : f32
    %161 = vector.broadcast %cst_68 : f32 to vector<8x1xf32>
    %162 = arith.divf %160, %161 : vector<8x1xf32>
    %163 = math.sqrt %162 : vector<8x1xf32>
    %cst_69 = arith.constant 9.99999997E-7 : f32
    %164 = vector.broadcast %cst_69 : f32 to vector<8x1xf32>
    %165 = arith.addf %163, %164 : vector<8x1xf32>
    %cst_70 = arith.constant 1.000000e+00 : f32
    %166 = vector.broadcast %cst_70 : f32 to vector<8x1xf32>
    %167 = arith.divf %166, %165 : vector<8x1xf32>
    %168 = vector.broadcast %167 : vector<8x1xf32> to vector<8x128xf32>
    %169 = arith.mulf %157, %168 : vector<8x128xf32>
    %170 = vector.broadcast %9 : vector<1x128xf32> to vector<8x128xf32>
    %171 = arith.mulf %170, %169 : vector<8x128xf32>
    %172 = vector.broadcast %10 : vector<1x128xf32> to vector<8x128xf32>
    %173 = arith.addf %171, %172 : vector<8x128xf32>
    %cst_71 = arith.constant dense<0.000000e+00> : vector<8x512xf32>
    %174 = tpu.matmul %173, %11, %cst_71 {dimension_numbers = #tpu.dot_dimension_numbers<[1], [0], [0], [1], [0, 0, 1, 1], [], []>} : vector<8x128xf32>, vector<128x512xf32>, vector<8x512xf32> -> vector<8x512xf32>
    %175 = vector.broadcast %12 : vector<1x512xf32> to vector<8x512xf32>
    %176 = arith.addf %174, %175 : vector<8x512xf32>
    %cst_72 = arith.constant 0.000000e+00 : f32
    %177 = vector.broadcast %cst_72 : f32 to vector<8x512xf32>
    %178 = arith.maximumf %176, %177 : vector<8x512xf32>
    %cst_73 = arith.constant dense<0.000000e+00> : vector<8x128xf32>
    %179 = tpu.matmul %178, %13, %cst_73 {dimension_numbers = #tpu.dot_dimension_numbers<[1], [0], [0], [1], [0, 0, 1, 1], [], []>} : vector<8x512xf32>, vector<512x128xf32>, vector<8x128xf32> -> vector<8x128xf32>
    %180 = vector.broadcast %14 : vector<1x128xf32> to vector<8x128xf32>
    %181 = arith.addf %179, %180 : vector<8x128xf32>
    %cst_74 = arith.constant 0.000000e+00 : f32
    %182 = vector.broadcast %cst_74 : f32 to vector<8x128xf32>
    %183 = arith.maximumf %181, %182 : vector<8x128xf32>
    %184 = arith.addf %151, %183 : vector<8x128xf32>
    %c0_75 = arith.constant 0 : index
    %c0_76 = arith.constant 0 : index
    %c0_77 = arith.constant 0 : index
    %185 = vector.load %arg15[%c0_75, %c0_76, %c0_77] : memref<1x8x128xf32, #tpu.memory_space<vmem>>, vector<1x8x128xf32>
    %186 = vector.shape_cast %185 : vector<1x8x128xf32> to vector<8x128xf32>
    %187 = vector.shape_cast %184 : vector<8x128xf32> to vector<1x8x128xf32>
    tpu.vector_store %arg15[%c0_75, %c0_76, %c0_77], %187 {strides = array<i32>} : memref<1x8x128xf32, #tpu.memory_space<vmem>>, vector<1x8x128xf32>,
    return
  }
  func.func @transform_0(%arg0: i32) -> (i32, i32) {
    %c0_i32 = arith.constant 0 : i32
    %c0_i32_0 = arith.constant 0 : i32
    %c0_i32_1 = arith.constant 0 : i32
    return %c0_i32, %c0_i32_0 : i32, i32
  }
  func.func @transform_1(%arg0: i32) -> (i32, i32) {
    %c0_i32 = arith.constant 0 : i32
    %c0_i32_0 = arith.constant 0 : i32
    %c0_i32_1 = arith.constant 0 : i32
    return %c0_i32, %c0_i32_0 : i32, i32
  }
  func.func @transform_2(%arg0: i32) -> (i32, i32) {
    %c0_i32 = arith.constant 0 : i32
    %c0_i32_0 = arith.constant 0 : i32
    %c0_i32_1 = arith.constant 0 : i32
    return %c0_i32, %c0_i32_0 : i32, i32
  }
  func.func @transform_3(%arg0: i32) -> (i32, i32) {
    %c0_i32 = arith.constant 0 : i32
    %c0_i32_0 = arith.constant 0 : i32
    %c0_i32_1 = arith.constant 0 : i32
    return %c0_i32, %c0_i32_0 : i32, i32
  }
  func.func @transform_4(%arg0: i32) -> (i32, i32) {
    %c0_i32 = arith.constant 0 : i32
    %c0_i32_0 = arith.constant 0 : i32
    %c0_i32_1 = arith.constant 0 : i32
    return %c0_i32, %c0_i32_0 : i32, i32
  }
  func.func @transform_5(%arg0: i32) -> (i32, i32) {
    %c0_i32 = arith.constant 0 : i32
    %c0_i32_0 = arith.constant 0 : i32
    %c0_i32_1 = arith.constant 0 : i32
    return %c0_i32, %c0_i32_0 : i32, i32
  }
  func.func @transform_6(%arg0: i32) -> (i32, i32) {
    %c0_i32 = arith.constant 0 : i32
    %c0_i32_0 = arith.constant 0 : i32
    %c0_i32_1 = arith.constant 0 : i32
    return %c0_i32, %c0_i32_0 : i32, i32
  }
  func.func @transform_7(%arg0: i32) -> (i32, i32) {
    %c0_i32 = arith.constant 0 : i32
    %c0_i32_0 = arith.constant 0 : i32
    %c0_i32_1 = arith.constant 0 : i32
    return %c0_i32, %c0_i32_0 : i32, i32
  }
  func.func @transform_8(%arg0: i32) -> (i32, i32) {
    %c0_i32 = arith.constant 0 : i32
    %c0_i32_0 = arith.constant 0 : i32
    %c0_i32_1 = arith.constant 0 : i32
    return %c0_i32, %c0_i32_0 : i32, i32
  }
  func.func @transform_9(%arg0: i32) -> (i32, i32) {
    %c0_i32 = arith.constant 0 : i32
    %c0_i32_0 = arith.constant 0 : i32
    %c0_i32_1 = arith.constant 0 : i32
    return %c0_i32, %c0_i32_0 : i32, i32
  }
  func.func @transform_10(%arg0: i32) -> (i32, i32) {
    %c0_i32 = arith.constant 0 : i32
    %c0_i32_0 = arith.constant 0 : i32
    %c0_i32_1 = arith.constant 0 : i32
    return %c0_i32, %c0_i32_0 : i32, i32
  }
  func.func @transform_11(%arg0: i32) -> (i32, i32) {
    %c0_i32 = arith.constant 0 : i32
    %c0_i32_0 = arith.constant 0 : i32
    %c0_i32_1 = arith.constant 0 : i32
    return %c0_i32, %c0_i32_0 : i32, i32
  }
  func.func @transform_12(%arg0: i32) -> (i32, i32) {
    %c0_i32 = arith.constant 0 : i32
    %c0_i32_0 = arith.constant 0 : i32
    %c0_i32_1 = arith.constant 0 : i32
    return %c0_i32, %c0_i32_0 : i32, i32
  }
  func.func @transform_13(%arg0: i32) -> (i32, i32, i32) {
    %c0_i32 = arith.constant 0 : i32
    %c0_i32_0 = arith.constant 0 : i32
    %c0_i32_1 = arith.constant 0 : i32
    return %arg0, %c0_i32, %c0_i32_0 : i32, i32, i32
  }
  func.func @transform_14(%arg0: i32) -> (i32, i32, i32) {
    %c0_i32 = arith.constant 0 : i32
    %c0_i32_0 = arith.constant 0 : i32
    %c0_i32_1 = arith.constant 0 : i32
    return %arg0, %c0_i32, %c0_i32_0 : i32, i32, i32
  }
}

</mosaic_0001>

<bundles_post_ra>
// kernel: tpu_custom_call.1
= control target key start
LH: loop header
LB: loop body
LE: loop exit
PB: predicated region body
PF: predicated region fallthrough
CT: control target
= control target key end

     0   :  { %s4843_s0 = inlined_call_operand.hbm [shape: f32[8,128], index: 0, kind: input, shape index: {}]   ;;  %s4844_s1 = inlined_call_operand.hbm [shape: f32[128,384], index: 1, kind: input, shape index: {}]   ;;  %s4845_s2 = inlined_call_operand.hbm [shape: f32[1,384], index: 2, kind: input, shape index: {}]   ;;  %s4846_s3 = inlined_call_operand.hbm [shape: f32[128,128], index: 3, kind: input, shape index: {}]   ;;  %s4847_s4 = inlined_call_operand.vmem [shape: f32[1,128], index: 4, kind: input, shape index: {}]   ;;  %s4848_s5 = inlined_call_operand.vmem [shape: f32[1,128], index: 5, kind: input, shape index: {}]   ;;  %s4849_s6 = inlined_call_operand.vmem [shape: f32[1,128], index: 6, kind: input, shape index: {}]   ;;  %s4850_s7 = inlined_call_operand.hbm [shape: f32[1,128], index: 7, kind: input, shape index: {}]   ;;  %s4851_s8 = inlined_call_operand.hbm [shape: f32[1,128], index: 8, kind: input, shape index: {}]   ;;  %s4852_s9 = inlined_call_operand.hbm [shape: f32[128,512], index: 9, kind: input, shape index: {}]   ;;  %s4853_s10 = inlined_call_operand.vmem [shape: f32[1,512], index: 10, kind: input, shape index: {}]   ;;  %s4854_s11 = inlined_call_operand.hbm [shape: f32[512,128], index: 11, kind: input, shape index: {}]   ;;  %s4855_s12 = inlined_call_operand.vmem [shape: f32[1,128], index: 12, kind: input, shape index: {}]   ;;  %s4856_s13 = inlined_call_operand.hbm [shape: f32[2,8,128], index: 13, kind: input, shape index: {}]   ;;  %s4857_s14 = inlined_call_operand.hbm [shape: f32[2,8,128], index: 14, kind: output, shape index: {}]  }
   0x1   :  { %4861 = sst [smem:[#allocation25_spill]] %s4843_s0 }
   0x2   :  { %4862 = sst [smem:[#allocation26_spill]] %s4844_s1 }
   0x3   :  { %4863 = sst [smem:[#allocation27_spill]] %s4845_s2 }
   0x4   :  { %4864 = sst [smem:[#allocation28_spill]] %s4846_s3 }
   0x5   :  { %4865 = sst [smem:[#allocation29_spill]] %s4847_s4 }
   0x6   :  { %4866 = sst [smem:[#allocation30_spill]] %s4850_s7 }
   0x7   :  { %4867 = sst [smem:[#allocation31_spill]] %s4853_s10 }
   0x8   :  { %4868 = sst [smem:[#allocation32_spill]] %s4855_s12 }
   0x9   :  { %4869 = sst [smem:[#allocation33_spill]] %s4857_s14 }
   0xa   :  { %19 = vsyncpa [#allocation3], 0 }
   0xb   :  { %20 = vsyncpa [#allocation6], 0 }
   0xc   :  { %21 = vsyncpa [#allocation9], 0 }
   0xd   :  { %22 = vsyncpa [#allocation12], 0 }
   0xe   :  { %23 = vsyncpa [#allocation15], 0 }
   0xf   :  { %24 = vsyncpa [#allocation4], 0 }
  0x10   :  { %26 = vsyncpa [#allocation4 + $0x1], 0  ;;  %s4038_s29 = smov 0   ;;  %s4040_s30 = smov 0  }
  0x11   :  { %s4042_s15 = smov 0   ;;  %s4044_s16 = smov 0  }
  0x12 LB: > { %s4870_s0 = sld [smem:[#allocation25_spill]]  ;;  %s4062_s20 = sadd.s32 4294967295, %s3940_s16   ;;  %s3940_s16 = sphi %s4044_s16, %s4890_s16   ;;  %s3936_s15 = sphi %s4042_s15, %s4889_s15   ;;  %s3932_s30 = sphi %s4040_s30, %s4888_s30   ;;  %s3928_s29 = sphi %s4038_s29, %s4887_s29  }
  0x13   : > { %p3148_p0 = scmp.ge.s32.totalorder %s3940_s16, 1  ;;  %p326_p1 = scmp.eq.s32.totalorder %s4062_s20, 0 }
  0x14   : > { %p362_p2 = scmp.lt.s32.totalorder %s3940_s16, 3  ;;  %s3942_s22 = smov [#allocation2]  }
  0x15   : > { %s376_s23 = sshll.u32 %s3942_s22, 4  ;;  %s4872_s1 = sld [smem:[#allocation26_spill]]  ;;  %s377_s23 = int_to_ptr.vmem [resolvable:$true] %s376_s23 }
  0x16   : > { %p4067_p3 = pnand %p3148_p0, %p362_p2  ;;  %s3943_s28 = smov [#allocation5]  }
  0x17   : > { %s387_s17 = sshll.u32 %s3943_s28, 4  ;;  %s3944_s18 = smov 384   ;;  %s388_s17 = int_to_ptr.vmem [resolvable:$true] %s387_s17 }
  0x18   : > { %s374_s19 = sshll.u32 %s4870_s0, 4  ;;  %p3235_p5 = pneg %p4067_p3  ;;  %s375_s19 = int_to_ptr.hbm [resolvable:$true] %s374_s19 }
  0x19   : > { %s3945_s22 = smov 24   ;;  %s4874_s3 = sld [smem:[#allocation28_spill]] }
  0x1a   : > { %p4079_p6 = pnand %p3235_p5, %p326_p1  ;;  %s447_s28 = sshll.u32 %s4851_s8, 4  ;;  %s448_s28 = int_to_ptr.hbm [resolvable:$true] %s447_s28 }
  0x1b   : > { %s385_s26 = sshll.u32 %s4872_s1, 4  ;;  %s3946_s1 = smov [#allocation8]   ;;  %s386_s26 = int_to_ptr.hbm [resolvable:$true] %s385_s26 }
  0x1c   : > { %3238 = dma.hbm_to_vmem [thread:$0]  (!%p4079_p6), %s375_s19, 128, %s377_s23, [#allocation3]  }
  0x1d   : > { %3241 = dma.hbm_to_vmem [thread:$0]  (!%p4079_p6), %s386_s26, 6144, %s388_s17, [#allocation6], %s3944_s18, %s3944_s18, %s3945_s22  }
  0x1e   : > { %s413_s14 = sshll.u32 %s3946_s1, 4  ;;  %s3947_s4 = smov 128   ;;  %s414_s14 = int_to_ptr.vmem [resolvable:$true] %s413_s14 }
  0x1f   : > { %s411_s0 = sshll.u32 %s4874_s3, 4  ;;  %s3948_s19 = smov 8   ;;  %s412_s0 = int_to_ptr.hbm [resolvable:$true] %s411_s0 }
  0x20   : > { %3247 = dma.hbm_to_vmem [thread:$0]  (!%p4079_p6), %s412_s0, 2048, %s414_s14, [#allocation9], %s3947_s4, %s3947_s4, %s3948_s19  }
  0x21   : > { %s3949_s23 = smov [#allocation11]   ;;  %s4875_s2 = sld [smem:[#allocation27_spill]] }
  0x22   : > { %s449_s26 = sshll.u32 %s3949_s23, 4  ;;  %s4876_s7 = sld [smem:[#allocation30_spill]]  ;;  %s450_s26 = int_to_ptr.vmem [resolvable:$true] %s449_s26 }
  0x23   : > { %3253 = dma.hbm_to_vmem [thread:$0]  (!%p4079_p6), %s448_s28, 16, %s450_s26, [#allocation12]  }
  0x24   : > { %s3950_s24 = smov [#allocation7]   ;;  %s3951_s0 = smov [#allocation10]  }
  0x25   : > { %s402_s25 = sshll.u32 %s3950_s24, 4  ;;  %s437_s14 = sshll.u32 %s3951_s0, 4  ;;  %s403_s25 = int_to_ptr.vmem [resolvable:$true] %s402_s25  ;;  %s438_s14 = int_to_ptr.vmem [resolvable:$true] %s437_s14 }
  0x26   : > { %s458_s18 = sshll.u32 %s4852_s9, 4  ;;  %s3952_s28 = smov [#allocation13]   ;;  %s459_s18 = int_to_ptr.hbm [resolvable:$true] %s458_s18 }
  0x27   : > { %s400_s1 = sshll.u32 %s4875_s2, 4  ;;  %s460_s26 = sshll.u32 %s3952_s28, 4  ;;  %s401_s1 = int_to_ptr.hbm [resolvable:$true] %s400_s1  ;;  %s461_s26 = int_to_ptr.vmem [resolvable:$true] %s460_s26 }
  0x28   : > { %s435_s22 = sshll.u32 %s4876_s7, 4  ;;  %s475_s12 = sshll.u32 %s4854_s11, 4  ;;  %s436_s22 = int_to_ptr.hbm [resolvable:$true] %s435_s22  ;;  %s476_s12 = int_to_ptr.hbm [resolvable:$true] %s475_s12 }
  0x29   : > { %3244 = dma.hbm_to_vmem [thread:$0]  (!%p4079_p6), %s401_s1, 48, %s403_s25, [#allocation6]  }
  0x2a   : > { %3250 = dma.hbm_to_vmem [thread:$0]  (!%p4079_p6), %s436_s22, 16, %s438_s14, [#allocation9]  }
  0x2b   : > { %s3953_s24 = smov 512   ;;  %s3954_s25 = smov 32  }
  0x2c   : > { %3256 = dma.hbm_to_vmem [thread:$0]  (!%p4079_p6), %s459_s18, 8192, %s461_s26, [#allocation12], %s3953_s24, %s3953_s24, %s3954_s25  }
  0x2d   : > { %s3955_s22 = smov [#allocation14]   ;;  %s3147_s14 = sadd.s32 4294967294, %s3940_s16  }
  0x2e   : > { %s477_s0 = sshll.u32 %s3955_s22, 4  ;;  %s4125_s23 = sadd.s32 1, %s3940_s16   ;;  %s478_s0 = int_to_ptr.vmem [resolvable:$true] %s477_s0 }
  0x2f   : > { %3259 = dma.hbm_to_vmem [thread:$0]  (!%p4079_p6), %s476_s12, 8192, %s478_s0, [#allocation15], %s3947_s4, %s3947_s4, %s3948_s19  }
  0x30   : > { %s309_s17 = ssub.s32 %s3940_s16, %s4125_s23  ;;  %s312_s28 = sadd.s32 1, %s3936_s15 }
  0x31   : > { %p310_p7 = scmp.eq.s32.totalorder %s309_s17, 0  ;;  %p319_p8 = scmp.ne.s32.totalorder %s3936_s15, %s3932_s30 }
  0x32   : > { %p320_p9 = scmp.eq.s32.totalorder %s3940_s16, 0  ;;  %p325_p10 = scmp.ne.s32.totalorder %s3932_s30, %s3928_s29 }
  0x33   : > { %s4136_s18 = scalar_select %p310_p7, %s3936_s15, %s312_s28  }
  0x34   : > { %p4140_p11 = por %p326_p1, %p325_p10  ;;  %p349_p12 = scmp.eq.s32.totalorder %s4062_s20, 1 }
  0x35   : > { %p355_p13 = scmp.eq.s32.totalorder %s3147_s14, 1  ;;  %p4145_p0 = por %p320_p9, %p319_p8 }
  0x36   : > { %p3276_p2 = scmp.lt.s32.totalorder %s3940_s16, 2  ;;  %p4150_p5 = por %p349_p12, %p319_p8 }
  0x37   : > { %p4154_p6 = por %p355_p13, %p325_p10  ;;  %s494_s1 = sand.u32 1, %s3940_s16  }
  0x38   : > { %s496_s10 = sand.u32 1, %s3936_s15   ;;  %s3159_s24 = sshll.u32 %s3940_s16, 3 }
  0x39   : > { %s3158_s12 = sshll.u32 %s496_s10, 3  ;;  %s502_s0 = scalar_lea.hbm %s4856_s13, %s3159_s24 }
  0x3a   : > { %s504_s14 = sshll.u32 %s502_s0, 4  ;;  %s498_s17 = scalar_lea.vmem [#allocation16], %s3158_s12  ;;  %s505_s14 = int_to_ptr.hbm [resolvable:$true] %s504_s14 }
  0x3b   : > { %s506_s28 = sshll.u32 %s498_s17, 4  ;;  %p4168_p7 = pnand %p3276_p2, %p4145_p0  ;;  %s507_s28 = int_to_ptr.vmem [resolvable:$true] %s506_s28 }
  0x3c   : > { %s495_s3 = scalar_lea.sflag [#allocation3], %s494_s1  ;;  %s3824_s7 = sshra.s32 %s505_s14, 4  ;;  %s3825_s7 = int_to_ptr.hbm [resolvable:$true] %s3824_s7 }
  0x3d   : > { %s3826_s10 = scalar_lea.hbm %s3825_s7, 8  ;;  %p3828_p9 = pneg %p4168_p7 }
  0x3e   : > { %p3827_p8 = scmp.ne.s32.totalorder %s3825_s7, %s3826_s10  ;;  %s3831_s25 = scalar_lea.hbm %s4856_s13, 16 }
  0x3f   : > { %p3832_p13 = scmp.lt.s32.totalorder %s3825_s7, %s4856_s13  ;;  %p3833_p0 = scmp.lt.s32.totalorder %s3831_s25, %s3826_s10 }
  0x40   : > { %p3829_p10 = pnand %p3828_p9, %p3827_p8 }
  0x41   : > { %p3834_p2 = por %p3833_p0, %p3832_p13 }
  0x42   : > { %p3830_p12 = pneg %p3829_p10 }
  0x44   : > { %p3835_p4 = pnand %p3834_p2, %p3830_p12 }
  0x46   : > { %3838 = shalt.err (!%p3835_p4)
}
  0x47   : > { %3263 = dma.hbm_to_vmem [thread:$0]  (!%p4168_p7), %s505_s14, 128, %s507_s28, %s495_s3  }
  0x48   : > { %515 = sbr.rel (%p4067_p3) target bundleno = 3556 (0xde4), region = 76 }
  0x4d   : > { %3899 = dma.done.wait (%p326_p1), [#allocation3], 128  }
  0x4e   : > { %3901 = vsyncadd (%p326_p1), [#allocation3], 4294967168 }
  0x4f   : > { %3903 = dma.done.wait (%p326_p1), [#allocation6], 6192  }
  0x50   : > { %3905 = vsyncadd (%p326_p1), [#allocation6], 4294961104 }
  0x51   : > { %3907 = dma.done.wait (%p326_p1), [#allocation9], 2064  }
  0x52   : > { %3909 = vsyncadd (%p326_p1), [#allocation9], 4294965232 }
  0x53   : > { %3911 = dma.done.wait (%p326_p1), [#allocation12], 8208  }
  0x54   : > { %3913 = vsyncadd (%p326_p1), [#allocation12], 4294959088 }
  0x55   : > { %3915 = dma.done.wait (%p326_p1), [#allocation15], 8192  }
  0x56   : > { %3917 = vsyncadd (%p326_p1), [#allocation15], 4294959104  ;;  %s557_s2 = sand.u32 1, %s4062_s20   ;;  %s559_s3 = sand.u32 1, %s3932_s30  }
  0x57   : > { %s4208_s7 = sshll.u32 %s559_s3, 3  ;;  %s558_s21 = scalar_lea.sflag [#allocation3], %s557_s2 }
  0x58   : > { %s561_s1 = scalar_lea.vmem [#allocation16], %s4208_s7 }
  0x59   : > { %3919 = dma.done.wait (%p4140_p11), %s558_s21, 128  }
  0x5a   : > { %3921 = vsyncadd (%p4140_p11), %s558_s21, 4294967168  ;;  %v607_v0 = vld [vmem:[%s561_s1] sm:$0xff]  ;;  %v608_v1 = vld [vmem:[#allocation2] sm:$0xff]  ;;  %v3956_v3 = vmov 128.0   ;;  %v3957_v14 = vmov 127.0   ;;  %s3958_s28 = smov 64  }
  0x5b   : > { %v4215_v2 = vadd.f32 %v608_v1, %v607_v0  ;;  %3345 = vrcp.f32 %v3956_v3  ;;  %v654_v17 = vld [vmem:[#allocation5 + $0x168] sm:$0xff]  ;;  %v655_v18 = vld [vmem:[#allocation5 + $0x170] sm:$0xff]  ;;  %v656_v19 = vld [vmem:[#allocation5 + $0x178] sm:$0xff]  ;;  %s3959_s10 = smov 96   ;;  %s3960_s12 = smov 32   ;;  %vm967_vm8 = vcmask 1047556  }
  0x5c   : > { %3347 = vrcp.f32 %v3957_v14  ;;  %876 = vmatpush.msra.mxu0 %v654_v17  ;;  %896 = vmatpush.msra.mxu1 %v655_v18  ;;  %v651_v21 = vld [vmem:[#allocation5 + $0x150] sm:$0xff]  ;;  %v652_v22 = vld [vmem:[#allocation5 + $0x158] sm:$0xff]  ;;  %v653_v23 = vld [vmem:[#allocation5 + $0x160] sm:$0xff]  ;;  %vm1301_vm9 = vcmask 261120   ;;  %vm1410_vm10 = vcmask 64512   ;;  %vm1671_vm15 = vcmask 523264  }
  0x5d   : > { %810 = vadd.xlane.f32.xlu0 %v4215_v2  ;;  %916 = vmatpush.msra.mxu2 %v656_v19  ;;  %v648_v24 = vld [vmem:[#allocation5 + $0x138] sm:$0xff]  ;;  %v649_v25 = vld [vmem:[#allocation5 + $0x140] sm:$0xff]  ;;  %v650_v26 = vld [vmem:[#allocation5 + $0x148] sm:$0xff]  ;;  %s4882_s4 = sld [smem:[#allocation29_spill]]  ;;  %s3196_s2 = sshll.u32 %s4062_s20, 3 }
  0x5e   : > { %877 = vmatpush.msra.mxu0 %v651_v21  ;;  %897 = vmatpush.msra.mxu1 %v652_v22  ;;  %v645_v28 = vld [vmem:[#allocation5 + $0x120] sm:$0xff]  ;;  %v646_v29 = vld [vmem:[#allocation5 + $0x128] sm:$0xff]  ;;  %v647_v30 = vld [vmem:[#allocation5 + $0x130] sm:$0xff]  ;;  %s4883_s21 = sld [smem:[#allocation31_spill]]  ;;  %s606_s17 = scalar_lea.vmem [#allocation17], %s4208_s7 }
  0x5f   : > { %917 = vmatpush.msra.mxu2 %v653_v23  ;;  %v642_v31 = vld [vmem:[#allocation5 + $0x108] sm:$0xff]  ;;  %v643_v32 = vld [vmem:[#allocation5 + $0x110] sm:$0xff]  ;;  %v644_v33 = vld [vmem:[#allocation5 + $0x118] sm:$0xff]  ;;  %s4884_s0 = sld [smem:[#allocation32_spill]]  ;;  %s2998_s24 = sshll.u32 %s606_s17, 4  ;;  %s2999_s24 = int_to_ptr.vmem [resolvable:$true] %s2998_s24 }
  0x60   : > { %878 = vmatpush.msra.mxu0 %v648_v24  ;;  %898 = vmatpush.msra.mxu1 %v649_v25  ;;  %v639_v34 = vld [vmem:[#allocation5 + $0xf0] sm:$0xff]  ;;  %v640_v35 = vld [vmem:[#allocation5 + $0xf8] sm:$0xff]  ;;  %v641_v37 = vld [vmem:[#allocation5 + $0x100] sm:$0xff]  ;;  %s4885_s27 = sld [smem:[#allocation33_spill]]  ;;  %s2986_s20 = scalar_lea.sflag [#allocation4], %s559_s3 }
  0x61   : > { %v3346_v4 = vpop.eup %3345  ;;  %918 = vmatpush.msra.mxu2 %v650_v26  ;;  %v636_v38 = vld [vmem:[#allocation5 + $0xd8] sm:$0xff]  ;;  %v637_v39 = vld [vmem:[#allocation5 + $0xe0] sm:$0xff]  ;;  %v638_v40 = vld [vmem:[#allocation5 + $0xe8] sm:$0xff] }
  0x62   : > { %v813_v5 = vmul.f32 128.0, %v3346_v4  ;;  %vm817_vm0 = vweird.f32 %v3346_v4  ;;  %v3348_v15 = vpop.eup %3347  ;;  %879 = vmatpush.msra.mxu0 %v645_v28  ;;  %899 = vmatpush.msra.mxu1 %v646_v29  ;;  %v633_v41 = vld [vmem:[#allocation5 + $0xc0] sm:$0xff]  ;;  %v634_v42 = vld [vmem:[#allocation5 + $0xc8] sm:$0xff]  ;;  %v635_v44 = vld [vmem:[#allocation5 + $0xd0] sm:$0xff] }
  0x63   : > { %v825_v16 = vmul.f32 127.0, %v3348_v15  ;;  %919 = vmatpush.msra.mxu2 %v647_v30  ;;  %vm829_vm1 = vweird.f32 %v3348_v15  ;;  %v630_v45 = vld [vmem:[#allocation5 + $0xa8] sm:$0xff]  ;;  %v631_v46 = vld [vmem:[#allocation5 + $0xb0] sm:$0xff]  ;;  %v632_v48 = vld [vmem:[#allocation5 + $0xb8] sm:$0xff] }
  0x64   : > { %v814_v6 = vsub.f32 1.0, %v813_v5  ;;  %880 = vmatpush.msra.mxu0 %v642_v31  ;;  %900 = vmatpush.msra.mxu1 %v643_v32  ;;  %v627_v50 = vld [vmem:[#allocation5 + $0x90] sm:$0xff]  ;;  %v628_v51 = vld [vmem:[#allocation5 + $0x98] sm:$0xff]  ;;  %v629_v52 = vld [vmem:[#allocation5 + $0xa0] sm:$0xff] }
  0x65   : > { %v826_v20 = vsub.f32 1.0, %v825_v16  ;;  %920 = vmatpush.msra.mxu2 %v644_v33  ;;  %v624_v53 = vld [vmem:[#allocation5 + $0x78] sm:$0xff]  ;;  %v625_v54 = vld [vmem:[#allocation5 + $0x80] sm:$0xff]  ;;  %v626_v55 = vld [vmem:[#allocation5 + $0x88] sm:$0xff] }
  0x66   : > { %v815_v7 = vmul.f32 %v3346_v4, %v814_v6  ;;  %881 = vmatpush.msra.mxu0 %v639_v34  ;;  %901 = vmatpush.msra.mxu1 %v640_v35  ;;  %v621_v56 = vld [vmem:[#allocation5 + $0x60] sm:$0xff]  ;;  %v622_v57 = vld [vmem:[#allocation5 + $0x68] sm:$0xff]  ;;  %v623_v58 = vld [vmem:[#allocation5 + $0x70] sm:$0xff]  ;;  %s2996_s14 = scalar_lea.hbm %s4885_s27, %s3196_s2  ;;  %s3874_s7 = scalar_lea.hbm %s4885_s27, 16 }
  0x67   : > { %v827_v27 = vmul.f32 %v3348_v15, %v826_v20  ;;  %921 = vmatpush.msra.mxu2 %v641_v37  ;;  %v618_v59 = vld [vmem:[#allocation5 + $0x48] sm:$0xff]  ;;  %v619_v60 = vld [vmem:[#allocation5 + $0x50] sm:$0xff]  ;;  %v620_v61 = vld [vmem:[#allocation5 + $0x58] sm:$0xff]  ;;  %s3000_s25 = sshll.u32 %s2996_s14, 4  ;;  %s3001_s25 = int_to_ptr.hbm [resolvable:$true] %s3000_s25 }
  0x68   : > { %v816_v8 = vadd.f32 %v3346_v4, %v815_v7  ;;  %882 = vmatpush.msra.mxu0 %v636_v38  ;;  %902 = vmatpush.msra.mxu1 %v637_v39  ;;  %v615_v63 = vld [vmem:[#allocation5 + $0x30] sm:$0xff]  ;;  %v616_v0 = vld [vmem:[#allocation5 + $0x38] sm:$0xff]  ;;  %v617_v3 = vld [vmem:[#allocation5 + $0x40] sm:$0xff] }
  0x69   : > { %v828_v36 = vadd.f32 %v3348_v15, %v827_v27  ;;  %922 = vmatpush.msra.mxu2 %v638_v40  ;;  %v613_v5 = vld [vmem:[#allocation5 + $0x20] sm:$0xff]  ;;  %v614_v7 = vld [vmem:[#allocation5 + $0x28] sm:$0xff]  ;;  %v3339_v30 = vld [vmem:[%s4848_s5] ss:$0 sm:$0xff] }
  0x6a   : > { %v4218_v9 = vsel %vm817_vm0, %v3346_v4, %v816_v8  ;;  %883 = vmatpush.msra.mxu0 %v633_v41  ;;  %903 = vmatpush.msra.mxu1 %v634_v42  ;;  %v612_v4 = vld [vmem:[#allocation5 + $0x18] sm:$0xff]  ;;  %v609_v8 = vld [vmem:[#allocation5] sm:$0xff]  ;;  %vm1673_vm0 = vcmask 785408  }
  0x6b   : > { %v4226_v43 = vsel %vm829_vm1, %v3348_v15, %v828_v36  ;;  %923 = vmatpush.msra.mxu2 %v635_v44  ;;  %v3340_v33 = vld [vmem:[%s4849_s6] ss:$0 sm:$0xff]  ;;  %v4236_v36 = vld [vmem:[#allocation7] sm:$0x7] }
  0x6c   : > { %884 = vmatpush.msra.mxu0 %v630_v45  ;;  %904 = vmatpush.msra.mxu1 %v631_v46  ;;  %v870_v37 = vperm.slane %v4236_v36, 0  ;;  %v871_v38 = vperm.slane %v4236_v36, 1  ;;  %v872_v42 = vperm.slane %v4236_v36, 2 }
  0x6d   : > { %924 = vmatpush.msra.mxu2 %v632_v48 }
  0x6e   : > { %885 = vmatpush.msra.mxu0 %v627_v50  ;;  %905 = vmatpush.msra.mxu1 %v628_v51  ;;  %v3961_v51 = vmov 1983009808  }
  0x6f   : > { %925 = vmatpush.msra.mxu2 %v629_v52  ;;  %v972_v52 = vunpack.c.l.s4 %v3961_v51 }
  0x70   : > { %886 = vmatpush.msra.mxu0 %v624_v53  ;;  %906 = vmatpush.msra.mxu1 %v625_v54 }
  0x71   : > { %926 = vmatpush.msra.mxu2 %v626_v55 }
  0x72   : > { %887 = vmatpush.msra.mxu0 %v621_v56  ;;  %907 = vmatpush.msra.mxu1 %v622_v57  ;;  %v4267_v56 = vunpack.c.0.s8 %v972_v52 }
  0x73   : > { %927 = vmatpush.msra.mxu2 %v623_v58 }
  0x74   : > { %888 = vmatpush.msra.mxu0 %v618_v59  ;;  %908 = vmatpush.msra.mxu1 %v619_v60 }
  0x75   : > { %928 = vmatpush.msra.mxu2 %v620_v61 }
  0x76   : > { %889 = vmatpush.msra.mxu0 %v615_v63  ;;  %909 = vmatpush.msra.mxu1 %v616_v0  ;;  %v3962_v0 = vmov 1934713408  }
  0x77   : > { %929 = vmatpush.msra.mxu2 %v617_v3 }
  0x78   : > { %890 = vmatpush.msra.mxu0 %v612_v4  ;;  %910 = vmatpush.msra.mxu1 %v613_v5 }
  0x79   : > { %930 = vmatpush.msra.mxu2 %v614_v7 }
  0x7a   : > { %891 = vmatpush.msra.mxu0 %v609_v8 }
  0xd0   : > { %v811_v10 = vpop.xlane.xlu0 %810 }
  0xd1   : > { %v819_v11 = vmul.f32 %v4218_v9, %v811_v10  ;;  %v610_v10 = vld [vmem:[#allocation5 + $0x8] sm:$0xff] }
  0xd2   : > { %911 = vmatpush.msra.mxu1 %v610_v10 }
  0xd3   : > { %v4222_v12 = vsub.f32 %v4215_v2, %v819_v11 }
  0xd5   : > { %v821_v13 = vmul.f32 %v4222_v12, %v4222_v12 }
  0xd7   : > { %822 = vadd.xlane.f32.xlu0 %v821_v13  ;;  %v611_v13 = vld [vmem:[#allocation5 + $0x10] sm:$0xff] }
  0xd8   : > { %931 = vmatpush.msra.mxu2 %v611_v13 }
 0x14a   : > { %v823_v47 = vpop.xlane.xlu0 %822 }
 0x14b   : > { %v831_v49 = vmul.f32 %v4226_v43, %v823_v47 }
 0x14d   : > { %3349 = vrsqrt.f32 %v831_v49  ;;  %vm839_vm2 = vcmp.eq.f32.partialorder %v831_v49, inf  ;;  %v842_v17 = vand.u32 2147483648, %v831_v49  ;;  %vm841_vm3 = vcmp.eq.f32.partialorder %v831_v49, 0.0 }
 0x153   : > { %v3350_v62 = vpop.eup %3349 }
 0x154   : > { %v833_v1 = vmul.f32 %v3350_v62, %v831_v49 }
 0x156   : > { %v834_v6 = vmul.f32 %v3350_v62, %v833_v1  ;;  %v1020_v1 = vunpack.c.l.s4 %v3962_v0 }
 0x158   : > { %v835_v11 = vmul.f32 0.5, %v834_v6 }
 0x15a   : > { %v836_v14 = vsub.f32 1.5, %v835_v11 }
 0x15c   : > { %v837_v15 = vmul.f32 %v3350_v62, %v836_v14 }
 0x15e   : > { %v838_v16 = vmul.f32 %v837_v15, %v831_v49 }
 0x160   : > { %v840_v18 = vsel %vm839_vm2, %v831_v49, %v838_v16 }
 0x161   : > { %v843_v19 = vsel %vm841_vm3, %v842_v17, %v840_v18 }
 0x162   : > { %v844_v20 = vadd.f32 1e-06, %v843_v19  ;;  %v4280_v19 = vunpack.c.0.s8 %v1020_v1 }
 0x164   : > { %3351 = vrcp.f32 %v844_v20  ;;  %v856_v24 = vand.u32 2147483648, %v844_v20  ;;  %v854_v26 = vand.u32 2147483647, %v844_v20  ;;  %vm850_vm5 = vweird.f32 %v844_v20 }
 0x166   : > { %v857_v28 = vor.u32 1.1754944e-38, %v856_v24  ;;  %vm855_vm7 = vcmp.eq.f32.partialorder %v854_v26, 8.507059e+37 }
 0x16a   : > { %v3352_v21 = vpop.eup %3351 }
 0x16b   : > { %v846_v22 = vmul.f32 %v3352_v21, %v844_v20  ;;  %vm851_vm4 = vweird.f32 %v3352_v21 }
 0x16c   : > { %vm852_vm6 = vmor %vm850_vm5, %vm851_vm4 }
 0x16d   : > { %v847_v23 = vsub.f32 1.0, %v846_v22 }
 0x16f   : > { %v848_v25 = vmul.f32 %v3352_v21, %v847_v23 }
 0x171   : > { %v849_v27 = vadd.f32 %v3352_v21, %v848_v25 }
 0x173   : > { %v853_v29 = vsel %vm852_vm6, %v3352_v21, %v849_v27 }
 0x174   : > { %v858_v31 = vsel %vm855_vm7, %v857_v28, %v853_v29 }
 0x175   : > { %v860_v32 = vmul.f32 %v858_v31, %v4222_v12 }
 0x177   : > { %v864_v34 = vmul.f32 %v3339_v30, %v860_v32 }
 0x179   : > { %v868_v35 = vadd.f32 %v3340_v33, %v864_v34 }
 0x17b   : > { %892 = vmatmul.f32.vlgmr.msra.gmra.mxu0 %v868_v35  ;;  %912 = vmatmul.f32.vlgmr.msra.gmra.mxu1 %v868_v35 }
 0x17c   : > { %932 = vmatmul.f32.vlgmr.msra.gmra.mxu2 %v868_v35 }
 0x1f8   : > { %v893_v39 = vpop.f32.mrf.mxu0  ;;  %v913_v40 = vpop.f32.mrf.mxu1 }
 0x1f9   : > { %v4242_v12 = vadd.f32 %v893_v39, %v870_v37  ;;  %v914_v41 = vadd.f32 %v913_v40, %v871_v38 }
 0x1fb   : > { %950 = vrot.lane.b32.xlu0 %v914_v41, %s3958_s28  ;;  %947 = vrot.lane.b32.xlu1 %v914_v41, %s3959_s10  ;;  %v993_v54 = vrot.slane %v914_v41, 4  ;;  %v969_v25 = vrot.slane %v4242_v12, 4 }
 0x1fc   : > { %937 = vrot.lane.b32.xlu2 %v4242_v12, %s3959_s10 }
 0x1ff   : > { %v933_v44 = vpop.f32.mrf.mxu2 }
 0x200   : > { %v4256_v45 = vadd.f32 %v933_v44, %v872_v42 }
 0x203   : > { %953 = vrot.lane.b32.xlu1 %v914_v41, %s3960_s12 }
 0x204   : > { %943 = vrot.lane.b32.xlu2 %v4242_v12, %s3960_s12 }
 0x20b   : > { %940 = vrot.lane.b32.xlu1 %v4242_v12, %s3958_s28 }
 0x20c   : > { %957 = vrot.lane.b32.xlu2 %v4256_v45, %s3959_s10 }
 0x213   : > { %960 = vrot.lane.b32.xlu1 %v4256_v45, %s3958_s28 }
 0x214   : > { %963 = vrot.lane.b32.xlu2 %v4256_v45, %s3960_s12 }
 0x256   : > { %v938_v46 = vpop.permute.xlu2 %937 }
 0x257   : > { %v981_v60 = vrot.slane %v938_v46, 4 }
 0x25e   : > { %v944_v47 = vpop.permute.xlu2 %943 }
 0x25f   : > { %v979_v63 = vrot.slane %v944_v47, 4  ;;  %v982_v5 = vsel %vm967_vm8, %v944_v47, %v981_v60 }
 0x260   : > { %v990_v17 = vperm.slane %v982_v5, %v4267_v56 }
 0x261   : > { %v980_v16 = vsel %vm967_vm8, %v979_v63, %v938_v46 }
 0x262   : > { %v986_v26 = vperm.slane %v980_v16, %v4267_v56  ;;  %v1027_v34 = vrot.slane %v990_v17, 4 }
 0x264   : > { %v1015_v47 = vrot.slane %v986_v26, 4 }
 0x266   : > { %v958_v48 = vpop.permute.xlu2 %957 }
 0x267   : > { %v1093_v10 = vrot.slane %v958_v48, 4 }
 0x26d   : > { %v951_v49 = vpop.permute.xlu0 %950  ;;  %v948_v50 = vpop.permute.xlu1 %947 }
 0x26e   : > { %v991_v53 = vrot.slane %v951_v49, 4  ;;  %v994_v55 = vsel %vm967_vm8, %v951_v49, %v993_v54  ;;  %v1005_v58 = vrot.slane %v948_v50, 4  ;;  %v964_v59 = vpop.permute.xlu2 %963 }
 0x26f   : > { %v1002_v61 = vperm.slane %v994_v55, %v4267_v56  ;;  %v1091_v7 = vrot.slane %v964_v59, 4  ;;  %v1094_v18 = vsel %vm967_vm8, %v964_v59, %v1093_v10 }
 0x270   : > { %v992_v57 = vsel %vm967_vm8, %v991_v53, %v914_v41  ;;  %v4288_v27 = vperm.slane %v1094_v18, %v4267_v56 }
 0x271   : > { %v998_v6 = vperm.slane %v992_v57, %v4267_v56  ;;  %v1053_v13 = vrot.slane %v1002_v61, 4  ;;  %v1092_v21 = vsel %vm967_vm8, %v1091_v7, %v958_v48 }
 0x272   : > { %v4293_v31 = vperm.slane %v1092_v21, %v4267_v56  ;;  %v1115_v48 = vrot.slane %v4288_v27, 4 }
 0x273   : > { %v1041_v20 = vrot.slane %v998_v6, 4 }
 0x274   : > { %v1103_v51 = vrot.slane %v4293_v31, 4 }
 0x275   : > { %v954_v62 = vpop.permute.xlu1 %953 }
 0x276   : > { %v1003_v3 = vrot.slane %v954_v62, 4  ;;  %v1006_v4 = vsel %vm967_vm8, %v954_v62, %v1005_v58 }
 0x277   : > { %v1014_v8 = vperm.slane %v1006_v4, %v4267_v56 }
 0x278   : > { %v1004_v11 = vsel %vm967_vm8, %v1003_v3, %v948_v50  ;;  %v1081_v50 = vrot.slane %v4256_v45, 4 }
 0x279   : > { %v1010_v14 = vperm.slane %v1004_v11, %v4267_v56  ;;  %v1051_v15 = vrot.slane %v1014_v8, 4  ;;  %v1054_v23 = vsel %vm967_vm8, %v1014_v8, %v1053_v13 }
 0x27a   : > { %v1062_v32 = vperm.slane %v1054_v23, %v4280_v19 }
 0x27b   : > { %v1039_v22 = vrot.slane %v1010_v14, 4  ;;  %v1052_v24 = vsel %vm967_vm8, %v1051_v15, %v1002_v61  ;;  %v1042_v29 = vsel %vm967_vm8, %v1010_v14, %v1041_v20 }
 0x27c   : > { %v1058_v35 = vperm.slane %v1052_v24, %v4280_v19  ;;  %v1050_v41 = vperm.slane %v1042_v29, %v4280_v19  ;;  %v1075_v52 = vrot.slane %v1062_v32, 4 }
 0x27d   : > { %v1040_v28 = vsel %vm967_vm8, %v1039_v22, %v998_v6  ;;  %v941_v30 = vpop.permute.xlu1 %940 }
 0x27e   : > { %v966_v33 = vrot.slane %v941_v30, 4  ;;  %v970_v39 = vsel %vm967_vm8, %v941_v30, %v969_v25  ;;  %v1046_v40 = vperm.slane %v1040_v28, %v4280_v19  ;;  %v1071_v55 = vrot.slane %v1058_v35, 4 }
 0x27f   : > { %v978_v46 = vperm.slane %v970_v39, %v4267_v56  ;;  %v1067_v60 = vrot.slane %v1050_v41, 4 }
 0x280   : > { %v968_v44 = vsel %vm967_vm8, %v966_v33, %v4242_v12  ;;  %v1063_v59 = vrot.slane %v1046_v40, 4 }
 0x281   : > { %v974_v49 = vperm.slane %v968_v44, %v4267_v56  ;;  %v1028_v53 = vsel %vm967_vm8, %v1027_v34, %v978_v46  ;;  %v1029_v54 = vrot.slane %v978_v46, 4 }
 0x282   : > { %v1034_v12 = vperm.slane %v1028_v53, %v4280_v19 }
 0x283   : > { %v1016_v57 = vsel %vm967_vm8, %v1015_v47, %v974_v49  ;;  %v1017_v58 = vrot.slane %v974_v49, 4  ;;  %v1030_v62 = vsel %vm967_vm8, %v990_v17, %v1029_v54 }
 0x284   : > { %v1022_v61 = vperm.slane %v1016_v57, %v4280_v19  ;;  %v1038_v0 = vperm.slane %v1030_v62, %v4280_v19  ;;  %v1072_v1 = vsel %vm967_vm8, %v1071_v55, %v1034_v12  ;;  %v1073_v3 = vrot.slane %v1034_v12, 4 }
 0x285   : > { %v1018_v63 = vsel %vm967_vm8, %v986_v26, %v1017_v58  ;;  %v961_v4 = vpop.permute.xlu1 %960  ;;  %v1161_v8 = vrot.slane %v1072_v1, 4 }
 0x286   : > { %v1026_v5 = vperm.slane %v1018_v63, %v4280_v19  ;;  %v1064_v6 = vsel %vm967_vm8, %v1063_v59, %v1022_v61  ;;  %v1065_v7 = vrot.slane %v1022_v61, 4  ;;  %v4318_v10 = vsel %vm967_vm8, %v1058_v35, %v1073_v3 }
 0x287   : > { %v1076_v11 = vsel %vm967_vm8, %v1075_v52, %v1038_v0  ;;  %v1077_v13 = vrot.slane %v1038_v0, 4  ;;  %v1137_v14 = vrot.slane %v1064_v6, 4  ;;  %v1173_v17 = vrot.slane %v4318_v10, 4 }
 0x288   : > { %v1069_v15 = vrot.slane %v1026_v5, 4  ;;  %v1159_v16 = vrot.slane %v1076_v11, 4  ;;  %v1079_v18 = vrot.slane %v961_v4, 4  ;;  %v1082_v21 = vsel %vm967_vm8, %v961_v4, %v1081_v50 }
 0x289   : > { %v4323_v20 = vsel %vm967_vm8, %v1062_v32, %v1077_v13  ;;  %v1066_v22 = vsel %vm967_vm8, %v1046_v40, %v1065_v7  ;;  %v1068_v23 = vsel %vm967_vm8, %v1067_v60, %v1026_v5  ;;  %v1090_v28 = vperm.slane %v1082_v21, %v4267_v56 }
 0x28a   : > { %v1160_v24 = vsel %vm967_vm8, %v1159_v16, %v1072_v1  ;;  %v1171_v25 = vrot.slane %v4323_v20, 4  ;;  %v1080_v26 = vsel %vm967_vm8, %v1079_v18, %v4256_v45  ;;  %v1070_v32 = vsel %vm967_vm8, %v1050_v41, %v1069_v15 }
 0x28b   : > { %v4334_v29 = vperm.slane %v1160_v24, %v4267_v56  ;;  %v1086_v30 = vperm.slane %v1080_v26, %v4267_v56  ;;  %v1135_v33 = vrot.slane %v1068_v23, 4  ;;  %v1116_v34 = vsel %vm967_vm8, %v1115_v48, %v1090_v28 }
 0x28c   : > { %v1117_v35 = vrot.slane %v1090_v28, 4  ;;  %v1138_v39 = vsel %vm967_vm8, %v1068_v23, %v1137_v14  ;;  %v1147_v40 = vrot.slane %v1070_v32, 4  ;;  %v1122_v45 = vperm.slane %v1116_v34, %v4280_v19 }
 0x28d   : > { %v1104_v44 = vsel %vm967_vm8, %v1103_v51, %v1086_v30  ;;  %v1105_v46 = vrot.slane %v1086_v30, 4  ;;  %v1146_v47 = vperm.slane %v1138_v39, %v4267_v56  ;;  %v1149_v50 = vrot.slane %v1066_v22, 4 }
 0x28e   : > { %v4344_v49 = vperm.slane %v1104_v44, %v4280_v19  ;;  %v1118_v41 = vsel %vm967_vm8, %v4288_v27, %v1117_v35  ;;  %v1162_v48 = vsel %vm967_vm8, %v1076_v11, %v1161_v8  ;;  %v1131_v51 = vrot.slane %v1122_v45, 4 }
 0x28f   : > { %v1106_v52 = vsel %vm967_vm8, %v4293_v31, %v1105_v46  ;;  %v1126_v53 = vperm.slane %v1118_v41, %v4280_v19  ;;  %v1170_v54 = vperm.slane %v1162_v48, %v4267_v56  ;;  %v1150_v58 = vsel %vm967_vm8, %v1070_v32, %v1149_v50 }
 0x290   : > { %v1114_v55 = vperm.slane %v1106_v52, %v4280_v19  ;;  %v1127_v57 = vrot.slane %v4344_v49, 4  ;;  %v1174_v27 = vsel %vm967_vm8, %v4323_v20, %v1173_v17  ;;  %v1132_v12 = vsel %vm967_vm8, 0.0, %v1131_v51 }
 0x291   : > { %v1133_v59 = vrot.slane %v1126_v53, 4  ;;  %v1158_v31 = vperm.slane %v1150_v58, %v4267_v56  ;;  %v1182_v60 = vperm.slane %v1174_v27, %v4267_v56  ;;  %v1197_v62 = vrot.slane %v1146_v47, 4 }
 0x292   : > { %v1129_v61 = vrot.slane %v1114_v55, 4  ;;  %v1221_v63 = vrot.slane %v1170_v54, 4  ;;  %v1136_v0 = vsel %vm967_vm8, %v1135_v33, %v1064_v6  ;;  %v1148_v28 = vsel %vm967_vm8, %v1147_v40, %v1066_v22 }
 0x293   : > { %v1134_v1 = vsel %vm967_vm8, 0.0, %v1133_v59  ;;  %v1258_v3 = vsel %vm967_vm8, %v1133_v59, %v1122_v45  ;;  %v1195_v4 = vrot.slane %v1158_v31, 4  ;;  %v1219_v5 = vrot.slane %v1182_v60, 4 }
 0x294   : > { %v1130_v7 = vsel %vm967_vm8, 0.0, %v1129_v61  ;;  %v4366_v8 = vperm.slane %v1258_v3, %v4267_v56  ;;  %v1263_v11 = vrot.slane %v1134_v1, 4  ;;  %v1198_v13 = vsel %vm967_vm8, %v1158_v31, %v1197_v62 }
 0x295   : > { %v1252_v14 = vrot.slane %v1130_v7, 4  ;;  %v1206_v15 = vperm.slane %v1198_v13, %v4280_v19  ;;  %v1222_v16 = vsel %vm967_vm8, %v1182_v60, %v1221_v63  ;;  %v1196_v6 = vsel %vm967_vm8, %v1195_v4, %v1146_v47 }
 0x296   : > { %v1264_v17 = vsel %vm967_vm8, %v1263_v11, %v1132_v12  ;;  %v1230_v18 = vperm.slane %v1222_v16, %v4280_v19  ;;  %v1202_v20 = vperm.slane %v1196_v6, %v4280_v19  ;;  %v1220_v21 = vsel %vm967_vm8, %v1219_v5, %v1170_v54 }
 0x297   : > { %v1226_v23 = vperm.slane %v1220_v21, %v4280_v19  ;;  %v1245_v24 = vrot.slane %v1206_v15, 4  ;;  %v1142_v26 = vperm.slane %v1136_v0, %v4267_v56  ;;  %v1154_v32 = vperm.slane %v1148_v28, %v4267_v56 }
 0x298   : > { %v1243_v30 = vrot.slane %v1230_v18, 4  ;;  %v1172_v33 = vsel %vm967_vm8, %v1171_v25, %v4318_v10  ;;  %v1209_v34 = vrot.slane %v4334_v29, 4  ;;  %v1241_v47 = vrot.slane %v1202_v20, 4 }
 0x299   : > { %v1239_v35 = vrot.slane %v1226_v23, 4  ;;  %v1246_v39 = vsel %vm967_vm8, %v1230_v18, %v1245_v24  ;;  %v1178_v44 = vperm.slane %v1172_v33, %v4267_v56  ;;  %v1185_v46 = vrot.slane %v1142_v26, 4 }
 0x29a   : > { %v1244_v45 = vsel %vm967_vm8, %v1243_v30, %v1206_v15  ;;  %3177 = vmatpush.xpose.msk.msra.mxu3 %vm1301_vm9, %v1246_v39  ;;  %v1183_v22 = vrot.slane %v1154_v32, 4  ;;  %v1128_v40 = vsel %vm967_vm8, 0.0, %v1127_v57  ;;  %v1242_v53 = vsel %vm967_vm8, %v1226_v23, %v1241_v47 }
 0x29b   : > { %3175 = vmatpush.xpose.msk.msrb.mxu2 %vm1301_vm9, %v1244_v45  ;;  %v1240_v10 = vsel %vm967_vm8, %v1239_v35, %v1202_v20  ;;  %v1186_v25 = vsel %vm967_vm8, %v1154_v32, %v1185_v46  ;;  %v1210_v41 = vsel %vm967_vm8, %v1178_v44, %v1209_v34  ;;  %v1207_v50 = vrot.slane %v1178_v44, 4  ;;  %3173 = vmatpush.xpose.msk.msrb.mxu1 %vm1301_vm9, %v1242_v53 }
 0x29c   : > { %3171 = vmatpush.xpose.msk.msrb.mxu0 %vm1301_vm9, %v1240_v10  ;;  %v1194_v48 = vperm.slane %v1186_v25, %v4280_v19  ;;  %v1218_v52 = vperm.slane %v1210_v41, %v4280_v19  ;;  %v1184_v51 = vsel %vm967_vm8, %v1183_v22, %v1142_v26  ;;  %v1247_v57 = vsel %vm967_vm8, %v1129_v61, %v4344_v49 }
 0x29d   : > { %v1190_v54 = vperm.slane %v1184_v51, %v4280_v19  ;;  %v1208_v55 = vsel %vm967_vm8, %v1207_v50, %v4334_v29  ;;  %v1253_v58 = vsel %vm967_vm8, %v1252_v14, %v1128_v40  ;;  %v1251_v31 = vperm.slane %v1247_v57, %v4267_v56 }
 0x29e   : > { %v1235_v27 = vrot.slane %v1218_v52, 4  ;;  %v1214_v12 = vperm.slane %v1208_v55, %v4280_v19  ;;  %v1237_v59 = vrot.slane %v1194_v48, 4  ;;  %v1257_v62 = vperm.slane %v1253_v58, %v4267_v56 }
 0x29f   : > { %v1233_v60 = vrot.slane %v1190_v54, 4  ;;  %v1268_v63 = vperm.slane %v1264_v17, %v4267_v56  ;;  %v1283_v0 = vrot.slane %v4366_v8, 4  ;;  %v1271_v61 = vrot.slane %v1251_v31, 4 }
 0x2a0   : > { %v1236_v29 = vsel %vm967_vm8, %v1235_v27, %v1194_v48  ;;  %v1231_v1 = vrot.slane %v1214_v12, 4  ;;  %v1238_v49 = vsel %vm967_vm8, %v1218_v52, %v1237_v59  ;;  %v1269_v5 = vrot.slane %v1257_v62, 4 }
 0x2a1   : > { %3176 = vmatmul.msk.f32.vlgmr.msrb.gmra.mxu2 %vm1301_vm9, %v1236_v29  ;;  %3178 = vmatmul.msk.f32.vlgmr.msra.gmra.mxu3 %vm1301_vm9, %v1238_v49  ;;  %v1234_v3 = vsel %vm967_vm8, %v1214_v12, %v1233_v60  ;;  %v1284_v4 = vsel %vm967_vm8, %v1268_v63, %v1283_v0  ;;  %v1281_v7 = vrot.slane %v1268_v63, 4  ;;  %v1272_v13 = vsel %vm967_vm8, %v1257_v62, %v1271_v61 }
 0x2a2   : > { %v1232_v11 = vsel %vm967_vm8, %v1231_v1, %v1190_v54  ;;  %3174 = vmatmul.msk.f32.vlgmr.msrb.gmra.mxu1 %vm1301_vm9, %v1234_v3  ;;  %v1292_v14 = vperm.slane %v1284_v4, %v4280_v19  ;;  %v1280_v15 = vperm.slane %v1272_v13, %v4280_v19  ;;  %v1270_v16 = vsel %vm967_vm8, %v1269_v5, %v1251_v31 }
 0x2a3   : > { %3172 = vmatmul.msk.f32.vlgmr.msrb.gmra.mxu0 %vm1301_vm9, %v1232_v11  ;;  %v1282_v6 = vsel %vm967_vm8, %v1281_v7, %v4366_v8  ;;  %v1276_v18 = vperm.slane %v1270_v16, %v4280_v19 }
 0x2a4   : > { %v1297_v17 = vrot.slane %v1292_v14, 4  ;;  %v1288_v20 = vperm.slane %v1282_v6, %v4280_v19  ;;  %v1299_v21 = vrot.slane %v1280_v15, 4 }
 0x2a5   : > { %v1295_v26 = vrot.slane %v1276_v18, 4 }
 0x2a6   : > { %v1298_v23 = vsel %vm967_vm8, %v1297_v17, %v1280_v15  ;;  %v1293_v24 = vrot.slane %v1288_v20, 4  ;;  %v1300_v28 = vsel %vm967_vm8, %v1292_v14, %v1299_v21  ;;  %v673_v21 = vld [vmem:[#allocation8 + $0x78] sm:$0xff] }
 0x2a7   : > { %1520 = vmatpush.msra.mxu1 %v1298_v23  ;;  %1543 = vmatpush.msra.mxu2 %v1300_v28  ;;  %v1296_v32 = vsel %vm967_vm8, %v1288_v20, %v1295_v26  ;;  %v672_v23 = vld [vmem:[#allocation8 + $0x70] sm:$0xff] }
 0x2a8   : > { %v1294_v30 = vsel %vm967_vm8, %v1293_v24, %v1276_v18  ;;  %1497 = vmatpush.msra.mxu0 %v1296_v32 }
 0x2a9   : > { %1474 = vmatpush.msrb.mxu3 %v1294_v30 }
 0x2ab   : > { %1675 = vmatpush.msra.mxu3 %v673_v21 }
 0x2ad   : > { %1676 = vmatpush.msra.mxu3 %v672_v23 }
 0x31f   : > { %v1351_v8 = vpop.f32.mrf.mxu1 }
 0x320   : > { %v1325_v33 = vpop.f32.mrf.mxu0  ;;  %v1407_v34 = vmul.f32 0.088388346, %v1351_v8 }
 0x321   : > { %v1406_v35 = vmul.f32 0.088388346, %v1325_v33 }
 0x322   : > { %v1412_v46 = vsel %vm1410_vm10, %v1407_v34, -inf }
 0x323   : > { %v1411_v22 = vsel %vm1410_vm10, %v1406_v35, -inf }
 0x324   : > { %v1377_v39 = vpop.f32.mrf.mxu2  ;;  %v1403_v44 = vpop.f32.mrf.mxu3  ;;  %v1415_v25 = vmax.f32 %v1411_v22, %v1412_v46 }
 0x325   : > { %v1408_v45 = vmul.f32 0.088388346, %v1377_v39  ;;  %v1409_v47 = vmul.f32 0.088388346, %v1403_v44 }
 0x327   : > { %v1413_v40 = vsel %vm1410_vm10, %v1408_v45, -inf  ;;  %v1414_v10 = vsel %vm1410_vm10, %v1409_v47, -inf }
 0x328   : > { %v1416_v41 = vmax.f32 %v1413_v40, %v1414_v10 }
 0x32a   : > { %v1417_v50 = vmax.f32 %v1415_v25, %v1416_v41 }
 0x32c   : > { %v1418_v48 = vsub.f32 %v1406_v35, %v1417_v50  ;;  %v1419_v52 = vsub.f32 %v1407_v34, %v1417_v50  ;;  %v1420_v53 = vsub.f32 %v1408_v45, %v1417_v50  ;;  %v1421_v51 = vsub.f32 %v1409_v47, %v1417_v50 }
 0x32e   : > { %v1422_v54 = vmul.f32 1.442695, %v1418_v48  ;;  %v1424_v55 = vmul.f32 1.442695, %v1419_v52  ;;  %v1426_v57 = vmul.f32 1.442695, %v1420_v53 }
 0x32f   : > { %v1428_v58 = vmul.f32 1.442695, %v1421_v51 }
 0x330   : > { %3353 = vpow2.f32 %v1422_v54 }
 0x331   : > { %3355 = vpow2.f32 %v1424_v55 }
 0x332   : > { %3357 = vpow2.f32 %v1426_v57 }
 0x333   : > { %3359 = vpow2.f32 %v1428_v58 }
 0x336   : > { %v3354_v27 = vpop.eup %3353 }
 0x337   : > { %v3356_v12 = vpop.eup %3355  ;;  %v1430_v59 = vsel %vm1410_vm10, %v3354_v27, 0.0 }
 0x338   : > { %v3358_v31 = vpop.eup %3357  ;;  %v1431_v60 = vsel %vm1410_vm10, %v3356_v12, 0.0 }
 0x339   : > { %v3360_v62 = vpop.eup %3359  ;;  %v1432_v63 = vadd.f32 %v1431_v60, %v1430_v59  ;;  %v1433_v0 = vsel %vm1410_vm10, %v3358_v31, 0.0 }
 0x33a   : > { %v1435_v1 = vsel %vm1410_vm10, %v3360_v62, 0.0 }
 0x33b   : > { %v1434_v29 = vadd.f32 %v1433_v0, %v1432_v63 }
 0x33d   : > { %v1436_v49 = vadd.f32 %v1435_v1, %v1434_v29 }
 0x33f   : > { %3361 = vrcp.f32 %v1436_v49  ;;  %v1448_v5 = vand.u32 2147483648, %v1436_v49  ;;  %v1446_v11 = vand.u32 2147483647, %v1436_v49  ;;  %vm1442_vm12 = vweird.f32 %v1436_v49 }
 0x341   : > { %v1449_v14 = vor.u32 1.1754944e-38, %v1448_v5  ;;  %vm1447_vm14 = vcmp.eq.f32.partialorder %v1446_v11, 8.507059e+37 }
 0x345   : > { %v3362_v61 = vpop.eup %3361 }
 0x346   : > { %v1438_v3 = vmul.f32 %v3362_v61, %v1436_v49  ;;  %vm1443_vm11 = vweird.f32 %v3362_v61 }
 0x347   : > { %vm1444_vm13 = vmor %vm1442_vm12, %vm1443_vm11 }
 0x348   : > { %v1439_v4 = vsub.f32 1.0, %v1438_v3 }
 0x34a   : > { %v1440_v7 = vmul.f32 %v3362_v61, %v1439_v4 }
 0x34c   : > { %v1441_v13 = vadd.f32 %v3362_v61, %v1440_v7 }
 0x34e   : > { %v1445_v15 = vsel %vm1444_vm13, %v3362_v61, %v1441_v13 }
 0x34f   : > { %v1450_v16 = vsel %vm1447_vm14, %v1449_v14, %v1445_v15 }
 0x350   : > { %v1455_v6 = vmul.f32 %v3360_v62, %v1450_v16  ;;  %v1452_v17 = vmul.f32 %v3354_v27, %v1450_v16  ;;  %v1453_v18 = vmul.f32 %v3356_v12, %v1450_v16  ;;  %v1454_v20 = vmul.f32 %v3358_v31, %v1450_v16 }
 0x352   : > { %3179 = vmatmul.msk.f32.vlgmr.msrb.gmra.mxu3 %vm1410_vm10, %v1452_v17  ;;  %3180 = vmatmul.msk.f32.vlgmr.msra.gmra.mxu0 %vm1410_vm10, %v1453_v18 }
 0x353   : > { %3181 = vmatmul.msk.f32.vlgmr.msra.gmra.mxu1 %vm1410_vm10, %v1454_v20  ;;  %3182 = vmatmul.msk.f32.vlgmr.msra.gmra.mxu2 %vm1410_vm10, %v1455_v6 }
 0x3cf   : > { %v1499_v26 = vpop.f32.mrf.mxu0 }
 0x3d0   : > { %v1522_v24 = vpop.f32.mrf.mxu1  ;;  %v1562_v30 = vrot.slane %v1499_v26, 4 }
 0x3d1   : > { %v1548_v28 = vrot.slane %v1522_v24, 4 }
 0x3d5   : > { %v1476_v32 = vpop.f32.mrf.mxu3 }
 0x3d6   : > { %v1549_v8 = vsel %vm967_vm8, %v1548_v28, %v1476_v32  ;;  %v1550_v33 = vrot.slane %v1476_v32, 4  ;;  %v1545_v34 = vpop.f32.mrf.mxu2 }
 0x3d7   : > { %v1555_v35 = vperm.slane %v1549_v8, %v4267_v56  ;;  %v1560_v39 = vrot.slane %v1545_v34, 4  ;;  %v1563_v44 = vsel %vm967_vm8, %v1545_v34, %v1562_v30 }
 0x3d8   : > { %v1551_v46 = vsel %vm967_vm8, %v1522_v24, %v1550_v33  ;;  %v1571_v45 = vperm.slane %v1563_v44, %v4267_v56 }
 0x3d9   : > { %v1559_v47 = vperm.slane %v1551_v46, %v4267_v56  ;;  %v1574_v22 = vrot.slane %v1555_v35, 4  ;;  %v1561_v40 = vsel %vm967_vm8, %v1560_v39, %v1499_v26  ;;  %v671_v46 = vld [vmem:[#allocation8 + $0x68] sm:$0xff] }
 0x3da   : > { %v1567_v10 = vperm.slane %v1561_v40, %v4267_v56  ;;  %v1584_v25 = vrot.slane %v1571_v45, 4  ;;  %1677 = vmatpush.msra.mxu3 %v671_v46  ;;  %v667_v40 = vld [vmem:[#allocation8 + $0x48] sm:$0xff] }
 0x3db   : > { %v1586_v41 = vrot.slane %v1559_v47, 4  ;;  %v711_v46 = vld [vmem:[#allocation13 + $0x100] sm:$0xff] }
 0x3dc   : > { %v1572_v50 = vrot.slane %v1567_v10, 4  ;;  %v1575_v48 = vsel %vm967_vm8, %v1567_v10, %v1574_v22  ;;  %v1585_v52 = vsel %vm967_vm8, %v1584_v25, %v1559_v47  ;;  %v669_v47 = vld [vmem:[#allocation8 + $0x58] sm:$0xff]  ;;  %v668_v22 = vld [vmem:[#allocation8 + $0x50] sm:$0xff]  ;;  %v666_v10 = vld [vmem:[#allocation8 + $0x40] sm:$0xff] }
 0x3dd   : > { %v1583_v53 = vperm.slane %v1575_v48, %v4280_v19  ;;  %v1587_v51 = vsel %vm967_vm8, %v1571_v45, %v1586_v41  ;;  %v1591_v54 = vperm.slane %v1585_v52, %v4280_v19  ;;  %v670_v45 = vld [vmem:[#allocation8 + $0x60] sm:$0xff]  ;;  %v665_v25 = vld [vmem:[#allocation8 + $0x38] sm:$0xff]  ;;  %v664_v41 = vld [vmem:[#allocation8 + $0x30] sm:$0xff] }
 0x3de   : > { %v1573_v55 = vsel %vm967_vm8, %v1572_v50, %v1555_v35  ;;  %v1595_v57 = vperm.slane %v1587_v51, %v4280_v19  ;;  %1678 = vmatpush.msra.mxu3 %v670_v45  ;;  %v663_v50 = vld [vmem:[#allocation8 + $0x28] sm:$0xff]  ;;  %v662_v48 = vld [vmem:[#allocation8 + $0x20] sm:$0xff]  ;;  %v661_v52 = vld [vmem:[#allocation8 + $0x18] sm:$0xff] }
 0x3df   : > { %v1579_v58 = vperm.slane %v1573_v55, %v4280_v19  ;;  %v1598_v27 = vrot.slane %v1583_v53, 4  ;;  %v1600_v12 = vrot.slane %v1591_v54, 4  ;;  %v660_v53 = vld [vmem:[#allocation8 + $0x10] sm:$0xff]  ;;  %v659_v51 = vld [vmem:[#allocation8 + $0x8] sm:$0xff] }
 0x3e0   : > { %v1602_v59 = vrot.slane %v1595_v57, 4  ;;  %1679 = vmatpush.msra.mxu3 %v669_v47  ;;  %v712_v45 = vld [vmem:[#allocation13 + $0x108] sm:$0xff]  ;;  %v713_v47 = vld [vmem:[#allocation13 + $0x110] sm:$0xff] }
 0x3e1   : > { %v1596_v31 = vrot.slane %v1579_v58, 4  ;;  %v1599_v60 = vsel %vm967_vm8, 0.0, %v1598_v27  ;;  %v1604_v62 = vsel %vm967_vm8, %v1598_v27, %v1579_v58  ;;  %v1601_v4 = vsel %vm967_vm8, 0.0, %v1600_v12 }
 0x3e2   : > { %v1603_v63 = vsel %vm967_vm8, 0.0, %v1602_v59  ;;  %v1609_v0 = vrot.slane %v1599_v60, 4  ;;  %v1615_v29 = vsel %vm967_vm8, %v1602_v59, %v1591_v54  ;;  %v1608_v1 = vperm.slane %v1604_v62, %v4267_v56  ;;  %1680 = vmatpush.msra.mxu3 %v668_v22  ;;  %v658_v54 = vld [vmem:[#allocation8] sm:$0xff] }
 0x3e3   : > { %v1620_v49 = vrot.slane %v1603_v63, 4  ;;  %v1597_v61 = vsel %vm967_vm8, 0.0, %v1596_v31  ;;  %v1619_v3 = vperm.slane %v1615_v29, %v4267_v56  ;;  %v3341_v31 = vld [vmem:[%s4882_s4] ss:$0 sm:$0xff]  ;;  %v714_v22 = vld [vmem:[#allocation13 + $0x118] sm:$0xff] }
 0x3e4   : > { %v1610_v5 = vsel %vm967_vm8, %v1609_v0, %v1597_v61  ;;  %v1628_v7 = vrot.slane %v1608_v1, 4  ;;  %1681 = vmatpush.msra.mxu3 %v667_v40  ;;  %v739_v61 = vld [vmem:[#allocation13 + $0x1e0] sm:$0xff] }
 0x3e5   : > { %v1614_v11 = vperm.slane %v1610_v5, %v4267_v56  ;;  %v1621_v13 = vsel %vm967_vm8, %v1620_v49, %v1601_v4  ;;  %v1640_v14 = vrot.slane %v1619_v3, 4  ;;  %v741_v4 = vld [vmem:[#allocation13 + $0x1f0] sm:$0xff]  ;;  %1754 = vmatpush.msrb.mxu0 %v739_v61  ;;  %v735_v5 = vld [vmem:[#allocation13 + $0x1c0] sm:$0xff]  ;;  %v694_v61 = vld [vmem:[#allocation13 + $0x78] sm:$0xff] }
 0x3e6   : > { %v1625_v15 = vperm.slane %v1621_v13, %v4267_v56  ;;  %1682 = vmatpush.msra.mxu3 %v666_v10  ;;  %1794 = vmatpush.msrb.mxu2 %v741_v4  ;;  %v738_v13 = vld [vmem:[#allocation13 + $0x1d8] sm:$0xff]  ;;  %v707_v10 = vld [vmem:[#allocation13 + $0xe0] sm:$0xff] }
 0x3e7   : > { %v1629_v16 = vsel %vm967_vm8, %v1614_v11, %v1628_v7  ;;  %v1626_v6 = vrot.slane %v1614_v11, 4  ;;  %v736_v7 = vld [vmem:[#allocation13 + $0x1c8] sm:$0xff]  ;;  %v737_v11 = vld [vmem:[#allocation13 + $0x1d0] sm:$0xff]  ;;  %1755 = vmatpush.msrb.mxu0 %v735_v5  ;;  %v687_v4 = vld [vmem:[#allocation13 + $0x40] sm:$0xff] }
 0x3e8   : > { %v1637_v17 = vperm.slane %v1629_v16, %v4280_v19  ;;  %v1641_v18 = vsel %vm967_vm8, %v1625_v15, %v1640_v14  ;;  %v1638_v20 = vrot.slane %v1625_v15, 4  ;;  %1683 = vmatpush.msra.mxu3 %v665_v25  ;;  %1795 = vmatpush.msrb.mxu2 %v737_v11  ;;  %v731_v14 = vld [vmem:[#allocation13 + $0x1a0] sm:$0xff]  ;;  %v732_v15 = vld [vmem:[#allocation13 + $0x1a8] sm:$0xff]  ;;  %v733_v16 = vld [vmem:[#allocation13 + $0x1b0] sm:$0xff] }
 0x3e9   : > { %v1649_v21 = vperm.slane %v1641_v18, %v4280_v19  ;;  %v1627_v23 = vsel %vm967_vm8, %v1626_v6, %v1608_v1  ;;  %1756 = vmatpush.msrb.mxu0 %v731_v14  ;;  %v734_v6 = vld [vmem:[#allocation13 + $0x1b8] sm:$0xff]  ;;  %v728_v18 = vld [vmem:[#allocation13 + $0x188] sm:$0xff]  ;;  %v689_v5 = vld [vmem:[#allocation13 + $0x50] sm:$0xff] }
 0x3ea   : > { %v1656_v24 = vrot.slane %v1637_v17, 4  ;;  %v1633_v26 = vperm.slane %v1627_v23, %v4280_v19  ;;  %v1639_v28 = vsel %vm967_vm8, %v1638_v20, %v1619_v3  ;;  %1684 = vmatpush.msra.mxu3 %v664_v41  ;;  %v740_v3 = vld [vmem:[#allocation13 + $0x1e8] sm:$0xff]  ;;  %1796 = vmatpush.msrb.mxu2 %v733_v16  ;;  %v729_v20 = vld [vmem:[#allocation13 + $0x190] sm:$0xff]  ;;  %v723_v23 = vld [vmem:[#allocation13 + $0x160] sm:$0xff] }
 0x3eb   : > { %v1654_v30 = vrot.slane %v1649_v21, 4  ;;  %v1645_v32 = vperm.slane %v1639_v28, %v4280_v19  ;;  %1774 = vmatpush.msrb.mxu1 %v740_v3  ;;  %v726_v28 = vld [vmem:[#allocation13 + $0x178] sm:$0xff]  ;;  %v708_v25 = vld [vmem:[#allocation13 + $0xe8] sm:$0xff] }
 0x3ec   : > { %v1657_v8 = vsel %vm967_vm8, %v1649_v21, %v1656_v24  ;;  %v1652_v33 = vrot.slane %v1633_v26, 4  ;;  %1685 = vmatpush.msra.mxu3 %v663_v50  ;;  %v730_v21 = vld [vmem:[#allocation13 + $0x198] sm:$0xff]  ;;  %1797 = vmatpush.msrb.mxu2 %v729_v20  ;;  %v724_v24 = vld [vmem:[#allocation13 + $0x168] sm:$0xff]  ;;  %v709_v50 = vld [vmem:[#allocation13 + $0xf0] sm:$0xff] }
 0x3ed   : > { %1667 = vrot.lane.b32.xlu0 %v1657_v8, %s3959_s10  ;;  %v1655_v34 = vsel %vm967_vm8, %v1654_v30, %v1637_v17  ;;  %v1650_v35 = vrot.slane %v1645_v32, 4  ;;  %1775 = vmatpush.msrb.mxu1 %v736_v7  ;;  %v727_v17 = vld [vmem:[#allocation13 + $0x180] sm:$0xff]  ;;  %v721_v8 = vld [vmem:[#allocation13 + $0x150] sm:$0xff]  ;;  %v690_v7 = vld [vmem:[#allocation13 + $0x58] sm:$0xff] }
 0x3ee   : > { %1663 = vrot.lane.b32.xlu2 %v1655_v34, %s3958_s28  ;;  %v1653_v39 = vsel %vm967_vm8, %v1645_v32, %v1652_v33  ;;  %1686 = vmatpush.msra.mxu3 %v662_v48  ;;  %v719_v30 = vld [vmem:[#allocation13 + $0x140] sm:$0xff]  ;;  %v720_v32 = vld [vmem:[#allocation13 + $0x148] sm:$0xff]  ;;  %v722_v33 = vld [vmem:[#allocation13 + $0x158] sm:$0xff] }
 0x3ef   : > { %1659 = vrot.lane.b32.xlu1 %v1653_v39, %s3960_s12  ;;  %v1651_v44 = vsel %vm967_vm8, %v1650_v35, %v1633_v26  ;;  %1776 = vmatpush.msrb.mxu1 %v732_v15  ;;  %v725_v26 = vld [vmem:[#allocation13 + $0x170] sm:$0xff]  ;;  %v715_v34 = vld [vmem:[#allocation13 + $0x120] sm:$0xff]  ;;  %v716_v35 = vld [vmem:[#allocation13 + $0x128] sm:$0xff] }
 0x3f0   : > { %1687 = vmatpush.msra.mxu3 %v661_v52  ;;  %1757 = vmatpush.msrb.mxu0 %v727_v17  ;;  %v717_v39 = vld [vmem:[#allocation13 + $0x130] sm:$0xff]  ;;  %v710_v48 = vld [vmem:[#allocation13 + $0xf8] sm:$0xff]  ;;  %v703_v52 = vld [vmem:[#allocation13 + $0xc0] sm:$0xff] }
 0x3f1   : > { %1777 = vmatpush.msrb.mxu1 %v728_v18  ;;  %1798 = vmatpush.msrb.mxu2 %v725_v26  ;;  %v684_v14 = vld [vmem:[#allocation13 + $0x28] sm:$0xff]  ;;  %v685_v15 = vld [vmem:[#allocation13 + $0x30] sm:$0xff]  ;;  %v686_v16 = vld [vmem:[#allocation13 + $0x38] sm:$0xff] }
 0x3f2   : > { %1688 = vmatpush.msra.mxu3 %v660_v53  ;;  %1758 = vmatpush.msrb.mxu0 %v723_v23  ;;  %v704_v53 = vld [vmem:[#allocation13 + $0xc8] sm:$0xff]  ;;  %v679_v17 = vld [vmem:[#allocation13] sm:$0xff]  ;;  %v681_v20 = vld [vmem:[#allocation13 + $0x10] sm:$0xff] }
 0x3f3   : > { %1778 = vmatpush.msrb.mxu1 %v724_v24  ;;  %1799 = vmatpush.msrb.mxu2 %v721_v8  ;;  %v680_v18 = vld [vmem:[#allocation13 + $0x8] sm:$0xff]  ;;  %v759_v26 = vld [vmem:[#allocation14 + $0x78] sm:$0xff] }
 0x3f4   : > { %1689 = vmatpush.msra.mxu3 %v659_v51  ;;  %1759 = vmatpush.msrb.mxu0 %v719_v30  ;;  %v705_v51 = vld [vmem:[#allocation13 + $0xd0] sm:$0xff] }
 0x3f5   : > { %1779 = vmatpush.msrb.mxu1 %v720_v32  ;;  %1800 = vmatpush.msrb.mxu2 %v717_v39  ;;  %v758_v30 = vld [vmem:[#allocation14 + $0x70] sm:$0xff] }
 0x3f6   : > { %1690 = vmatpush.msra.mxu3 %v658_v54  ;;  %1760 = vmatpush.msrb.mxu0 %v715_v34  ;;  %v706_v54 = vld [vmem:[#allocation13 + $0xd8] sm:$0xff]  ;;  %v774_v32 = vld [vmem:[#allocation14 + $0xf0] sm:$0xff]  ;;  %v773_v34 = vld [vmem:[#allocation14 + $0xe8] sm:$0xff] }
 0x3f7   : > { %1780 = vmatpush.msrb.mxu1 %v716_v35  ;;  %1801 = vmatpush.msrb.mxu2 %v713_v47  ;;  %v791_v35 = vld [vmem:[#allocation14 + $0x178] sm:$0xff]  ;;  %v772_v47 = vld [vmem:[#allocation14 + $0xe0] sm:$0xff] }
 0x3f8   : > { %1761 = vmatpush.msrb.mxu0 %v711_v46  ;;  %v807_v46 = vld [vmem:[#allocation14 + $0x1f8] sm:$0xff] }
 0x3f9   : > { %1781 = vmatpush.msrb.mxu1 %v712_v45  ;;  %1802 = vmatpush.msrb.mxu2 %v709_v50  ;;  %v805_v50 = vld [vmem:[#allocation14 + $0x1e8] sm:$0xff] }
 0x3fa   : > { %1762 = vmatpush.msrb.mxu0 %v707_v10 }
 0x3fb   : > { %1782 = vmatpush.msrb.mxu1 %v708_v25  ;;  %1803 = vmatpush.msrb.mxu2 %v705_v51  ;;  %v789_v25 = vld [vmem:[#allocation14 + $0x168] sm:$0xff]  ;;  %v788_v51 = vld [vmem:[#allocation14 + $0x160] sm:$0xff] }
 0x3fc   : > { %1763 = vmatpush.msrb.mxu0 %v703_v52  ;;  %v755_v52 = vld [vmem:[#allocation14 + $0x58] sm:$0xff] }
 0x3fd   : > { %1783 = vmatpush.msrb.mxu1 %v704_v53  ;;  %v771_v53 = vld [vmem:[#allocation14 + $0xd8] sm:$0xff] }
 0x448   : > { %v1664_v57 = vpop.permute.xlu2 %1663 }
 0x45f   : > { %v1668_v27 = vpop.permute.xlu0 %1667 }
 0x461   : > { %v1660_v55 = vpop.permute.xlu1 %1659 }
 0x462   : > { %v1670_v58 = vsel %vm1301_vm9, %v1651_v44, %v1660_v55  ;;  %v718_v44 = vld [vmem:[#allocation13 + $0x138] sm:$0xff]  ;;  %v699_v55 = vld [vmem:[#allocation13 + $0xa0] sm:$0xff] }
 0x463   : > { %v1672_v12 = vsel %vm1671_vm15, %v1670_v58, %v1664_v57  ;;  %v700_v57 = vld [vmem:[#allocation13 + $0xa8] sm:$0xff]  ;;  %v701_v58 = vld [vmem:[#allocation13 + $0xb0] sm:$0xff]  ;;  %1764 = vmatpush.msrb.mxu0 %v699_v55 }
 0x464   : > { %v1674_v59 = vsel %vm1673_vm0, %v1672_v12, %v1668_v27  ;;  %v702_v27 = vld [vmem:[#allocation13 + $0xb8] sm:$0xff]  ;;  %v695_v12 = vld [vmem:[#allocation13 + $0x80] sm:$0xff]  ;;  %1784 = vmatpush.msrb.mxu1 %v700_v57  ;;  %1804 = vmatpush.msrb.mxu2 %v701_v58  ;;  %v770_v55 = vld [vmem:[#allocation14 + $0xd0] sm:$0xff] }
 0x465   : > { %1691 = vmatmul.f32.vlgmr.msra.gmra.mxu3 %v1674_v59  ;;  %v696_v59 = vld [vmem:[#allocation13 + $0x88] sm:$0xff]  ;;  %1765 = vmatpush.msrb.mxu0 %v695_v12  ;;  %v787_v57 = vld [vmem:[#allocation14 + $0x158] sm:$0xff] }
 0x466   : > { %1785 = vmatpush.msrb.mxu1 %v696_v59  ;;  %v803_v58 = vld [vmem:[#allocation14 + $0x1d8] sm:$0xff]  ;;  %v769_v12 = vld [vmem:[#allocation14 + $0xc8] sm:$0xff]  ;;  %v786_v59 = vld [vmem:[#allocation14 + $0x150] sm:$0xff] }
 0x4e8   : > { %v1692_v60 = vpop.f32.mrf.mxu3 }
 0x4e9   : > { %v1695_v62 = vadd.f32 %v1692_v60, %v4215_v2  ;;  %v742_v2 = vld [vmem:[#allocation13 + $0x1f8] sm:$0xff] }
 0x4ea   : > { %1814 = vmatpush.msrb.mxu3 %v742_v2  ;;  %v698_v60 = vld [vmem:[#allocation13 + $0x98] sm:$0xff]  ;;  %v688_v2 = vld [vmem:[#allocation13 + $0x48] sm:$0xff] }
 0x4eb   : > { %v4492_v63 = vadd.f32 %v3341_v31, %v1695_v62  ;;  %v697_v31 = vld [vmem:[#allocation13 + $0x90] sm:$0xff]  ;;  %v691_v62 = vld [vmem:[#allocation13 + $0x60] sm:$0xff] }
 0x4ec   : > { %1815 = vmatpush.msrb.mxu3 %v738_v13  ;;  %1805 = vmatpush.msrb.mxu2 %v697_v31  ;;  %v683_v13 = vld [vmem:[#allocation13 + $0x20] sm:$0xff]  ;;  %v802_v31 = vld [vmem:[#allocation14 + $0x1d0] sm:$0xff] }
 0x4ed   : > { %1700 = vadd.xlane.f32.xlu1 %v4492_v63  ;;  %1766 = vmatpush.msrb.mxu0 %v691_v62  ;;  %v768_v62 = vld [vmem:[#allocation14 + $0xc0] sm:$0xff] }
 0x4ee   : > { %1816 = vmatpush.msrb.mxu3 %v734_v6 }
 0x4ef   : > { %1767 = vmatpush.msrb.mxu0 %v687_v4 }
 0x4f0   : > { %1817 = vmatpush.msrb.mxu3 %v730_v21  ;;  %v682_v21 = vld [vmem:[#allocation13 + $0x18] sm:$0xff] }
 0x4f1   : > { %1768 = vmatpush.msrb.mxu0 %v683_v13 }
 0x4f2   : > { %1818 = vmatpush.msrb.mxu3 %v726_v28  ;;  %v775_v28 = vld [vmem:[#allocation14 + $0xf8] sm:$0xff] }
 0x4f3   : > { %1769 = vmatpush.msrb.mxu0 %v679_v17  ;;  %v765_v17 = vld [vmem:[#allocation14 + $0xa8] sm:$0xff] }
 0x4f4   : > { %1819 = vmatpush.msrb.mxu3 %v722_v33  ;;  %v757_v33 = vld [vmem:[#allocation14 + $0x68] sm:$0xff] }
 0x4f5   : > { %1841 = vmatpush.msra.mxu0 %v759_v26  ;;  %v764_v26 = vld [vmem:[#allocation14 + $0xa0] sm:$0xff] }
 0x4f6   : > { %1820 = vmatpush.msrb.mxu3 %v718_v44  ;;  %v756_v44 = vld [vmem:[#allocation14 + $0x60] sm:$0xff] }
 0x4f7   : > { %1842 = vmatpush.msra.mxu0 %v758_v30 }
 0x4f8   : > { %1821 = vmatpush.msrb.mxu3 %v714_v22  ;;  %v790_v22 = vld [vmem:[#allocation14 + $0x170] sm:$0xff] }
 0x4f9   : > { %1843 = vmatpush.msra.mxu0 %v757_v33 }
 0x4fa   : > { %1822 = vmatpush.msrb.mxu3 %v710_v48 }
 0x4fb   : > { %1844 = vmatpush.msra.mxu0 %v756_v44  ;;  %v3343_v44 = vld [vmem:[#allocation11] ss:$0 sm:$0xff] }
 0x4fc   : > { %1823 = vmatpush.msrb.mxu3 %v706_v54  ;;  %v754_v54 = vld [vmem:[#allocation14 + $0x50] sm:$0xff] }
 0x4fd   : > { %1845 = vmatpush.msra.mxu0 %v755_v52  ;;  %v744_v52 = vld [vmem:[#allocation14] sm:$0xff] }
 0x4fe   : > { %1824 = vmatpush.msrb.mxu3 %v702_v27  ;;  %v753_v27 = vld [vmem:[#allocation14 + $0x48] sm:$0xff] }
 0x4ff   : > { %1846 = vmatpush.msra.mxu0 %v754_v54  ;;  %v778_v54 = vld [vmem:[#allocation14 + $0x110] sm:$0xff] }
 0x500   : > { %1825 = vmatpush.msrb.mxu3 %v698_v60  ;;  %v752_v60 = vld [vmem:[#allocation14 + $0x40] sm:$0xff] }
 0x501   : > { %1847 = vmatpush.msra.mxu0 %v753_v27  ;;  %v777_v27 = vld [vmem:[#allocation14 + $0x108] sm:$0xff] }
 0x502   : > { %1826 = vmatpush.msrb.mxu3 %v694_v61  ;;  %v751_v61 = vld [vmem:[#allocation14 + $0x38] sm:$0xff] }
 0x503   : > { %1848 = vmatpush.msra.mxu0 %v752_v60  ;;  %v776_v60 = vld [vmem:[#allocation14 + $0x100] sm:$0xff] }
 0x504   : > { %1827 = vmatpush.msrb.mxu3 %v690_v7  ;;  %v750_v7 = vld [vmem:[#allocation14 + $0x30] sm:$0xff] }
 0x505   : > { %1849 = vmatpush.msra.mxu0 %v751_v61  ;;  %v3392_v61 = vld [vmem:[#allocation5 + $0x120] sm:$0xff] }
 0x506   : > { %1828 = vmatpush.msrb.mxu3 %v686_v16 }
 0x507   : > { %1850 = vmatpush.msra.mxu0 %v750_v7  ;;  %v3397_v7 = vld [vmem:[#allocation5 + $0x148] sm:$0xff] }
 0x508   : > { %1829 = vmatpush.msrb.mxu3 %v682_v21  ;;  %v782_v21 = vld [vmem:[#allocation14 + $0x130] sm:$0xff] }
 0x50a   : > { %1901 = vmatpush.msra.mxu3 %v807_v46 }
 0x560   : > { %v1701_v0 = vpop.xlane.xlu1 %1700 }
 0x561   : > { %v1702_v29 = vmul.f32 %v1701_v0, %v4218_v9  ;;  %v692_v0 = vld [vmem:[#allocation13 + $0x68] sm:$0xff] }
 0x562   : > { %1786 = vmatpush.msrb.mxu1 %v692_v0  ;;  %v785_v0 = vld [vmem:[#allocation14 + $0x148] sm:$0xff] }
 0x563   : > { %v4497_v1 = vsub.f32 %v4492_v63, %v1702_v29 }
 0x564   : > { %1787 = vmatpush.msrb.mxu1 %v688_v2  ;;  %v784_v2 = vld [vmem:[#allocation14 + $0x140] sm:$0xff] }
 0x565   : > { %v1704_v49 = vmul.f32 %v4497_v1, %v4497_v1 }
 0x566   : > { %1788 = vmatpush.msrb.mxu1 %v684_v14  ;;  %v783_v14 = vld [vmem:[#allocation14 + $0x138] sm:$0xff] }
 0x567   : > { %1705 = vadd.xlane.f32.xlu2 %v1704_v49  ;;  %v693_v49 = vld [vmem:[#allocation13 + $0x70] sm:$0xff] }
 0x568   : > { %1806 = vmatpush.msrb.mxu2 %v693_v49  ;;  %1789 = vmatpush.msrb.mxu1 %v680_v18 }
 0x56a   : > { %1807 = vmatpush.msrb.mxu2 %v689_v5  ;;  %1861 = vmatpush.msra.mxu1 %v775_v28  ;;  %v800_v5 = vld [vmem:[#allocation14 + $0x1c0] sm:$0xff] }
 0x56c   : > { %1808 = vmatpush.msrb.mxu2 %v685_v15  ;;  %1862 = vmatpush.msra.mxu1 %v774_v32  ;;  %v799_v15 = vld [vmem:[#allocation14 + $0x1b8] sm:$0xff] }
 0x56d   : > { %v747_v32 = vld [vmem:[#allocation14 + $0x18] sm:$0xff] }
 0x56e   : > { %1809 = vmatpush.msrb.mxu2 %v681_v20  ;;  %1863 = vmatpush.msra.mxu1 %v773_v34  ;;  %v3342_v34 = vld [vmem:[#allocation10] ss:$0 sm:$0xff] }
 0x570   : > { %1881 = vmatpush.msra.mxu2 %v791_v35  ;;  %1864 = vmatpush.msra.mxu1 %v772_v47  ;;  %v746_v47 = vld [vmem:[#allocation14 + $0x10] sm:$0xff] }
 0x572   : > { %1882 = vmatpush.msra.mxu2 %v790_v22  ;;  %1865 = vmatpush.msra.mxu1 %v771_v53  ;;  %v762_v22 = vld [vmem:[#allocation14 + $0x90] sm:$0xff]  ;;  %v760_v53 = vld [vmem:[#allocation14 + $0x80] sm:$0xff] }
 0x574   : > { %1883 = vmatpush.msra.mxu2 %v789_v25  ;;  %1866 = vmatpush.msra.mxu1 %v770_v55  ;;  %v745_v25 = vld [vmem:[#allocation14 + $0x8] sm:$0xff]  ;;  %v794_v55 = vld [vmem:[#allocation14 + $0x190] sm:$0xff] }
 0x576   : > { %1884 = vmatpush.msra.mxu2 %v788_v51  ;;  %1867 = vmatpush.msra.mxu1 %v769_v12  ;;  %v779_v51 = vld [vmem:[#allocation14 + $0x118] sm:$0xff]  ;;  %v793_v12 = vld [vmem:[#allocation14 + $0x188] sm:$0xff] }
 0x578   : > { %1885 = vmatpush.msra.mxu2 %v787_v57  ;;  %1868 = vmatpush.msra.mxu1 %v768_v62  ;;  %v3385_v57 = vld [vmem:[#allocation5 + $0x168] sm:$0xff] }
 0x579   : > { %v792_v62 = vld [vmem:[#allocation14 + $0x180] sm:$0xff] }
 0x57a   : > { %1886 = vmatpush.msra.mxu2 %v786_v59  ;;  %v3387_v59 = vld [vmem:[#allocation5 + $0x150] sm:$0xff] }
 0x57c   : > { %1887 = vmatpush.msra.mxu2 %v785_v0  ;;  %v3389_v0 = vld [vmem:[#allocation5 + $0x138] sm:$0xff] }
 0x57e   : > { %1888 = vmatpush.msra.mxu2 %v784_v2  ;;  %v3395_v2 = vld [vmem:[#allocation5 + $0x108] sm:$0xff] }
 0x580   : > { %1889 = vmatpush.msra.mxu2 %v783_v14  ;;  %v3400_v14 = vld [vmem:[#allocation5 + $0x130] sm:$0xff] }
 0x582   : > { %1890 = vmatpush.msra.mxu2 %v782_v21  ;;  %v3407_v21 = vld [vmem:[#allocation5 + $0xa8] sm:$0xff] }
 0x5da   : > { %v1706_v40 = vpop.xlane.xlu2 %1705 }
 0x5db   : > { %v4502_v41 = vmul.f32 %v1706_v40, %v4226_v43  ;;  %v806_v40 = vld [vmem:[#allocation14 + $0x1f0] sm:$0xff] }
 0x5dc   : > { %1902 = vmatpush.msra.mxu3 %v806_v40  ;;  %v781_v40 = vld [vmem:[#allocation14 + $0x128] sm:$0xff] }
 0x5dd   : > { %3363 = vrsqrt.f32 %v4502_v41  ;;  %vm1715_vm1 = vcmp.eq.f32.partialorder %v4502_v41, inf  ;;  %v1718_v39 = vand.u32 2147483648, %v4502_v41  ;;  %vm1717_vm2 = vcmp.eq.f32.partialorder %v4502_v41, 0.0  ;;  %1891 = vmatpush.msra.mxu2 %v781_v40 }
 0x5de   : > { %1903 = vmatpush.msra.mxu3 %v805_v50  ;;  %v761_v50 = vld [vmem:[#allocation14 + $0x88] sm:$0xff] }
 0x5e3   : > { %v3364_v29 = vpop.eup %3363 }
 0x5e4   : > { %v1709_v3 = vmul.f32 %v3364_v29, %v4502_v41 }
 0x5e6   : > { %v1710_v11 = vmul.f32 %v3364_v29, %v1709_v3  ;;  %v767_v3 = vld [vmem:[#allocation14 + $0xb8] sm:$0xff] }
 0x5e7   : > { %1869 = vmatpush.msra.mxu1 %v767_v3  ;;  %v3393_v3 = vld [vmem:[#allocation5 + $0x128] sm:$0xff] }
 0x5e8   : > { %v1711_v6 = vmul.f32 0.5, %v1710_v11  ;;  %v766_v11 = vld [vmem:[#allocation14 + $0xb0] sm:$0xff] }
 0x5e9   : > { %1870 = vmatpush.msra.mxu1 %v766_v11  ;;  %v3398_v11 = vld [vmem:[#allocation5 + $0xf0] sm:$0xff] }
 0x5ea   : > { %v1712_v23 = vsub.f32 1.5, %v1711_v6  ;;  %v749_v6 = vld [vmem:[#allocation14 + $0x28] sm:$0xff] }
 0x5eb   : > { %1851 = vmatpush.msra.mxu0 %v749_v6  ;;  %1871 = vmatpush.msra.mxu1 %v765_v17  ;;  %v3403_v6 = vld [vmem:[#allocation5 + $0x118] sm:$0xff]  ;;  %v3404_v17 = vld [vmem:[#allocation5 + $0xc0] sm:$0xff] }
 0x5ec   : > { %v1713_v24 = vmul.f32 %v3364_v29, %v1712_v23  ;;  %v801_v29 = vld [vmem:[#allocation14 + $0x1c8] sm:$0xff]  ;;  %v798_v23 = vld [vmem:[#allocation14 + $0x1b0] sm:$0xff] }
 0x5ed   : > { %1872 = vmatpush.msra.mxu1 %v764_v26  ;;  %v3410_v26 = vld [vmem:[#allocation5 + $0x90] sm:$0xff] }
 0x5ee   : > { %v1714_v8 = vmul.f32 %v1713_v24, %v4502_v41  ;;  %v748_v24 = vld [vmem:[#allocation14 + $0x20] sm:$0xff] }
 0x5ef   : > { %1852 = vmatpush.msra.mxu0 %v748_v24  ;;  %v3409_v24 = vld [vmem:[#allocation5 + $0xe8] sm:$0xff] }
 0x5f0   : > { %v1716_v45 = vsel %vm1715_vm1, %v4502_v41, %v1714_v8  ;;  %v804_v41 = vld [vmem:[#allocation14 + $0x1e0] sm:$0xff]  ;;  %v763_v8 = vld [vmem:[#allocation14 + $0x98] sm:$0xff] }
 0x5f1   : > { %v1719_v10 = vsel %vm1717_vm2, %v1718_v39, %v1716_v45  ;;  %1904 = vmatpush.msra.mxu3 %v804_v41  ;;  %1853 = vmatpush.msra.mxu0 %v747_v32  ;;  %v795_v41 = vld [vmem:[#allocation14 + $0x198] sm:$0xff]  ;;  %v3412_v32 = vld [vmem:[#allocation5 + $0xd0] sm:$0xff] }
 0x5f2   : > { %v4511_v48 = vadd.f32 1e-06, %v1719_v10  ;;  %1873 = vmatpush.msra.mxu1 %v763_v8  ;;  %v797_v10 = vld [vmem:[#allocation14 + $0x1a8] sm:$0xff]  ;;  %v3413_v8 = vld [vmem:[#allocation5 + $0x78] sm:$0xff] }
 0x5f3   : > { %1905 = vmatpush.msra.mxu3 %v803_v58  ;;  %1854 = vmatpush.msra.mxu0 %v746_v47  ;;  %v3386_v58 = vld [vmem:[#allocation5 + $0x170] sm:$0xff]  ;;  %v3419_v47 = vld [vmem:[#allocation5 + $0x48] sm:$0xff] }
 0x5f4   : > { %3365 = vrcp.f32 %v4511_v48  ;;  %v1732_v16 = vand.u32 2147483648, %v4511_v48  ;;  %v1730_v20 = vand.u32 2147483647, %v4511_v48  ;;  %vm1726_vm4 = vweird.f32 %v4511_v48  ;;  %1874 = vmatpush.msra.mxu1 %v762_v22 }
 0x5f5   : > { %1906 = vmatpush.msra.mxu3 %v802_v31  ;;  %1855 = vmatpush.msra.mxu0 %v745_v25  ;;  %v3388_v31 = vld [vmem:[#allocation5 + $0x158] sm:$0xff] }
 0x5f6   : > { %v1733_v30 = vor.u32 1.1754944e-38, %v1732_v16  ;;  %vm1731_vm6 = vcmp.eq.f32.partialorder %v1730_v20, 8.507059e+37  ;;  %1875 = vmatpush.msra.mxu1 %v761_v50  ;;  %v3402_v16 = vld [vmem:[#allocation5 + $0xe0] sm:$0xff] }
 0x5f7   : > { %1907 = vmatpush.msra.mxu3 %v801_v29  ;;  %1856 = vmatpush.msra.mxu0 %v744_v52  ;;  %v3390_v29 = vld [vmem:[#allocation5 + $0x140] sm:$0xff]  ;;  %v3423_v52 = vld [vmem:[#allocation5 + $0x38] sm:$0xff] }
 0x5f8   : > { %1876 = vmatpush.msra.mxu1 %v760_v53  ;;  %v3406_v20 = vld [vmem:[#allocation5 + $0x100] sm:$0xff] }
 0x5f9   : > { %1908 = vmatpush.msra.mxu3 %v800_v5  ;;  %v3396_v5 = vld [vmem:[#allocation5 + $0x110] sm:$0xff] }
 0x5fa   : > { %v3366_v49 = vpop.eup %3365 }
 0x5fb   : > { %v1722_v4 = vmul.f32 %v3366_v49, %v4511_v48  ;;  %vm1727_vm3 = vweird.f32 %v3366_v49  ;;  %1909 = vmatpush.msra.mxu3 %v799_v15  ;;  %v796_v48 = vld [vmem:[#allocation14 + $0x1a0] sm:$0xff]  ;;  %v3401_v15 = vld [vmem:[#allocation5 + $0xd8] sm:$0xff] }
 0x5fc   : > { %vm1728_vm5 = vmor %vm1726_vm4, %vm1727_vm3 }
 0x5fd   : > { %v1723_v13 = vsub.f32 1.0, %v1722_v4  ;;  %1910 = vmatpush.msra.mxu3 %v798_v23  ;;  %v3394_v4 = vld [vmem:[#allocation5 + $0x160] sm:$0xff]  ;;  %v3408_v23 = vld [vmem:[#allocation5 + $0xb0] sm:$0xff] }
 0x5ff   : > { %v1724_v18 = vmul.f32 %v3366_v49, %v1723_v13  ;;  %1911 = vmatpush.msra.mxu3 %v797_v10  ;;  %v3399_v13 = vld [vmem:[#allocation5 + $0xf8] sm:$0xff]  ;;  %v3420_v10 = vld [vmem:[#allocation5 + $0x50] sm:$0xff] }
 0x601   : > { %v1725_v28 = vadd.f32 %v3366_v49, %v1724_v18  ;;  %1912 = vmatpush.msra.mxu3 %v796_v48  ;;  %v3405_v18 = vld [vmem:[#allocation5 + $0xc8] sm:$0xff]  ;;  %v3422_v48 = vld [vmem:[#allocation5 + $0x30] sm:$0xff] }
 0x603   : > { %v1729_v33 = vsel %vm1728_vm5, %v3366_v49, %v1725_v28  ;;  %1913 = vmatpush.msra.mxu3 %v795_v41  ;;  %v3391_v49 = vld [vmem:[#allocation5 + $0x178] sm:$0xff]  ;;  %v3424_v41 = vld [vmem:[#allocation5 + $0x70] sm:$0xff] }
 0x604   : > { %v1734_v35 = vsel %vm1731_vm6, %v1733_v30, %v1729_v33  ;;  %v4522_v28 = vld [vmem:[%s4883_s21] sm:$0xf]  ;;  %v3414_v33 = vld [vmem:[#allocation5 + $0x80] sm:$0xff] }
 0x605   : > { %v1736_v39 = vmul.f32 %v1734_v35, %v4497_v1  ;;  %v780_v1 = vld [vmem:[#allocation14 + $0x120] sm:$0xff]  ;;  %1914 = vmatpush.msra.mxu3 %v794_v55  ;;  %v3411_v30 = vld [vmem:[#allocation5 + $0x98] sm:$0xff]  ;;  %v1747_v35 = vperm.slane %v4522_v28, 1  ;;  %v1748_v55 = vperm.slane %v4522_v28, 2 }
 0x606   : > { %1892 = vmatpush.msra.mxu2 %v780_v1  ;;  %v3421_v1 = vld [vmem:[#allocation5 + $0x88] sm:$0xff] }
 0x607   : > { %v1740_v46 = vmul.f32 %v3342_v34, %v1736_v39  ;;  %1915 = vmatpush.msra.mxu3 %v793_v12  ;;  %v1746_v34 = vperm.slane %v4522_v28, 0  ;;  %v3415_v39 = vld [vmem:[#allocation5 + $0xb8] sm:$0xff]  ;;  %v3428_v12 = vld [vmem:[#allocation5] sm:$0xff] }
 0x608   : > { %1893 = vmatpush.msra.mxu2 %v779_v51 }
 0x609   : > { %v1744_v45 = vadd.f32 %v3343_v44, %v1740_v46  ;;  %1916 = vmatpush.msra.mxu3 %v792_v62  ;;  %v3416_v44 = vld [vmem:[#allocation5 + $0x60] sm:$0xff]  ;;  %v3417_v46 = vld [vmem:[#allocation5 + $0x68] sm:$0xff] }
 0x60a   : > { %1894 = vmatpush.msra.mxu2 %v778_v54  ;;  %v3425_v54 = vld [vmem:[#allocation5 + $0x18] sm:$0xff] }
 0x60b   : > { %1770 = vmatmul.f32.vlgmr.msrb.gmra.mxu0 %v1744_v45  ;;  %1790 = vmatmul.f32.vlgmr.msrb.gmra.mxu1 %v1744_v45 }
 0x60c   : > { %1810 = vmatmul.f32.vlgmr.msrb.gmra.mxu2 %v1744_v45  ;;  %1830 = vmatmul.f32.vlgmr.msrb.gmra.mxu3 %v1744_v45  ;;  %v3418_v45 = vld [vmem:[#allocation5 + $0xa0] sm:$0xff] }
 0x60d   : > { %1963 = vmatpush.msrb.mxu0 %v3385_v57  ;;  %1983 = vmatpush.msrb.mxu1 %v3386_v58  ;;  %v1749_v57 = vperm.slane %v4522_v28, 3  ;;  %v3426_v58 = vld [vmem:[#allocation5 + $0x20] sm:$0xff] }
 0x60e   : > { %1895 = vmatpush.msra.mxu2 %v777_v27  ;;  %v3427_v27 = vld [vmem:[#allocation5 + $0x58] sm:$0xff] }
 0x60f   : > { %1964 = vmatpush.msrb.mxu0 %v3387_v59  ;;  %1984 = vmatpush.msrb.mxu1 %v3388_v31 }
 0x610   : > { %1896 = vmatpush.msra.mxu2 %v776_v60  ;;  %v3429_v60 = vld [vmem:[#allocation5 + $0x8] sm:$0xff] }
 0x611   : > { %1965 = vmatpush.msrb.mxu0 %v3389_v0  ;;  %1985 = vmatpush.msrb.mxu1 %v3390_v29  ;;  %v3430_v29 = vld [vmem:[#allocation5 + $0x40] sm:$0xff] }
 0x612   : > { %2003 = vmatpush.msrb.mxu2 %v3391_v49 }
 0x613   : > { %1966 = vmatpush.msrb.mxu0 %v3392_v61  ;;  %1986 = vmatpush.msrb.mxu1 %v3393_v3  ;;  %v3431_v3 = vld [vmem:[#allocation5 + $0x28] sm:$0xff] }
 0x614   : > { %2004 = vmatpush.msrb.mxu2 %v3394_v4  ;;  %v3432_v4 = vld [vmem:[#allocation5 + $0x10] sm:$0xff] }
 0x615   : > { %1967 = vmatpush.msrb.mxu0 %v3395_v2  ;;  %1987 = vmatpush.msrb.mxu1 %v3396_v5  ;;  %v3344_v2 = vld [vmem:[%s4884_s0] ss:$0 sm:$0xff] }
 0x616   : > { %2005 = vmatpush.msrb.mxu2 %v3397_v7 }
 0x617   : > { %1968 = vmatpush.msrb.mxu0 %v3398_v11  ;;  %1988 = vmatpush.msrb.mxu1 %v3399_v13 }
 0x618   : > { %2006 = vmatpush.msrb.mxu2 %v3400_v14 }
 0x619   : > { %1969 = vmatpush.msrb.mxu0 %v3401_v15  ;;  %1989 = vmatpush.msrb.mxu1 %v3402_v16 }
 0x61a   : > { %2007 = vmatpush.msrb.mxu2 %v3403_v6 }
 0x61b   : > { %1970 = vmatpush.msrb.mxu0 %v3404_v17  ;;  %1990 = vmatpush.msrb.mxu1 %v3405_v18 }
 0x61c   : > { %2008 = vmatpush.msrb.mxu2 %v3406_v20  ;;  %v3433_v20 = vld [vmem:[#allocation2] sm:$0xff] }
 0x61d   : > { %1971 = vmatpush.msrb.mxu0 %v3407_v21  ;;  %1991 = vmatpush.msrb.mxu1 %v3408_v23 }
 0x61e   : > { %2009 = vmatpush.msrb.mxu2 %v3409_v24 }
 0x61f   : > { %1972 = vmatpush.msrb.mxu0 %v3410_v26  ;;  %1992 = vmatpush.msrb.mxu1 %v3411_v30 }
 0x620   : > { %2010 = vmatpush.msrb.mxu2 %v3412_v32 }
 0x621   : > { %1973 = vmatpush.msrb.mxu0 %v3413_v8  ;;  %1993 = vmatpush.msrb.mxu1 %v3414_v33 }
 0x622   : > { %2011 = vmatpush.msrb.mxu2 %v3415_v39 }
 0x623   : > { %1974 = vmatpush.msrb.mxu0 %v3416_v44  ;;  %1994 = vmatpush.msrb.mxu1 %v3417_v46 }
 0x624   : > { %2012 = vmatpush.msrb.mxu2 %v3418_v45 }
 0x625   : > { %1975 = vmatpush.msrb.mxu0 %v3419_v47  ;;  %1995 = vmatpush.msrb.mxu1 %v3420_v10 }
 0x626   : > { %2013 = vmatpush.msrb.mxu2 %v3421_v1 }
 0x627   : > { %1976 = vmatpush.msrb.mxu0 %v3422_v48  ;;  %1996 = vmatpush.msrb.mxu1 %v3423_v52 }
 0x628   : > { %2014 = vmatpush.msrb.mxu2 %v3424_v41 }
 0x629   : > { %1977 = vmatpush.msrb.mxu0 %v3425_v54  ;;  %1997 = vmatpush.msrb.mxu1 %v3426_v58 }
 0x62a   : > { %2015 = vmatpush.msrb.mxu2 %v3427_v27 }
 0x62b   : > { %1978 = vmatpush.msrb.mxu0 %v3428_v12  ;;  %1998 = vmatpush.msrb.mxu1 %v3429_v60  ;;  %v3435_v60 = vld [vmem:[%s4849_s6] ss:$0 sm:$0xff] }
 0x62c   : > { %2016 = vmatpush.msrb.mxu2 %v3430_v29 }
 0x62e   : > { %2017 = vmatpush.msrb.mxu2 %v3431_v3 }
 0x630   : > { %2018 = vmatpush.msrb.mxu2 %v3432_v4 }
 0x688   : > { %v1771_v22 = vpop.f32.mrf.mxu0  ;;  %v1791_v40 = vpop.f32.mrf.mxu1 }
 0x689   : > { %v1772_v25 = vadd.f32 %v1771_v22, %v1746_v34  ;;  %v1792_v50 = vadd.f32 %v1791_v40, %v1747_v35 }
 0x68b   : > { %v1834_v53 = vmax.f32 %v1772_v25, 0.0  ;;  %v1835_v51 = vmax.f32 %v1792_v50, 0.0 }
 0x68d   : > { %1857 = vmatmul.f32.vlgmr.msra.gmra.mxu0 %v1834_v53  ;;  %1877 = vmatmul.f32.vlgmr.msra.gmra.mxu1 %v1835_v51 }
 0x68f   : > { %v1811_v59 = vpop.f32.mrf.mxu2  ;;  %v1831_v31 = vpop.f32.mrf.mxu3 }
 0x690   : > { %v1812_v62 = vadd.f32 %v1811_v59, %v1748_v55  ;;  %v1832_v0 = vadd.f32 %v1831_v31, %v1749_v57  ;;  %v3434_v59 = vld [vmem:[%s4848_s5] ss:$0 sm:$0xff] }
 0x692   : > { %v1836_v49 = vmax.f32 %v1812_v62, 0.0  ;;  %v1837_v61 = vmax.f32 %v1832_v0, 0.0 }
 0x694   : > { %1897 = vmatmul.f32.vlgmr.msra.gmra.mxu2 %v1836_v49  ;;  %1917 = vmatmul.f32.vlgmr.msra.gmra.mxu3 %v1837_v61 }
 0x70a   : > { %v1858_v5 = vpop.f32.mrf.mxu0  ;;  %v1878_v11 = vpop.f32.mrf.mxu1 }
 0x70b   : > { %v1859_v7 = vadd.f32 %v3344_v2, %v1858_v5 }
 0x70d   : > { %v1879_v13 = vadd.f32 %v1878_v11, %v1859_v7 }
 0x717   : > { %v1898_v14 = vpop.f32.mrf.mxu2  ;;  %v1918_v16 = vpop.f32.mrf.mxu3 }
 0x718   : > { %v1899_v15 = vadd.f32 %v1898_v14, %v1879_v13 }
 0x71a   : > { %v1919_v6 = vadd.f32 %v1918_v16, %v1899_v15 }
 0x71c   : > { %v1921_v17 = vmax.f32 %v1919_v6, 0.0 }
 0x71e   : > { %v1922_v18 = vadd.f32 %v1921_v17, %v4492_v63 }
 0x720   : > { %v4540_v21 = vadd.f32 %v3433_v20, %v1922_v18 }
 0x722   : > { %1924 = vadd.xlane.f32.xlu0 %v4540_v21 }
 0x795   : > { %v1925_v23 = vpop.xlane.xlu0 %1924 }
 0x796   : > { %v1926_v24 = vmul.f32 %v1925_v23, %v4218_v9 }
 0x798   : > { %v1927_v26 = vsub.f32 %v4540_v21, %v1926_v24 }
 0x79a   : > { %v1928_v30 = vmul.f32 %v1927_v26, %v1927_v26 }
 0x79c   : > { %1929 = vadd.xlane.f32.xlu2 %v1928_v30 }
 0x80f   : > { %v1930_v32 = vpop.xlane.xlu2 %1929 }
 0x810   : > { %v1931_v8 = vmul.f32 %v1930_v32, %v4226_v43 }
 0x812   : > { %3367 = vrsqrt.f32 %v1931_v8  ;;  %vm1939_vm7 = vcmp.eq.f32.partialorder %v1931_v8, inf  ;;  %v1942_v22 = vand.u32 2147483648, %v1931_v8  ;;  %vm1941_vm11 = vcmp.eq.f32.partialorder %v1931_v8, 0.0 }
 0x818   : > { %v3368_v33 = vpop.eup %3367 }
 0x819   : > { %v1933_v39 = vmul.f32 %v3368_v33, %v1931_v8 }
 0x81b   : > { %v1934_v44 = vmul.f32 %v3368_v33, %v1933_v39 }
 0x81d   : > { %v1935_v63 = vmul.f32 0.5, %v1934_v44 }
 0x81f   : > { %v1936_v46 = vsub.f32 1.5, %v1935_v63 }
 0x821   : > { %v1937_v45 = vmul.f32 %v3368_v33, %v1936_v46 }
 0x823   : > { %v1938_v47 = vmul.f32 %v1937_v45, %v1931_v8 }
 0x825   : > { %v1940_v40 = vsel %vm1939_vm7, %v1931_v8, %v1938_v47 }
 0x826   : > { %v1943_v10 = vsel %vm1941_vm11, %v1942_v22, %v1940_v40 }
 0x827   : > { %v1944_v25 = vadd.f32 1e-06, %v1943_v10 }
 0x829   : > { %3369 = vrcp.f32 %v1944_v25  ;;  %v1956_v52 = vand.u32 2147483648, %v1944_v25  ;;  %v1954_v51 = vand.u32 2147483647, %v1944_v25  ;;  %vm1950_vm13 = vweird.f32 %v1944_v25 }
 0x82b   : > { %v1957_v54 = vor.u32 1.1754944e-38, %v1956_v52  ;;  %vm1955_vm1 = vcmp.eq.f32.partialorder %v1954_v51, 8.507059e+37 }
 0x82f   : > { %v3370_v50 = vpop.eup %3369 }
 0x830   : > { %v1946_v1 = vmul.f32 %v3370_v50, %v1944_v25  ;;  %vm1951_vm12 = vweird.f32 %v3370_v50 }
 0x831   : > { %vm1952_vm14 = vmor %vm1950_vm13, %vm1951_vm12 }
 0x832   : > { %v1947_v48 = vsub.f32 1.0, %v1946_v1 }
 0x834   : > { %v1948_v53 = vmul.f32 %v3370_v50, %v1947_v48 }
 0x836   : > { %v1949_v41 = vadd.f32 %v3370_v50, %v1948_v53 }
 0x838   : > { %v1953_v58 = vsel %vm1952_vm14, %v3370_v50, %v1949_v41 }
 0x839   : > { %v1958_v27 = vsel %vm1955_vm1, %v1957_v54, %v1953_v58 }
 0x83a   : > { %v1960_v12 = vmul.f32 %v1958_v27, %v1927_v26 }
 0x83c   : > { %v1961_v31 = vmul.f32 %v3434_v59, %v1960_v12 }
 0x83e   : > { %v1962_v62 = vadd.f32 %v3435_v60, %v1961_v31 }
 0x840   : > { %1979 = vmatmul.f32.vlgmr.msrb.gmra.mxu0 %v1962_v62  ;;  %1999 = vmatmul.f32.vlgmr.msrb.gmra.mxu1 %v1962_v62 }
 0x841   : > { %2019 = vmatmul.f32.vlgmr.msrb.gmra.mxu2 %v1962_v62 }
 0x8bd   : > { %v1980_v0 = vpop.f32.mrf.mxu0  ;;  %v2000_v29 = vpop.f32.mrf.mxu1 }
 0x8be   : > { %v1981_v49 = vadd.f32 %v1980_v0, %v870_v37  ;;  %v2001_v61 = vadd.f32 %v2000_v29, %v871_v38 }
 0x8c0   : > { %2040 = vrot.lane.b32.xlu0 %v2001_v61, %s3960_s12  ;;  %2030 = vrot.lane.b32.xlu2 %v1981_v49, %s3960_s12  ;;  %v2055_v5 = vrot.slane %v1981_v49, 4  ;;  %v2079_v47 = vrot.slane %v2001_v61, 4 }
 0x8c1   : > { %2024 = vrot.lane.b32.xlu1 %v1981_v49, %s3959_s10 }
 0x8c4   : > { %v2020_v3 = vpop.f32.mrf.mxu2 }
 0x8c5   : > { %v4564_v4 = vadd.f32 %v2020_v3, %v872_v42 }
 0x8c7   : > { %v2167_v12 = vrot.slane %v4564_v4, 4 }
 0x8c8   : > { %2034 = vrot.lane.b32.xlu0 %v2001_v61, %s3959_s10  ;;  %2027 = vrot.lane.b32.xlu2 %v1981_v49, %s3958_s28 }
 0x8c9   : > { %2037 = vrot.lane.b32.xlu1 %v2001_v61, %s3958_s28 }
 0x8d0   : > { %2044 = vrot.lane.b32.xlu0 %v4564_v4, %s3959_s10  ;;  %2050 = vrot.lane.b32.xlu2 %v4564_v4, %s3960_s12 }
 0x8d1   : > { %2047 = vrot.lane.b32.xlu1 %v4564_v4, %s3958_s28 }
 0x91a   : > { %v2031_v37 = vpop.permute.xlu2 %2030 }
 0x91b   : > { %v2065_v36 = vrot.slane %v2031_v37, 4 }
 0x922   : > { %v2028_v38 = vpop.permute.xlu2 %2027 }
 0x923   : > { %v2053_v2 = vrot.slane %v2028_v38, 4  ;;  %v2056_v11 = vsel %vm967_vm8, %v2028_v38, %v2055_v5 }
 0x924   : > { %v2064_v14 = vperm.slane %v2056_v11, %v4267_v56 }
 0x925   : > { %v2054_v7 = vsel %vm967_vm8, %v2053_v2, %v1981_v49 }
 0x926   : > { %v2060_v13 = vperm.slane %v2054_v7, %v4267_v56  ;;  %v2115_v23 = vrot.slane %v2064_v14, 4 }
 0x928   : > { %v2103_v20 = vrot.slane %v2060_v13, 4 }
 0x92a   : > { %v2051_v1 = vpop.permute.xlu2 %2050 }
 0x92b   : > { %v2177_v59 = vrot.slane %v2051_v1, 4 }
 0x932   : > { %v2041_v42 = vpop.permute.xlu0 %2040 }
 0x933   : > { %v2025_v15 = vpop.permute.xlu1 %2024  ;;  %v2089_v30 = vrot.slane %v2041_v42, 4 }
 0x934   : > { %v2066_v16 = vsel %vm967_vm8, %v2065_v36, %v2025_v15  ;;  %v2067_v6 = vrot.slane %v2025_v15, 4 }
 0x935   : > { %v2072_v17 = vperm.slane %v2066_v16, %v4267_v56 }
 0x936   : > { %v2068_v18 = vsel %vm967_vm8, %v2031_v37, %v2067_v6 }
 0x937   : > { %v2076_v24 = vperm.slane %v2068_v18, %v4267_v56  ;;  %v2101_v26 = vrot.slane %v2072_v17, 4  ;;  %v2104_v8 = vsel %vm967_vm8, %v2072_v17, %v2103_v20 }
 0x938   : > { %v4587_v10 = vperm.slane %v2104_v8, %v4280_v19 }
 0x939   : > { %v2102_v32 = vsel %vm967_vm8, %v2101_v26, %v2060_v13  ;;  %v2113_v33 = vrot.slane %v2076_v24, 4  ;;  %v2116_v39 = vsel %vm967_vm8, %v2076_v24, %v2115_v23 }
 0x93a   : > { %v2035_v44 = vpop.permute.xlu0 %2034  ;;  %v2108_v40 = vperm.slane %v2102_v32, %v4280_v19  ;;  %v2124_v25 = vperm.slane %v2116_v39, %v4280_v19  ;;  %v2155_v29 = vrot.slane %v4587_v10, 4 }
 0x93b   : > { %v2114_v63 = vsel %vm967_vm8, %v2113_v33, %v2064_v14  ;;  %v2090_v46 = vsel %vm967_vm8, %v2089_v30, %v2035_v44  ;;  %v2091_v45 = vrot.slane %v2035_v44, 4  ;;  %v2038_v22 = vpop.permute.xlu1 %2037 }
 0x93c   : > { %v2096_v50 = vperm.slane %v2090_v46, %v4267_v56  ;;  %v2120_v48 = vperm.slane %v2114_v63, %v4280_v19  ;;  %v2077_v53 = vrot.slane %v2038_v22, 4  ;;  %v2080_v51 = vsel %vm967_vm8, %v2038_v22, %v2079_v47 }
 0x93d   : > { %v2092_v52 = vsel %vm967_vm8, %v2041_v42, %v2091_v45  ;;  %v2088_v58 = vperm.slane %v2080_v51, %v4267_v56  ;;  %v2151_v0 = vrot.slane %v2108_v40, 4  ;;  %v2163_v3 = vrot.slane %v2124_v25, 4 }
 0x93e   : > { %v2100_v41 = vperm.slane %v2092_v52, %v4267_v56  ;;  %v2125_v54 = vrot.slane %v2096_v50, 4  ;;  %v2078_v27 = vsel %vm967_vm8, %v2077_v53, %v2001_v61  ;;  %v2159_v49 = vrot.slane %v2120_v48, 4 }
 0x93f   : > { %v2084_v60 = vperm.slane %v2078_v27, %v4267_v56  ;;  %v2139_v62 = vrot.slane %v2088_v58, 4 }
 0x940   : > { %v2137_v31 = vrot.slane %v2100_v41, 4 }
 0x941   : > { %v2126_v37 = vsel %vm967_vm8, %v2125_v54, %v2084_v60  ;;  %v2127_v38 = vrot.slane %v2084_v60, 4  ;;  %v2140_v5 = vsel %vm967_vm8, %v2100_v41, %v2139_v62 }
 0x942   : > { %v2138_v2 = vsel %vm967_vm8, %v2137_v31, %v2088_v58  ;;  %v2045_v61 = vpop.permute.xlu0 %2044  ;;  %v2132_v7 = vperm.slane %v2126_v37, %v4280_v19  ;;  %v2148_v36 = vperm.slane %v2140_v5, %v4280_v19 }
 0x943   : > { %v2144_v11 = vperm.slane %v2138_v2, %v4280_v19  ;;  %v2178_v42 = vsel %vm967_vm8, %v2177_v59, %v2045_v61  ;;  %v2048_v13 = vpop.permute.xlu1 %2047  ;;  %v2128_v14 = vsel %vm967_vm8, %v2096_v50, %v2127_v38  ;;  %v2179_v15 = vrot.slane %v2045_v61, 4 }
 0x944   : > { %v2184_v16 = vperm.slane %v2178_v42, %v4267_v56  ;;  %v2165_v6 = vrot.slane %v2048_v13, 4  ;;  %v2136_v17 = vperm.slane %v2128_v14, %v4280_v19  ;;  %v2149_v18 = vrot.slane %v2132_v7, 4 }
 0x945   : > { %v2152_v20 = vsel %vm967_vm8, %v2132_v7, %v2151_v0  ;;  %v2157_v23 = vrot.slane %v2144_v11, 4  ;;  %v2160_v24 = vsel %vm967_vm8, %v2144_v11, %v2159_v49  ;;  %v2161_v26 = vrot.slane %v2148_v36, 4 }
 0x946   : > { %v2164_v30 = vsel %vm967_vm8, %v2148_v36, %v2163_v3  ;;  %v2235_v32 = vrot.slane %v2152_v20, 4  ;;  %v2150_v8 = vsel %vm967_vm8, %v2149_v18, %v2108_v40  ;;  %v2153_v33 = vrot.slane %v2136_v17, 4 }
 0x947   : > { %v2156_v39 = vsel %vm967_vm8, %v2136_v17, %v2155_v29  ;;  %v4616_v44 = vsel %vm967_vm8, %v2157_v23, %v2120_v48  ;;  %v4619_v63 = vsel %vm967_vm8, %v2161_v26, %v2124_v25  ;;  %v2223_v46 = vrot.slane %v2150_v8, 4 }
 0x948   : > { %v2233_v45 = vrot.slane %v2156_v39, 4  ;;  %v2247_v47 = vrot.slane %v4616_v44, 4  ;;  %v2245_v22 = vrot.slane %v4619_v63, 4  ;;  %v2257_v50 = vrot.slane %v2164_v30, 4 }
 0x949   : > { %v2259_v52 = vrot.slane %v2160_v24, 4  ;;  %v2180_v53 = vsel %vm967_vm8, %v2051_v1, %v2179_v15  ;;  %v2189_v41 = vrot.slane %v2184_v16, 4  ;;  %v2166_v48 = vsel %vm967_vm8, %v2165_v6, %v4564_v4 }
 0x94a   : > { %v2234_v40 = vsel %vm967_vm8, %v2233_v45, %v2152_v20  ;;  %v2188_v51 = vperm.slane %v2180_v53, %v4267_v56  ;;  %v2258_v25 = vsel %vm967_vm8, %v2257_v50, %v2160_v24  ;;  %v2168_v58 = vsel %vm967_vm8, %v2048_v13, %v2167_v12 }
 0x94b   : > { %v2260_v54 = vsel %vm967_vm8, %v2164_v30, %v2259_v52  ;;  %v2172_v27 = vperm.slane %v2166_v48, %v4267_v56  ;;  %v4633_v59 = vperm.slane %v2258_v25, %v4267_v56  ;;  %v2176_v31 = vperm.slane %v2168_v58, %v4267_v56 }
 0x94c   : > { %v2201_v1 = vrot.slane %v2188_v51, 4  ;;  %v2154_v60 = vsel %vm967_vm8, %v2153_v33, %v4587_v10  ;;  %v2236_v10 = vsel %vm967_vm8, %v2156_v39, %v2235_v32  ;;  %v2248_v5 = vsel %vm967_vm8, %v4619_v63, %v2247_v47 }
 0x94d   : > { %v2190_v62 = vsel %vm967_vm8, %v2189_v41, %v2172_v27  ;;  %v2191_v4 = vrot.slane %v2172_v27, 4  ;;  %v2221_v0 = vrot.slane %v2154_v60, 4  ;;  %v2224_v29 = vsel %vm967_vm8, %v2154_v60, %v2223_v46 }
 0x94e   : > { %v4641_v49 = vperm.slane %v2190_v62, %v4280_v19  ;;  %v2202_v12 = vsel %vm967_vm8, %v2201_v1, %v2176_v31  ;;  %v2203_v3 = vrot.slane %v2176_v31, 4  ;;  %v2232_v37 = vperm.slane %v2224_v29, %v4267_v56 }
 0x94f   : > { %v2192_v38 = vsel %vm967_vm8, %v2184_v16, %v2191_v4  ;;  %v2208_v2 = vperm.slane %v2202_v12, %v4280_v19  ;;  %v2244_v36 = vperm.slane %v2236_v10, %v4267_v56  ;;  %v2256_v14 = vperm.slane %v2248_v5, %v4267_v56 }
 0x950   : > { %v2200_v61 = vperm.slane %v2192_v38, %v4280_v19  ;;  %v2204_v7 = vsel %vm967_vm8, %v2188_v51, %v2203_v3  ;;  %v2213_v11 = vrot.slane %v4641_v49, 4  ;;  %v2268_v15 = vperm.slane %v2260_v54, %v4267_v56 }
 0x951   : > { %v2212_v42 = vperm.slane %v2204_v7, %v4280_v19  ;;  %v2217_v13 = vrot.slane %v2208_v2, 4  ;;  %v2281_v6 = vrot.slane %v2244_v36, 4  ;;  %v2283_v17 = vrot.slane %v2232_v37, 4 }
 0x952   : > { %v2215_v16 = vrot.slane %v2200_v61, 4  ;;  %v2222_v18 = vsel %vm967_vm8, %v2221_v0, %v2150_v8  ;;  %v2305_v24 = vrot.slane %v2268_v15, 4  ;;  %v2307_v26 = vrot.slane %v2256_v14, 4 }
 0x953   : > { %v2218_v20 = vsel %vm967_vm8, 0.0, %v2217_v13  ;;  %v2219_v23 = vrot.slane %v2212_v42, 4  ;;  %v2282_v32 = vsel %vm967_vm8, %v2281_v6, %v2232_v37  ;;  %v2284_v33 = vsel %vm967_vm8, %v2244_v36, %v2283_v17 }
 0x954   : > { %v2216_v30 = vsel %vm967_vm8, 0.0, %v2215_v16  ;;  %v2228_v39 = vperm.slane %v2222_v18, %v4267_v56  ;;  %v2288_v8 = vperm.slane %v2282_v32, %v4280_v19  ;;  %v2306_v53 = vsel %vm967_vm8, %v2305_v24, %v2256_v14 }
 0x955   : > { %v2220_v46 = vsel %vm967_vm8, 0.0, %v2219_v23  ;;  %v2338_v45 = vrot.slane %v2216_v30, 4  ;;  %v2344_v47 = vsel %vm967_vm8, %v2219_v23, %v2208_v2  ;;  %v2292_v51 = vperm.slane %v2284_v33, %v4280_v19 }
 0x956   : > { %v4667_v50 = vperm.slane %v2344_v47, %v4267_v56  ;;  %v2349_v52 = vrot.slane %v2220_v46, 4  ;;  %v2312_v41 = vperm.slane %v2306_v53, %v4280_v19  ;;  %v2327_v48 = vrot.slane %v2288_v8, 4 }
 0x957   : > { %v2308_v25 = vsel %vm967_vm8, %v2268_v15, %v2307_v26  ;;  %v2240_v54 = vperm.slane %v2234_v40, %v4267_v56  ;;  %v2331_v1 = vrot.slane %v2292_v51, 4  ;;  %v2246_v31 = vsel %vm967_vm8, %v2245_v22, %v4616_v44 }
 0x958   : > { %v2350_v58 = vsel %vm967_vm8, %v2349_v52, %v2218_v20  ;;  %v2316_v27 = vperm.slane %v2308_v25, %v4280_v19  ;;  %v2328_v60 = vsel %vm967_vm8, %v2312_v41, %v2327_v48  ;;  %v2325_v62 = vrot.slane %v2312_v41, 4 }
 0x959   : > { %v2252_v4 = vperm.slane %v2246_v31, %v4267_v56  ;;  %v2269_v0 = vrot.slane %v2240_v54, 4  ;;  %3185 = vmatpush.xpose.msk.msra.mxu0 %vm1301_vm9, %v2328_v60  ;;  %v2293_v29 = vrot.slane %v4633_v59, 4  ;;  %v2271_v3 = vrot.slane %v2228_v39, 4  ;;  %v3437_v60 = vld [vmem:[#allocation13 + $0x1e0] sm:$0xff] }
 0x95a   : > { %v2332_v40 = vsel %vm967_vm8, %v2316_v27, %v2331_v1  ;;  %v2329_v12 = vrot.slane %v2316_v27, 4  ;;  %v2326_v37 = vsel %vm967_vm8, %v2325_v62, %v2288_v8  ;;  %v2214_v22 = vsel %vm967_vm8, 0.0, %v2213_v11  ;;  %v3438_v62 = vld [vmem:[#allocation13 + $0x1e8] sm:$0xff] }
 0x95b   : > { %3189 = vmatpush.xpose.msk.msra.mxu2 %vm1301_vm9, %v2332_v40  ;;  %v2270_v44 = vsel %vm967_vm8, %v2269_v0, %v2228_v39  ;;  %v2295_v63 = vrot.slane %v2252_v4, 4  ;;  %3183 = vmatpush.xpose.msk.msrb.mxu3 %vm1301_vm9, %v2326_v37  ;;  %v2294_v2 = vsel %vm967_vm8, %v2293_v29, %v2252_v4  ;;  %v2272_v5 = vsel %vm967_vm8, %v2240_v54, %v2271_v3  ;;  %v3439_v4 = vld [vmem:[#allocation13 + $0x1f0] sm:$0xff]  ;;  %v3441_v40 = vld [vmem:[#allocation13 + $0x1c0] sm:$0xff]  ;;  %v3442_v29 = vld [vmem:[#allocation13 + $0x1c8] sm:$0xff] }
 0x95c   : > { %v2276_v38 = vperm.slane %v2270_v44, %v4280_v19  ;;  %v2330_v10 = vsel %vm967_vm8, %v2329_v12, %v2292_v51  ;;  %v2300_v61 = vperm.slane %v2294_v2, %v4280_v19  ;;  %v2280_v7 = vperm.slane %v2272_v5, %v4280_v19  ;;  %v3440_v0 = vld [vmem:[#allocation8 + $0x70] sm:$0xff]  ;;  %v3444_v3 = vld [vmem:[#allocation8 + $0x68] sm:$0xff]  ;;  %v3452_v5 = vld [vmem:[#allocation8 + $0x58] sm:$0xff] }
 0x95d   : > { %3187 = vmatpush.xpose.msk.msra.mxu1 %vm1301_vm9, %v2330_v10  ;;  %v2296_v36 = vsel %vm967_vm8, %v4633_v59, %v2295_v63  ;;  %v2333_v11 = vsel %vm967_vm8, %v2215_v16, %v4641_v49  ;;  %v2339_v15 = vsel %vm967_vm8, %v2338_v45, %v2214_v22  ;;  %v2354_v20 = vperm.slane %v2350_v58, %v4267_v56  ;;  %v3443_v12 = vld [vmem:[#allocation13 + $0x1d0] sm:$0xff]  ;;  %v3445_v37 = vld [vmem:[#allocation13 + $0x1a0] sm:$0xff]  ;;  %v3446_v44 = vld [vmem:[#allocation13 + $0x1a8] sm:$0xff] }
 0x95e   : > { %v2319_v42 = vrot.slane %v2276_v38, 4  ;;  %v2304_v13 = vperm.slane %v2296_v36, %v4280_v19  ;;  %v2337_v14 = vperm.slane %v2333_v11, %v4267_v56  ;;  %v2317_v6 = vrot.slane %v2300_v61, 4  ;;  %v3447_v63 = vld [vmem:[#allocation13 + $0x1b0] sm:$0xff]  ;;  %v3448_v22 = vld [vmem:[#allocation8 + $0x60] sm:$0xff]  ;;  %v3450_v2 = vld [vmem:[#allocation13 + $0x188] sm:$0xff] }
 0x95f   : > { %v2323_v17 = vrot.slane %v2280_v7, 4  ;;  %v2343_v18 = vperm.slane %v2339_v15, %v4267_v56  ;;  %v2369_v26 = vrot.slane %v4667_v50, 4  ;;  %v2367_v32 = vrot.slane %v2354_v20, 4  ;;  %v3451_v10 = vld [vmem:[#allocation13 + $0x190] sm:$0xff]  ;;  %v3460_v15 = vld [vmem:[#allocation8 + $0x48] sm:$0xff] }
 0x960   : > { %v2320_v23 = vsel %vm967_vm8, %v2300_v61, %v2319_v42  ;;  %v2321_v24 = vrot.slane %v2304_v13, 4  ;;  %v2357_v59 = vrot.slane %v2337_v14, 4  ;;  %v2318_v49 = vsel %vm967_vm8, %v2317_v6, %v2276_v38  ;;  %v3449_v38 = vld [vmem:[#allocation13 + $0x180] sm:$0xff]  ;;  %v3455_v36 = vld [vmem:[#allocation13 + $0x170] sm:$0xff] }
 0x961   : > { %3186 = vmatmul.msk.f32.vlgmr.msra.gmra.mxu0 %vm1301_vm9, %v2320_v23  ;;  %v2324_v16 = vsel %vm967_vm8, %v2304_v13, %v2323_v17  ;;  %v2355_v30 = vrot.slane %v2343_v18, 4  ;;  %3184 = vmatmul.msk.f32.vlgmr.msrb.gmra.mxu3 %vm1301_vm9, %v2318_v49  ;;  %v2370_v46 = vsel %vm967_vm8, %v2354_v20, %v2369_v26  ;;  %v2368_v52 = vsel %vm967_vm8, %v2367_v32, %v4667_v50  ;;  %v3436_v50 = vld [vmem:[#allocation8 + $0x78] sm:$0xff]  ;;  %v3453_v61 = vld [vmem:[#allocation13 + $0x160] sm:$0xff]  ;;  %v3456_v11 = vld [vmem:[#allocation8 + $0x50] sm:$0xff] }
 0x962   : > { %3190 = vmatmul.msk.f32.vlgmr.msra.gmra.mxu2 %vm1301_vm9, %v2324_v16  ;;  %v2322_v33 = vsel %vm967_vm8, %v2321_v24, %v2280_v7  ;;  %v2358_v39 = vsel %vm967_vm8, %v2343_v18, %v2357_v59  ;;  %v2378_v47 = vperm.slane %v2370_v46, %v4280_v19  ;;  %v2374_v51 = vperm.slane %v2368_v52, %v4280_v19  ;;  %v3454_v7 = vld [vmem:[#allocation13 + $0x168] sm:$0xff]  ;;  %v3457_v42 = vld [vmem:[#allocation13 + $0x140] sm:$0xff]  ;;  %v3463_v18 = vld [vmem:[#allocation13 + $0x130] sm:$0xff] }
 0x963   : > { %3188 = vmatmul.msk.f32.vlgmr.msra.gmra.mxu1 %vm1301_vm9, %v2322_v33  ;;  %v2366_v45 = vperm.slane %v2358_v39, %v4280_v19  ;;  %v2356_v8 = vsel %vm967_vm8, %v2355_v30, %v2337_v14  ;;  %v3458_v13 = vld [vmem:[#allocation13 + $0x148] sm:$0xff]  ;;  %v3459_v14 = vld [vmem:[#allocation13 + $0x150] sm:$0xff]  ;;  %v3461_v6 = vld [vmem:[#allocation13 + $0x120] sm:$0xff] }
 0x964   : > { %v2362_v53 = vperm.slane %v2356_v8, %v4280_v19  ;;  %v2383_v41 = vrot.slane %v2378_v47, 4  ;;  %v2379_v25 = vrot.slane %v2374_v51, 4  ;;  %v3462_v17 = vld [vmem:[#allocation13 + $0x128] sm:$0xff]  ;;  %v3464_v20 = vld [vmem:[#allocation8 + $0x40] sm:$0xff]  ;;  %v3467_v59 = vld [vmem:[#allocation13 + $0x110] sm:$0xff] }
 0x965   : > { %v2385_v48 = vrot.slane %v2366_v45, 4  ;;  %v3465_v23 = vld [vmem:[#allocation13 + $0x100] sm:$0xff]  ;;  %v3466_v24 = vld [vmem:[#allocation13 + $0x108] sm:$0xff]  ;;  %v3468_v26 = vld [vmem:[#allocation8 + $0x38] sm:$0xff] }
 0x966   : > { %v2381_v54 = vrot.slane %v2362_v53, 4  ;;  %v2384_v58 = vsel %vm967_vm8, %v2383_v41, %v2366_v45  ;;  %v2380_v1 = vsel %vm967_vm8, %v2379_v25, %v2362_v53  ;;  %v3469_v49 = vld [vmem:[#allocation13 + $0xe0] sm:$0xff]  ;;  %v3470_v16 = vld [vmem:[#allocation13 + $0xe8] sm:$0xff]  ;;  %v3471_v30 = vld [vmem:[#allocation13 + $0xf0] sm:$0xff] }
 0x967   : > { %v2386_v27 = vsel %vm967_vm8, %v2378_v47, %v2385_v48  ;;  %2604 = vmatpush.msrb.mxu1 %v2384_v58  ;;  %2558 = vmatpush.msra.mxu3 %v2380_v1  ;;  %v3472_v32 = vld [vmem:[#allocation8 + $0x30] sm:$0xff]  ;;  %v3473_v33 = vld [vmem:[#allocation13 + $0xc0] sm:$0xff]  ;;  %v3484_v25 = vld [vmem:[#allocation8 + $0x18] sm:$0xff] }
 0x968   : > { %2627 = vmatpush.msrb.mxu2 %v2386_v27  ;;  %v2382_v31 = vsel %vm967_vm8, %v2374_v51, %v2381_v54  ;;  %v3474_v39 = vld [vmem:[#allocation13 + $0xc8] sm:$0xff]  ;;  %v3475_v46 = vld [vmem:[#allocation13 + $0xd0] sm:$0xff]  ;;  %v3477_v47 = vld [vmem:[#allocation13 + $0xa0] sm:$0xff] }
 0x969   : > { %2581 = vmatpush.msrb.mxu0 %v2382_v31  ;;  %2757 = vmatpush.msrb.mxu3 %v3436_v50  ;;  %v3476_v45 = vld [vmem:[#allocation8 + $0x28] sm:$0xff]  ;;  %v3479_v52 = vld [vmem:[#allocation13 + $0xb0] sm:$0xff]  ;;  %v3480_v53 = vld [vmem:[#allocation8 + $0x20] sm:$0xff] }
 0x96a   : > { %2838 = vmatpush.msra.mxu1 %v3438_v62  ;;  %2858 = vmatpush.msra.mxu2 %v3439_v4  ;;  %v3478_v8 = vld [vmem:[#allocation13 + $0xa8] sm:$0xff]  ;;  %v3481_v51 = vld [vmem:[#allocation13 + $0x80] sm:$0xff]  ;;  %v3483_v48 = vld [vmem:[#allocation13 + $0x90] sm:$0xff] }
 0x96b   : > { %2818 = vmatpush.msra.mxu0 %v3437_v60  ;;  %2758 = vmatpush.msrb.mxu3 %v3440_v0  ;;  %v3482_v41 = vld [vmem:[#allocation13 + $0x88] sm:$0xff]  ;;  %v3485_v54 = vld [vmem:[#allocation13 + $0x60] sm:$0xff]  ;;  %v3487_v27 = vld [vmem:[#allocation13 + $0x70] sm:$0xff] }
 0x96c   : > { %2839 = vmatpush.msra.mxu1 %v3442_v29  ;;  %2859 = vmatpush.msra.mxu2 %v3443_v12  ;;  %v3486_v58 = vld [vmem:[#allocation13 + $0x68] sm:$0xff]  ;;  %v3489_v31 = vld [vmem:[#allocation13 + $0x40] sm:$0xff]  ;;  %v3491_v60 = vld [vmem:[#allocation13 + $0x50] sm:$0xff] }
 0x96d   : > { %2819 = vmatpush.msra.mxu0 %v3441_v40  ;;  %2759 = vmatpush.msrb.mxu3 %v3444_v3  ;;  %v3488_v1 = vld [vmem:[#allocation8 + $0x10] sm:$0xff]  ;;  %v3492_v62 = vld [vmem:[#allocation8 + $0x8] sm:$0xff]  ;;  %v3496_v29 = vld [vmem:[#allocation8] sm:$0xff] }
 0x96e   : > { %2840 = vmatpush.msra.mxu1 %v3446_v44  ;;  %2860 = vmatpush.msra.mxu2 %v3447_v63  ;;  %v3490_v50 = vld [vmem:[#allocation13 + $0x48] sm:$0xff]  ;;  %v3493_v4 = vld [vmem:[#allocation13 + $0x20] sm:$0xff]  ;;  %v3495_v40 = vld [vmem:[#allocation13 + $0x30] sm:$0xff] }
 0x96f   : > { %2820 = vmatpush.msra.mxu0 %v3445_v37  ;;  %2760 = vmatpush.msrb.mxu3 %v3448_v22  ;;  %v3494_v0 = vld [vmem:[#allocation13 + $0x28] sm:$0xff]  ;;  %v3497_v12 = vld [vmem:[#allocation13] sm:$0xff]  ;;  %v3499_v37 = vld [vmem:[#allocation13 + $0x10] sm:$0xff] }
 0x970   : > { %2841 = vmatpush.msra.mxu1 %v3450_v2  ;;  %2861 = vmatpush.msra.mxu2 %v3451_v10  ;;  %v3498_v3 = vld [vmem:[#allocation13 + $0x8] sm:$0xff] }
 0x971   : > { %2821 = vmatpush.msra.mxu0 %v3449_v38  ;;  %2761 = vmatpush.msrb.mxu3 %v3452_v5 }
 0x972   : > { %2842 = vmatpush.msra.mxu1 %v3454_v7  ;;  %2862 = vmatpush.msra.mxu2 %v3455_v36 }
 0x973   : > { %2822 = vmatpush.msra.mxu0 %v3453_v61  ;;  %2762 = vmatpush.msrb.mxu3 %v3456_v11 }
 0x974   : > { %2843 = vmatpush.msra.mxu1 %v3458_v13  ;;  %2863 = vmatpush.msra.mxu2 %v3459_v14 }
 0x975   : > { %2823 = vmatpush.msra.mxu0 %v3457_v42  ;;  %2763 = vmatpush.msrb.mxu3 %v3460_v15 }
 0x976   : > { %2844 = vmatpush.msra.mxu1 %v3462_v17  ;;  %2864 = vmatpush.msra.mxu2 %v3463_v18 }
 0x977   : > { %2824 = vmatpush.msra.mxu0 %v3461_v6  ;;  %2764 = vmatpush.msrb.mxu3 %v3464_v20 }
 0x978   : > { %2845 = vmatpush.msra.mxu1 %v3466_v24  ;;  %2865 = vmatpush.msra.mxu2 %v3467_v59 }
 0x979   : > { %2825 = vmatpush.msra.mxu0 %v3465_v23  ;;  %2765 = vmatpush.msrb.mxu3 %v3468_v26 }
 0x97a   : > { %2846 = vmatpush.msra.mxu1 %v3470_v16  ;;  %2866 = vmatpush.msra.mxu2 %v3471_v30 }
 0x97b   : > { %2826 = vmatpush.msra.mxu0 %v3469_v49  ;;  %2766 = vmatpush.msrb.mxu3 %v3472_v32 }
 0x97c   : > { %2847 = vmatpush.msra.mxu1 %v3474_v39  ;;  %2867 = vmatpush.msra.mxu2 %v3475_v46 }
 0x97d   : > { %2827 = vmatpush.msra.mxu0 %v3473_v33  ;;  %2767 = vmatpush.msrb.mxu3 %v3476_v45 }
 0x97e   : > { %2848 = vmatpush.msra.mxu1 %v3478_v8  ;;  %2868 = vmatpush.msra.mxu2 %v3479_v52 }
 0x97f   : > { %2828 = vmatpush.msra.mxu0 %v3477_v47  ;;  %2768 = vmatpush.msrb.mxu3 %v3480_v53 }
 0x980   : > { %2849 = vmatpush.msra.mxu1 %v3482_v41  ;;  %2869 = vmatpush.msra.mxu2 %v3483_v48 }
 0x981   : > { %2829 = vmatpush.msra.mxu0 %v3481_v51  ;;  %2769 = vmatpush.msrb.mxu3 %v3484_v25 }
 0x982   : > { %2850 = vmatpush.msra.mxu1 %v3486_v58  ;;  %2870 = vmatpush.msra.mxu2 %v3487_v27 }
 0x983   : > { %2830 = vmatpush.msra.mxu0 %v3485_v54  ;;  %2770 = vmatpush.msrb.mxu3 %v3488_v1 }
 0x984   : > { %2851 = vmatpush.msra.mxu1 %v3490_v50  ;;  %2871 = vmatpush.msra.mxu2 %v3491_v60 }
 0x985   : > { %2831 = vmatpush.msra.mxu0 %v3489_v31  ;;  %2771 = vmatpush.msrb.mxu3 %v3492_v62 }
 0x986   : > { %2852 = vmatpush.msra.mxu1 %v3494_v0  ;;  %2872 = vmatpush.msra.mxu2 %v3495_v40  ;;  %v3500_v0 = vld [vmem:[#allocation13 + $0x1f8] sm:$0xff] }
 0x987   : > { %2832 = vmatpush.msra.mxu0 %v3493_v4  ;;  %2772 = vmatpush.msrb.mxu3 %v3496_v29  ;;  %v3501_v40 = vld [vmem:[#allocation14 + $0x78] sm:$0xff] }
 0x988   : > { %2853 = vmatpush.msra.mxu1 %v3498_v3  ;;  %2873 = vmatpush.msra.mxu2 %v3499_v37  ;;  %v3502_v29 = vld [vmem:[#allocation14 + $0xf8] sm:$0xff]  ;;  %v3505_v37 = vld [vmem:[#allocation14 + $0x70] sm:$0xff] }
 0x989   : > { %2833 = vmatpush.msra.mxu0 %v3497_v12  ;;  %v3503_v12 = vld [vmem:[#allocation14 + $0x178] sm:$0xff] }
 0x98a   : > { %v3504_v3 = vld [vmem:[#allocation13 + $0x1d8] sm:$0xff] }
 0x9de   : > { %v2436_v44 = vpop.f32.mrf.mxu0 }
 0x9df   : > { %v2492_v22 = vmul.f32 0.088388346, %v2436_v44  ;;  %v3506_v44 = vld [vmem:[#allocation14 + $0xf0] sm:$0xff] }
 0x9e0   : > { %v2462_v63 = vpop.f32.mrf.mxu1 }
 0x9e1   : > { %v2493_v38 = vmul.f32 0.088388346, %v2462_v63  ;;  %v2496_v7 = vsel %vm1410_vm10, %v2492_v22, -inf  ;;  %v3507_v63 = vld [vmem:[#allocation14 + $0x170] sm:$0xff] }
 0x9e3   : > { %v2497_v36 = vsel %vm1410_vm10, %v2493_v38, -inf }
 0x9e4   : > { %v2410_v2 = vpop.f32.mrf.mxu3 }
 0x9e5   : > { %v2488_v10 = vpop.f32.mrf.mxu2  ;;  %v2491_v5 = vmul.f32 0.088388346, %v2410_v2  ;;  %v3510_v2 = vld [vmem:[#allocation14 + $0xe8] sm:$0xff] }
 0x9e6   : > { %v2494_v61 = vmul.f32 0.088388346, %v2488_v10  ;;  %v3511_v10 = vld [vmem:[#allocation14 + $0x168] sm:$0xff] }
 0x9e7   : > { %v2495_v11 = vsel %vm1410_vm10, %v2491_v5, -inf }
 0x9e8   : > { %v2498_v42 = vsel %vm1410_vm10, %v2494_v61, -inf  ;;  %v2499_v13 = vmax.f32 %v2495_v11, %v2496_v7  ;;  %v3514_v7 = vld [vmem:[#allocation14 + $0xe0] sm:$0xff]  ;;  %v3516_v11 = vld [vmem:[#allocation13 + $0x178] sm:$0xff] }
 0x9e9   : > { %v2500_v14 = vmax.f32 %v2497_v36, %v2498_v42  ;;  %v3515_v36 = vld [vmem:[#allocation14 + $0x160] sm:$0xff]  ;;  %v3517_v42 = vld [vmem:[#allocation14 + $0x58] sm:$0xff] }
 0x9eb   : > { %v2501_v15 = vmax.f32 %v2499_v13, %v2500_v14  ;;  %v3518_v13 = vld [vmem:[#allocation14 + $0xd8] sm:$0xff] }
 0x9ec   : > { %v3519_v14 = vld [vmem:[#allocation14 + $0x158] sm:$0xff] }
 0x9ed   : > { %v2502_v6 = vsub.f32 %v2491_v5, %v2501_v15  ;;  %v2503_v17 = vsub.f32 %v2492_v22, %v2501_v15  ;;  %v2504_v18 = vsub.f32 %v2493_v38, %v2501_v15  ;;  %v2505_v20 = vsub.f32 %v2494_v61, %v2501_v15  ;;  %v3508_v22 = vld [vmem:[#allocation13 + $0x1b8] sm:$0xff]  ;;  %v3509_v38 = vld [vmem:[#allocation14 + $0x68] sm:$0xff]  ;;  %v3513_v61 = vld [vmem:[#allocation14 + $0x60] sm:$0xff] }
 0x9ee   : > { %v3512_v5 = vld [vmem:[#allocation13 + $0x198] sm:$0xff] }
 0x9ef   : > { %v2506_v23 = vmul.f32 1.442695, %v2502_v6  ;;  %v2508_v24 = vmul.f32 1.442695, %v2503_v17  ;;  %v2510_v59 = vmul.f32 1.442695, %v2504_v18 }
 0x9f0   : > { %v2512_v26 = vmul.f32 1.442695, %v2505_v20  ;;  %v3520_v15 = vld [vmem:[#allocation13 + $0x158] sm:$0xff]  ;;  %v3521_v6 = vld [vmem:[#allocation14 + $0x50] sm:$0xff] }
 0x9f1   : > { %3371 = vpow2.f32 %v2506_v23  ;;  %v3522_v17 = vld [vmem:[#allocation14 + $0xd0] sm:$0xff]  ;;  %v3524_v20 = vld [vmem:[#allocation13 + $0x138] sm:$0xff]  ;;  %v3525_v23 = vld [vmem:[#allocation14 + $0x48] sm:$0xff] }
 0x9f2   : > { %3373 = vpow2.f32 %v2508_v24  ;;  %v3523_v18 = vld [vmem:[#allocation14 + $0x150] sm:$0xff]  ;;  %v3526_v24 = vld [vmem:[#allocation14 + $0xc8] sm:$0xff] }
 0x9f3   : > { %3375 = vpow2.f32 %v2510_v59  ;;  %v3527_v59 = vld [vmem:[#allocation14 + $0x148] sm:$0xff] }
 0x9f4   : > { %3377 = vpow2.f32 %v2512_v26  ;;  %v3528_v26 = vld [vmem:[#allocation13 + $0x118] sm:$0xff] }
 0x9f7   : > { %v3372_v49 = vpop.eup %3371 }
 0x9f8   : > { %v3374_v16 = vpop.eup %3373  ;;  %v2514_v30 = vsel %vm1410_vm10, %v3372_v49, 0.0 }
 0x9f9   : > { %v3376_v32 = vpop.eup %3375  ;;  %v2515_v33 = vsel %vm1410_vm10, %v3374_v16, 0.0 }
 0x9fa   : > { %v3378_v39 = vpop.eup %3377  ;;  %v2516_v46 = vadd.f32 %v2515_v33, %v2514_v30  ;;  %v2517_v45 = vsel %vm1410_vm10, %v3376_v32, 0.0  ;;  %v3531_v30 = vld [vmem:[#allocation14 + $0x140] sm:$0xff]  ;;  %v3533_v33 = vld [vmem:[#allocation14 + $0x38] sm:$0xff] }
 0x9fb   : > { %v2519_v8 = vsel %vm1410_vm10, %v3378_v39, 0.0 }
 0x9fc   : > { %v2518_v47 = vadd.f32 %v2517_v45, %v2516_v46  ;;  %v3535_v46 = vld [vmem:[#allocation14 + $0x138] sm:$0xff] }
 0x9fd   : > { %v3536_v45 = vld [vmem:[#allocation13 + $0xd8] sm:$0xff] }
 0x9fe   : > { %v2520_v52 = vadd.f32 %v2519_v8, %v2518_v47  ;;  %v3537_v47 = vld [vmem:[#allocation14 + $0x30] sm:$0xff] }
 0x9ff   : > { %v3538_v8 = vld [vmem:[#allocation14 + $0xb0] sm:$0xff] }
 0xa00   : > { %3379 = vrcp.f32 %v2520_v52  ;;  %v2532_v48 = vand.u32 2147483648, %v2520_v52  ;;  %v2530_v54 = vand.u32 2147483647, %v2520_v52  ;;  %vm2526_vm3 = vweird.f32 %v2520_v52 }
 0xa02   : > { %v2533_v27 = vor.u32 1.1754944e-38, %v2532_v48  ;;  %vm2531_vm5 = vcmp.eq.f32.partialorder %v2530_v54, 8.507059e+37  ;;  %v3543_v48 = vld [vmem:[#allocation14 + $0x128] sm:$0xff]  ;;  %v3545_v54 = vld [vmem:[#allocation14 + $0x20] sm:$0xff] }
 0xa06   : > { %v3380_v53 = vpop.eup %3379 }
 0xa07   : > { %v2522_v51 = vmul.f32 %v3380_v53, %v2520_v52  ;;  %vm2527_vm2 = vweird.f32 %v3380_v53  ;;  %v3539_v52 = vld [vmem:[#allocation14 + $0x130] sm:$0xff] }
 0xa08   : > { %vm2528_vm4 = vmor %vm2526_vm3, %vm2527_vm2 }
 0xa09   : > { %v2523_v41 = vsub.f32 1.0, %v2522_v51  ;;  %v3541_v51 = vld [vmem:[#allocation14 + $0x28] sm:$0xff] }
 0xa0b   : > { %v2524_v25 = vmul.f32 %v3380_v53, %v2523_v41  ;;  %v3542_v41 = vld [vmem:[#allocation14 + $0xa8] sm:$0xff] }
 0xa0d   : > { %v2525_v58 = vadd.f32 %v3380_v53, %v2524_v25  ;;  %v3544_v25 = vld [vmem:[#allocation13 + $0x98] sm:$0xff] }
 0xa0f   : > { %v2529_v1 = vsel %vm2528_vm4, %v3380_v53, %v2525_v58  ;;  %v3540_v53 = vld [vmem:[#allocation13 + $0xb8] sm:$0xff]  ;;  %v3546_v58 = vld [vmem:[#allocation14 + $0xa0] sm:$0xff] }
 0xa10   : > { %v2534_v31 = vsel %vm2531_vm5, %v2533_v27, %v2529_v1  ;;  %v3547_v27 = vld [vmem:[#allocation14 + $0x120] sm:$0xff]  ;;  %v3548_v1 = vld [vmem:[#allocation13 + $0x78] sm:$0xff] }
 0xa11   : > { %v2539_v50 = vmul.f32 %v3378_v39, %v2534_v31  ;;  %v2536_v60 = vmul.f32 %v3372_v49, %v2534_v31  ;;  %v2537_v62 = vmul.f32 %v3374_v16, %v2534_v31  ;;  %v2538_v4 = vmul.f32 %v3376_v32, %v2534_v31  ;;  %v3529_v49 = vld [vmem:[#allocation14 + $0x40] sm:$0xff]  ;;  %v3532_v32 = vld [vmem:[#allocation13 + $0xf8] sm:$0xff] }
 0xa12   : > { %v3530_v16 = vld [vmem:[#allocation14 + $0xc0] sm:$0xff]  ;;  %v3534_v39 = vld [vmem:[#allocation14 + $0xb8] sm:$0xff] }
 0xa13   : > { %3191 = vmatmul.msk.f32.vlgmr.msra.gmra.mxu3 %vm1410_vm10, %v2536_v60  ;;  %3192 = vmatmul.msk.f32.vlgmr.msrb.gmra.mxu0 %vm1410_vm10, %v2537_v62  ;;  %v3549_v31 = vld [vmem:[#allocation14 + $0x18] sm:$0xff] }
 0xa14   : > { %3193 = vmatmul.msk.f32.vlgmr.msrb.gmra.mxu1 %vm1410_vm10, %v2538_v4  ;;  %3194 = vmatmul.msk.f32.vlgmr.msrb.gmra.mxu2 %vm1410_vm10, %v2539_v50  ;;  %v3550_v50 = vld [vmem:[#allocation14 + $0x98] sm:$0xff]  ;;  %v3553_v4 = vld [vmem:[#allocation14 + $0x10] sm:$0xff] }
 0xa15   : > { %2878 = vmatpush.msra.mxu3 %v3500_v0  ;;  %2902 = vmatpush.msrb.mxu0 %v3501_v40  ;;  %v3551_v60 = vld [vmem:[#allocation14 + $0x118] sm:$0xff]  ;;  %v3554_v0 = vld [vmem:[#allocation14 + $0x90] sm:$0xff] }
 0xa16   : > { %2922 = vmatpush.msrb.mxu1 %v3502_v29  ;;  %2942 = vmatpush.msrb.mxu2 %v3503_v12  ;;  %v3552_v62 = vld [vmem:[#allocation13 + $0x58] sm:$0xff]  ;;  %v3555_v40 = vld [vmem:[#allocation14 + $0x110] sm:$0xff]  ;;  %v3557_v12 = vld [vmem:[#allocation14 + $0x8] sm:$0xff] }
 0xa17   : > { %2879 = vmatpush.msra.mxu3 %v3504_v3  ;;  %2903 = vmatpush.msrb.mxu0 %v3505_v37  ;;  %v3556_v29 = vld [vmem:[#allocation13 + $0x38] sm:$0xff]  ;;  %v3558_v3 = vld [vmem:[#allocation14 + $0x88] sm:$0xff] }
 0xa18   : > { %2923 = vmatpush.msrb.mxu1 %v3506_v44  ;;  %2943 = vmatpush.msrb.mxu2 %v3507_v63  ;;  %v3559_v37 = vld [vmem:[#allocation14 + $0x108] sm:$0xff]  ;;  %v3560_v44 = vld [vmem:[#allocation13 + $0x18] sm:$0xff]  ;;  %v3561_v63 = vld [vmem:[#allocation14] sm:$0xff] }
 0xa19   : > { %2880 = vmatpush.msra.mxu3 %v3508_v22  ;;  %2904 = vmatpush.msrb.mxu0 %v3509_v38  ;;  %v3562_v22 = vld [vmem:[#allocation14 + $0x80] sm:$0xff] }
 0xa1a   : > { %2924 = vmatpush.msrb.mxu1 %v3510_v2  ;;  %2944 = vmatpush.msrb.mxu2 %v3511_v10  ;;  %v3563_v38 = vld [vmem:[#allocation14 + $0x100] sm:$0xff] }
 0xa1b   : > { %2881 = vmatpush.msra.mxu3 %v3512_v5  ;;  %2905 = vmatpush.msrb.mxu0 %v3513_v61 }
 0xa1c   : > { %2925 = vmatpush.msrb.mxu1 %v3514_v7  ;;  %2945 = vmatpush.msrb.mxu2 %v3515_v36 }
 0xa1d   : > { %2882 = vmatpush.msra.mxu3 %v3516_v11  ;;  %2906 = vmatpush.msrb.mxu0 %v3517_v42 }
 0xa1e   : > { %2926 = vmatpush.msrb.mxu1 %v3518_v13  ;;  %2946 = vmatpush.msrb.mxu2 %v3519_v14 }
 0xa1f   : > { %2883 = vmatpush.msra.mxu3 %v3520_v15  ;;  %2907 = vmatpush.msrb.mxu0 %v3521_v6 }
 0xa20   : > { %2927 = vmatpush.msrb.mxu1 %v3522_v17  ;;  %2947 = vmatpush.msrb.mxu2 %v3523_v18 }
 0xa21   : > { %2884 = vmatpush.msra.mxu3 %v3524_v20  ;;  %2908 = vmatpush.msrb.mxu0 %v3525_v23 }
 0xa22   : > { %2928 = vmatpush.msrb.mxu1 %v3526_v24  ;;  %2948 = vmatpush.msrb.mxu2 %v3527_v59 }
 0xa23   : > { %2885 = vmatpush.msra.mxu3 %v3528_v26  ;;  %2909 = vmatpush.msrb.mxu0 %v3529_v49 }
 0xa24   : > { %2929 = vmatpush.msrb.mxu1 %v3530_v16  ;;  %2949 = vmatpush.msrb.mxu2 %v3531_v30 }
 0xa25   : > { %2886 = vmatpush.msra.mxu3 %v3532_v32  ;;  %2910 = vmatpush.msrb.mxu0 %v3533_v33 }
 0xa26   : > { %2930 = vmatpush.msrb.mxu1 %v3534_v39  ;;  %2950 = vmatpush.msrb.mxu2 %v3535_v46 }
 0xa27   : > { %2887 = vmatpush.msra.mxu3 %v3536_v45  ;;  %2911 = vmatpush.msrb.mxu0 %v3537_v47 }
 0xa28   : > { %2931 = vmatpush.msrb.mxu1 %v3538_v8  ;;  %2951 = vmatpush.msrb.mxu2 %v3539_v52 }
 0xa29   : > { %2888 = vmatpush.msra.mxu3 %v3540_v53  ;;  %2912 = vmatpush.msrb.mxu0 %v3541_v51 }
 0xa2a   : > { %2932 = vmatpush.msrb.mxu1 %v3542_v41  ;;  %2952 = vmatpush.msrb.mxu2 %v3543_v48 }
 0xa2b   : > { %2889 = vmatpush.msra.mxu3 %v3544_v25  ;;  %2913 = vmatpush.msrb.mxu0 %v3545_v54 }
 0xa2c   : > { %2933 = vmatpush.msrb.mxu1 %v3546_v58  ;;  %2953 = vmatpush.msrb.mxu2 %v3547_v27 }
 0xa2d   : > { %2890 = vmatpush.msra.mxu3 %v3548_v1  ;;  %2914 = vmatpush.msrb.mxu0 %v3549_v31 }
 0xa2e   : > { %2934 = vmatpush.msrb.mxu1 %v3550_v50  ;;  %2954 = vmatpush.msrb.mxu2 %v3551_v60 }
 0xa2f   : > { %2891 = vmatpush.msra.mxu3 %v3552_v62  ;;  %2915 = vmatpush.msrb.mxu0 %v3553_v4 }
 0xa30   : > { %2935 = vmatpush.msrb.mxu1 %v3554_v0  ;;  %2955 = vmatpush.msrb.mxu2 %v3555_v40 }
 0xa31   : > { %2892 = vmatpush.msra.mxu3 %v3556_v29  ;;  %2916 = vmatpush.msrb.mxu0 %v3557_v12 }
 0xa32   : > { %2936 = vmatpush.msrb.mxu1 %v3558_v3  ;;  %2956 = vmatpush.msrb.mxu2 %v3559_v37 }
 0xa33   : > { %2893 = vmatpush.msra.mxu3 %v3560_v44  ;;  %2917 = vmatpush.msrb.mxu0 %v3561_v63 }
 0xa34   : > { %2937 = vmatpush.msrb.mxu1 %v3562_v22  ;;  %2957 = vmatpush.msrb.mxu2 %v3563_v38 }
 0xa90   : > { %v2583_v10 = vpop.f32.mrf.mxu0 }
 0xa91   : > { %v2606_v2 = vpop.f32.mrf.mxu1  ;;  %v2646_v61 = vrot.slane %v2583_v10, 4 }
 0xa92   : > { %v2632_v5 = vrot.slane %v2606_v2, 4 }
 0xa96   : > { %v2560_v7 = vpop.f32.mrf.mxu3 }
 0xa97   : > { %v2633_v36 = vsel %vm967_vm8, %v2632_v5, %v2560_v7  ;;  %v2634_v11 = vrot.slane %v2560_v7, 4  ;;  %v2629_v42 = vpop.f32.mrf.mxu2 }
 0xa98   : > { %v2639_v13 = vperm.slane %v2633_v36, %v4267_v56  ;;  %v2644_v14 = vrot.slane %v2629_v42, 4  ;;  %v2647_v15 = vsel %vm967_vm8, %v2629_v42, %v2646_v61 }
 0xa99   : > { %v2635_v6 = vsel %vm967_vm8, %v2606_v2, %v2634_v11  ;;  %v2655_v17 = vperm.slane %v2647_v15, %v4267_v56 }
 0xa9a   : > { %v2643_v18 = vperm.slane %v2635_v6, %v4267_v56  ;;  %v2658_v20 = vrot.slane %v2639_v13, 4  ;;  %v2645_v23 = vsel %vm967_vm8, %v2644_v14, %v2583_v10 }
 0xa9b   : > { %v2651_v24 = vperm.slane %v2645_v23, %v4267_v56  ;;  %v2668_v59 = vrot.slane %v2655_v17, 4 }
 0xa9c   : > { %v2670_v26 = vrot.slane %v2643_v18, 4 }
 0xa9d   : > { %v2656_v49 = vrot.slane %v2651_v24, 4  ;;  %v2659_v16 = vsel %vm967_vm8, %v2651_v24, %v2658_v20  ;;  %v2669_v30 = vsel %vm967_vm8, %v2668_v59, %v2643_v18  ;;  %v3564_v24 = vld [vmem:[#allocation14 + $0x1f8] sm:$0xff]  ;;  %v3565_v59 = vld [vmem:[#allocation14 + $0x1f0] sm:$0xff] }
 0xa9e   : > { %v2667_v32 = vperm.slane %v2659_v16, %v4280_v19  ;;  %v2671_v33 = vsel %vm967_vm8, %v2655_v17, %v2670_v26  ;;  %v2675_v39 = vperm.slane %v2669_v30, %v4280_v19  ;;  %v3566_v26 = vld [vmem:[#allocation14 + $0x1e8] sm:$0xff]  ;;  %v3568_v16 = vld [vmem:[#allocation14 + $0x1d8] sm:$0xff]  ;;  %v3569_v30 = vld [vmem:[#allocation14 + $0x1d0] sm:$0xff] }
 0xa9f   : > { %v2657_v46 = vsel %vm967_vm8, %v2656_v49, %v2639_v13  ;;  %v2679_v45 = vperm.slane %v2671_v33, %v4280_v19  ;;  %v3567_v49 = vld [vmem:[#allocation14 + $0x1e0] sm:$0xff] }
 0xaa0   : > { %v2663_v47 = vperm.slane %v2657_v46, %v4280_v19  ;;  %v2682_v8 = vrot.slane %v2667_v32, 4  ;;  %v2684_v52 = vrot.slane %v2675_v39, 4  ;;  %v3570_v32 = vld [vmem:[#allocation14 + $0x1c8] sm:$0xff]  ;;  %v3571_v33 = vld [vmem:[#allocation14 + $0x1c0] sm:$0xff]  ;;  %v3573_v46 = vld [vmem:[#allocation14 + $0x1b0] sm:$0xff] }
 0xaa1   : > { %v2686_v53 = vrot.slane %v2679_v45, 4  ;;  %v3574_v45 = vld [vmem:[#allocation14 + $0x1a8] sm:$0xff] }
 0xaa2   : > { %v2680_v51 = vrot.slane %v2663_v47, 4  ;;  %v2683_v41 = vsel %vm967_vm8, 0.0, %v2682_v8  ;;  %v2688_v48 = vsel %vm967_vm8, %v2682_v8, %v2663_v47  ;;  %v2685_v60 = vsel %vm967_vm8, 0.0, %v2684_v52  ;;  %v3575_v47 = vld [vmem:[#allocation14 + $0x1a0] sm:$0xff]  ;;  %v3576_v8 = vld [vmem:[#allocation14 + $0x198] sm:$0xff]  ;;  %v3577_v52 = vld [vmem:[#allocation14 + $0x190] sm:$0xff] }
 0xaa3   : > { %v2687_v25 = vsel %vm967_vm8, 0.0, %v2686_v53  ;;  %v2693_v54 = vrot.slane %v2683_v41, 4  ;;  %v2699_v58 = vsel %vm967_vm8, %v2686_v53, %v2675_v39  ;;  %v2692_v27 = vperm.slane %v2688_v48, %v4267_v56  ;;  %v3572_v39 = vld [vmem:[#allocation14 + $0x1b8] sm:$0xff]  ;;  %v3578_v53 = vld [vmem:[#allocation14 + $0x188] sm:$0xff] }
 0xaa4   : > { %v2704_v1 = vrot.slane %v2687_v25, 4  ;;  %v2681_v31 = vsel %vm967_vm8, 0.0, %v2680_v51  ;;  %v2703_v50 = vperm.slane %v2699_v58, %v4267_v56  ;;  %v3579_v51 = vld [vmem:[#allocation14 + $0x180] sm:$0xff]  ;;  %v3580_v25 = vld [vmem:[%s4882_s4] ss:$0 sm:$0xff] }
 0xaa5   : > { %v2694_v62 = vsel %vm967_vm8, %v2693_v54, %v2681_v31  ;;  %v2712_v4 = vrot.slane %v2692_v27, 4 }
 0xaa6   : > { %v2698_v0 = vperm.slane %v2694_v62, %v4267_v56  ;;  %v2705_v40 = vsel %vm967_vm8, %v2704_v1, %v2685_v60  ;;  %v2724_v29 = vrot.slane %v2703_v50, 4 }
 0xaa7   : > { %v2709_v12 = vperm.slane %v2705_v40, %v4267_v56 }
 0xaa8   : > { %v2713_v3 = vsel %vm967_vm8, %v2698_v0, %v2712_v4  ;;  %v2710_v37 = vrot.slane %v2698_v0, 4 }
 0xaa9   : > { %v2721_v44 = vperm.slane %v2713_v3, %v4280_v19  ;;  %v2725_v63 = vsel %vm967_vm8, %v2709_v12, %v2724_v29  ;;  %v2722_v22 = vrot.slane %v2709_v12, 4 }
 0xaaa   : > { %v2733_v38 = vperm.slane %v2725_v63, %v4280_v19  ;;  %v2711_v2 = vsel %vm967_vm8, %v2710_v37, %v2692_v27 }
 0xaab   : > { %v2740_v10 = vrot.slane %v2721_v44, 4  ;;  %v2717_v5 = vperm.slane %v2711_v2, %v4280_v19  ;;  %v2723_v61 = vsel %vm967_vm8, %v2722_v22, %v2703_v50 }
 0xaac   : > { %v2738_v7 = vrot.slane %v2733_v38, 4  ;;  %v2729_v56 = vperm.slane %v2723_v61, %v4280_v19 }
 0xaad   : > { %v2741_v36 = vsel %vm967_vm8, %v2733_v38, %v2740_v10  ;;  %v2736_v11 = vrot.slane %v2717_v5, 4 }
 0xaae   : > { %2751 = vrot.lane.b32.xlu2 %v2741_v36, %s3959_s10  ;;  %v2739_v42 = vsel %vm967_vm8, %v2738_v7, %v2721_v44  ;;  %v2734_v13 = vrot.slane %v2729_v56, 4 }
 0xaaf   : > { %2747 = vrot.lane.b32.xlu1 %v2739_v42, %s3958_s28  ;;  %v2737_v14 = vsel %vm967_vm8, %v2729_v56, %v2736_v11  ;;  %v3581_v11 = vld [vmem:[#allocation10] ss:$0 sm:$0xff]  ;;  %s3868_s28 = sshra.s32 %s3001_s25, 4  ;;  %s3869_s28 = int_to_ptr.hbm [resolvable:$true] %s3868_s28 }
 0xab0   : > { %2743 = vrot.lane.b32.xlu0 %v2737_v14, %s3960_s12  ;;  %v2735_v15 = vsel %vm967_vm8, %v2734_v13, %v2717_v5  ;;  %v3582_v13 = vld [vmem:[#allocation11] ss:$0 sm:$0xff]  ;;  %s3870_s10 = scalar_lea.hbm %s3869_s28, 8  ;;  %p3875_p11 = scmp.lt.s32.totalorder %s3869_s28, %s4885_s27 }
 0xab1   : > { %p3871_p1 = scmp.ne.s32.totalorder %s3869_s28, %s3870_s10  ;;  %p3876_p7 = scmp.lt.s32.totalorder %s3874_s7, %s3870_s10 }
 0xab3   : > { %p3872_p3 = pnand %p3871_p1, %p4150_p5  ;;  %p3877_p8 = por %p3876_p7, %p3875_p11 }
 0xab5   : > { %p3873_p4 = pneg %p3872_p3 }
 0xab7   : > { %p3878_p9 = pnand %p3877_p8, %p3873_p4 }
 0xb08   : > { %v2752_v18 = vpop.permute.xlu2 %2751 }
 0xb21   : > { %v2748_v6 = vpop.permute.xlu1 %2747 }
 0xb22   : > { %v2744_v17 = vpop.permute.xlu0 %2743 }
 0xb23   : > { %v2754_v19 = vsel %vm1301_vm9, %v2735_v15, %v2744_v17 }
 0xb24   : > { %v2755_v20 = vsel %vm1671_vm15, %v2754_v19, %v2748_v6 }
 0xb25   : > { %v2756_v23 = vsel %vm1673_vm0, %v2755_v20, %v2752_v18 }
 0xb26   : > { %2773 = vmatmul.f32.vlgmr.msrb.gmra.mxu3 %v2756_v23 }
 0xb27   : > { %2962 = vmatpush.msrb.mxu3 %v3564_v24 }
 0xb29   : > { %2963 = vmatpush.msrb.mxu3 %v3565_v59 }
 0xb2b   : > { %2964 = vmatpush.msrb.mxu3 %v3566_v26 }
 0xb2d   : > { %2965 = vmatpush.msrb.mxu3 %v3567_v49 }
 0xb2f   : > { %2966 = vmatpush.msrb.mxu3 %v3568_v16 }
 0xb31   : > { %2967 = vmatpush.msrb.mxu3 %v3569_v30 }
 0xb33   : > { %2968 = vmatpush.msrb.mxu3 %v3570_v32 }
 0xb35   : > { %2969 = vmatpush.msrb.mxu3 %v3571_v33 }
 0xb37   : > { %2970 = vmatpush.msrb.mxu3 %v3572_v39 }
 0xb39   : > { %2971 = vmatpush.msrb.mxu3 %v3573_v46 }
 0xb3b   : > { %2972 = vmatpush.msrb.mxu3 %v3574_v45 }
 0xb3d   : > { %2973 = vmatpush.msrb.mxu3 %v3575_v47 }
 0xb3f   : > { %2974 = vmatpush.msrb.mxu3 %v3576_v8 }
 0xb41   : > { %2975 = vmatpush.msrb.mxu3 %v3577_v52 }
 0xb43   : > { %2976 = vmatpush.msrb.mxu3 %v3578_v53 }
 0xb45   : > { %2977 = vmatpush.msrb.mxu3 %v3579_v51 }
 0xba9   : > { %v2774_v41 = vpop.f32.mrf.mxu3 }
 0xbaa   : > { %v2777_v48 = vadd.f32 %v2774_v41, %v4540_v21 }
 0xbac   : > { %v4790_v54 = vadd.f32 %v3580_v25, %v2777_v48 }
 0xbae   : > { %2779 = vadd.xlane.f32.xlu0 %v4790_v54 }
 0xc21   : > { %v2780_v58 = vpop.xlane.xlu0 %2779 }
 0xc22   : > { %v2781_v27 = vmul.f32 %v2780_v58, %v4218_v9 }
 0xc24   : > { %v2782_v1 = vsub.f32 %v4790_v54, %v2781_v27 }
 0xc26   : > { %v2783_v31 = vmul.f32 %v2782_v1, %v2782_v1 }
 0xc28   : > { %2784 = vadd.xlane.f32.xlu1 %v2783_v31 }
 0xc9b   : > { %v2785_v50 = vpop.xlane.xlu1 %2784 }
 0xc9c   : > { %v2786_v60 = vmul.f32 %v2785_v50, %v4226_v43 }
 0xc9e   : > { %3381 = vrsqrt.f32 %v2786_v60  ;;  %vm2794_vm8 = vcmp.eq.f32.partialorder %v2786_v60, inf  ;;  %v2797_v3 = vand.u32 2147483648, %v2786_v60  ;;  %vm2796_vm9 = vcmp.eq.f32.partialorder %v2786_v60, 0.0 }
 0xca4   : > { %v3382_v21 = vpop.eup %3381 }
 0xca5   : > { %v2788_v62 = vmul.f32 %v3382_v21, %v2786_v60 }
 0xca7   : > { %v2789_v4 = vmul.f32 %v3382_v21, %v2788_v62 }
 0xca9   : > { %v2790_v0 = vmul.f32 0.5, %v2789_v4 }
 0xcab   : > { %v2791_v40 = vsub.f32 1.5, %v2790_v0 }
 0xcad   : > { %v2792_v29 = vmul.f32 %v3382_v21, %v2791_v40 }
 0xcaf   : > { %v2793_v12 = vmul.f32 %v2792_v29, %v2786_v60 }
 0xcb1   : > { %v2795_v37 = vsel %vm2794_vm8, %v2786_v60, %v2793_v12 }
 0xcb2   : > { %v2798_v9 = vsel %vm2796_vm9, %v2797_v3, %v2795_v37 }
 0xcb3   : > { %v2799_v44 = vadd.f32 1e-06, %v2798_v9 }
 0xcb5   : > { %3383 = vrcp.f32 %v2799_v44  ;;  %v2811_v2 = vand.u32 2147483648, %v2799_v44  ;;  %v2809_v10 = vand.u32 2147483647, %v2799_v44  ;;  %vm2805_vm15 = vweird.f32 %v2799_v44 }
 0xcb7   : > { %v2812_v61 = vor.u32 1.1754944e-38, %v2811_v2  ;;  %vm2810_vm6 = vcmp.eq.f32.partialorder %v2809_v10, 8.507059e+37 }
 0xcbb   : > { %v3384_v63 = vpop.eup %3383 }
 0xcbc   : > { %v2801_v22 = vmul.f32 %v3384_v63, %v2799_v44  ;;  %vm2806_vm10 = vweird.f32 %v3384_v63 }
 0xcbd   : > { %vm2807_vm0 = vmor %vm2805_vm15, %vm2806_vm10 }
 0xcbe   : > { %v2802_v38 = vsub.f32 1.0, %v2801_v22 }
 0xcc0   : > { %v2803_v43 = vmul.f32 %v3384_v63, %v2802_v38 }
 0xcc2   : > { %v2804_v5 = vadd.f32 %v3384_v63, %v2803_v43 }
 0xcc4   : > { %v2808_v7 = vsel %vm2807_vm0, %v3384_v63, %v2804_v5 }
 0xcc5   : > { %v2813_v56 = vsel %vm2810_vm6, %v2812_v61, %v2808_v7 }
 0xcc6   : > { %v2815_v36 = vmul.f32 %v2813_v56, %v2782_v1 }
 0xcc8   : > { %v2816_v42 = vmul.f32 %v3581_v11, %v2815_v36 }
 0xcca   : > { %v2817_v14 = vadd.f32 %v3582_v13, %v2816_v42 }
 0xccc   : > { %2834 = vmatmul.f32.vlgmr.msra.gmra.mxu0 %v2817_v14  ;;  %2854 = vmatmul.f32.vlgmr.msra.gmra.mxu1 %v2817_v14 }
 0xccd   : > { %2874 = vmatmul.f32.vlgmr.msra.gmra.mxu2 %v2817_v14  ;;  %2894 = vmatmul.f32.vlgmr.msra.gmra.mxu3 %v2817_v14 }
 0xd49   : > { %v2835_v15 = vpop.f32.mrf.mxu0  ;;  %v2855_v6 = vpop.f32.mrf.mxu1 }
 0xd4a   : > { %v2836_v17 = vadd.f32 %v2835_v15, %v1746_v34  ;;  %v2856_v19 = vadd.f32 %v2855_v6, %v1747_v35  ;;  %v3583_v35 = vld [vmem:[%s4884_s0] ss:$0 sm:$0xff] }
 0xd4c   : > { %v2898_v18 = vmax.f32 %v2836_v17, 0.0  ;;  %v2899_v20 = vmax.f32 %v2856_v19, 0.0 }
 0xd4e   : > { %2918 = vmatmul.f32.vlgmr.msrb.gmra.mxu0 %v2898_v18  ;;  %2938 = vmatmul.f32.vlgmr.msrb.gmra.mxu1 %v2899_v20 }
 0xd50   : > { %v2875_v23 = vpop.f32.mrf.mxu2  ;;  %v2895_v24 = vpop.f32.mrf.mxu3 }
 0xd51   : > { %v2876_v59 = vadd.f32 %v2875_v23, %v1748_v55  ;;  %v2896_v26 = vadd.f32 %v2895_v24, %v1749_v57 }
 0xd53   : > { %v2900_v49 = vmax.f32 %v2876_v59, 0.0  ;;  %v2901_v16 = vmax.f32 %v2896_v26, 0.0 }
 0xd55   : > { %2958 = vmatmul.f32.vlgmr.msrb.gmra.mxu2 %v2900_v49  ;;  %2978 = vmatmul.f32.vlgmr.msrb.gmra.mxu3 %v2901_v16 }
 0xdcb   : > { %v2919_v34 = vpop.f32.mrf.mxu0  ;;  %v2939_v32 = vpop.f32.mrf.mxu1 }
 0xdcc   : > { %v2920_v30 = vadd.f32 %v3583_v35, %v2919_v34 }
 0xdce   : > { %v2940_v33 = vadd.f32 %v2939_v32, %v2920_v30 }
 0xdd8   : > { %v2959_v39 = vpop.f32.mrf.mxu2  ;;  %v2979_v28 = vpop.f32.mrf.mxu3 }
 0xdd9   : > { %v2960_v55 = vadd.f32 %v2959_v39, %v2940_v33 }
 0xddb   : > { %v2980_v57 = vadd.f32 %v2979_v28, %v2960_v55 }
 0xddd   : > { %v2982_v46 = vmax.f32 %v2980_v57, 0.0 }
 0xddf   : > { %v2983_v45 = vadd.f32 %v2982_v46, %v4790_v54 }
 0xde1   : > { %2984 = vst [vmem:[%s606_s17] sm:$0xff] %v2983_v45 }
 0xde2   : > { %3881 = shalt.err (!%p3878_p9)
}
 0xde3   : > { %3233 = dma.vmem_to_hbm [thread:$0]  (%p4150_p5), %s2999_s24, 128, %s3001_s25, %s2986_s20  }
 0xde4 PF: > { %s3012_s3 = sand.u32 1, %s3928_s29   ;;  %p4886_p10 = scmp.ge.s32.totalorder %s3940_s16, 2 }
 0xde5   : > { %s3013_s1 = scalar_lea.sflag [#allocation4], %s3012_s3 }
 0xde6   : > { %p3265_p12 = pnand %p4886_p10, %p4154_p6 }
 0xde8   : > { %p3266_p13 = pneg %p3265_p12 }
 0xdea   : > { %3923 = dma.done.wait (%p3266_p13), %s3013_s1, 128  }
 0xdeb   : > { %3925 = vsyncadd (%p3266_p13), %s3013_s1, 4294967168  ;;  %p29_p0 = scmp.ge.s32.totalorder %s4125_s23, 4   ;;  %s4887_s29 = smov %s3932_s30 }
 0xdec   : > { %s4888_s30 = smov %s3936_s15  ;;  %s4889_s15 = smov %s4136_s18 }
 0xded   : > { %s4890_s16 = smov %s4125_s23  ;;  %31 = sbr.rel (!%p29_p0) target bundleno = 18 (0x12), region = 152 }
 0xdf2   :  { %3019 = vsyncpa [#allocation3], 1 }
 0xdf3   :  { %3021 = vsyncpa [#allocation3 + $0x1], 1 }
 0xdf4   :  { %3022 = vsyncpa [#allocation6], 1 }
 0xdf5   :  { %3023 = vsyncpa [#allocation9], 1 }
 0xdf6   :  { %3024 = vsyncpa [#allocation12], 1 }
 0xdf7   :  { %3025 = vsyncpa [#allocation15], 1 }
 0xdf8   :  { %3026 = vsyncpa [#allocation4], 1 }
 0xdf9   :  { %3028 = vsyncpa [#allocation4 + $0x1], 1 }

</bundles_post_ra>
